<compile_context>
chip_gen: v7x
topology: tpu7x:2x2x1
jax: 0.10.0
libtpu: 0.0.40
codegen_flags: <defaults>
</compile_context>

<pallas_src>
import jax
import jax.numpy as jnp
from jax.experimental import pallas as pl
from jax.experimental.pallas import tpu as pltpu

# ----------------------------- config (scaled-down VideoMAE) -----------------
IMG = 32
PATCH = 16
TUBELET = 2
FRAMES = 16          # frames per clip (fixed to 16 in batch_videos)
CHANS = 3
HIDDEN = 64
HEADS = 4
HEAD_DIM = HIDDEN // HEADS
LAYERS = 2
MLP = 128
OUT_DIM = 128        # stands in for the 768->1024 linear head
SEQ = (FRAMES // TUBELET) * (IMG // PATCH) ** 2          # 32
PATCH_DIM = CHANS * TUBELET * PATCH * PATCH              # 1536
EPS = 1e-12          # VideoMAE layer_norm_eps
SCALE = 1.0 / (HEAD_DIM ** 0.5)
COMPUTE_DTYPE = jnp.bfloat16   # MXU operand dtype (f32 accumulation everywhere)


# ----------------------------- fused encoder kernel --------------------------
def _ln(x, g, b):
    """LayerNorm over the last dim; x is f32, g/b are (1, D) f32."""
    mean = jnp.mean(x, axis=-1, keepdims=True)
    var = jnp.mean((x - mean) ** 2, axis=-1, keepdims=True)
    return (x - mean) * jax.lax.rsqrt(var + EPS) * g + b


def _encoder_kernel(p_ref, pe_w_ref, pe_b_ref, pos_ref,
                    ln1_g_ref, ln1_b_ref, wqkv_ref, bqkv_ref, wo_ref, bo_ref,
                    ln2_g_ref, ln2_b_ref, w1_ref, b1_ref, w2_ref, b2_ref,
                    fc_g_ref, fc_b_ref, head_w_ref, head_b_ref,
                    o_ref):
    # One grid step == one 16-frame clip.
    patches = p_ref[0]                                          # (SEQ, PATCH_DIM) bf16

    # Tubelet (patch) embedding + positional embedding, fused.
    x = jnp.dot(patches, pe_w_ref[...], preferred_element_type=jnp.float32)
    x = x + pe_b_ref[...] + pos_ref[...]                        # (SEQ, HIDDEN) f32

    for li in range(LAYERS):
        # --- self-attention block (pre-LN), residual fused -------------------
        ln1 = _ln(x, ln1_g_ref[li], ln1_b_ref[li])
        qkv = jnp.dot(ln1.astype(COMPUTE_DTYPE), wqkv_ref[li],
                      preferred_element_type=jnp.float32) + bqkv_ref[li]  # (SEQ, 3H)

        heads_out = []
        for h in range(HEADS):
            lo = h * HEAD_DIM
            qh = qkv[:, 0 * HIDDEN + lo: 0 * HIDDEN + lo + HEAD_DIM].astype(COMPUTE_DTYPE)
            kh = qkv[:, 1 * HIDDEN + lo: 1 * HIDDEN + lo + HEAD_DIM].astype(COMPUTE_DTYPE)
            vh = qkv[:, 2 * HIDDEN + lo: 2 * HIDDEN + lo + HEAD_DIM].astype(COMPUTE_DTYPE)
            # Q @ K^T via dot_general contracting last dims (no explicit .T).
            s = jax.lax.dot_general(qh, kh, (((1,), (1,)), ((), ())),
                                    preferred_element_type=jnp.float32) * SCALE
            s = s - jnp.max(s, axis=-1, keepdims=True)
            pw = jnp.exp(s)
            pw = pw * pl.reciprocal(jnp.sum(pw, axis=-1, keepdims=True), approx=True)
            heads_out.append(jnp.dot(pw.astype(COMPUTE_DTYPE), vh,
                                     preferred_element_type=jnp.float32))
        attn = jnp.concatenate(heads_out, axis=-1)              # (SEQ, HIDDEN) f32

        x = x + jnp.dot(attn.astype(COMPUTE_DTYPE), wo_ref[li],
                        preferred_element_type=jnp.float32) + bo_ref[li]

        # --- MLP block (pre-LN), residual fused -------------------------------
        ln2 = _ln(x, ln2_g_ref[li], ln2_b_ref[li])
        hid = jnp.dot(ln2.astype(COMPUTE_DTYPE), w1_ref[li],
                      preferred_element_type=jnp.float32) + b1_ref[li]
        # TODO(synk): HF VideoMAE uses exact (erf) GELU; tanh approximation used here.
        hid = jax.nn.gelu(hid, approximate=True)
        x = x + jnp.dot(hid.astype(COMPUTE_DTYPE), w2_ref[li],
                        preferred_element_type=jnp.float32) + b2_ref[li]

    # Head: linear_head(last_hidden.mean(1)) = Linear(fc_norm(mean over seq)).
    pooled = jnp.mean(x, axis=0, keepdims=True)                 # (1, HIDDEN)
    pooled = _ln(pooled, fc_g_ref[...], fc_b_ref[...])
    out = jnp.dot(pooled.astype(COMPUTE_DTYPE), head_w_ref[...],
                  preferred_element_type=jnp.float32) + head_b_ref[...]
    o_ref[0] = out.astype(o_ref.dtype)                          # (1, OUT_DIM)


def _full_spec(a):
    """Whole-array block, constant index -> stays VMEM-resident across the grid."""
    return pl.BlockSpec(a.shape, lambda i, nd=a.ndim: (0,) * nd)


# ----------------------------- parameter init --------------------------------
def init_params(key):
    def nrm(k, shape, dtype=jnp.float32, scale=0.02):
        return (scale * jax.random.normal(k, shape)).astype(dtype)

    zeros = lambda shape: jnp.zeros(shape, jnp.float32)
    ones = lambda shape: jnp.ones(shape, jnp.float32)
    keys = jax.random.split(key, 7)
    return {
        # tubelet Conv3d (stride == kernel) expressed as a matmul
        "pe_w": nrm(keys[0], (PATCH_DIM, HIDDEN), COMPUTE_DTYPE),
        "pe_b": zeros((1, HIDDEN)),
        # TODO(synk): HF uses fixed sinusoidal position embeddings; synthetic here.
        "pos": nrm(keys[1], (SEQ, HIDDEN)),
        # per-layer weights stacked along a leading LAYERS axis
        "ln1_g": ones((LAYERS, 1, HIDDEN)),
        "ln1_b": zeros((LAYERS, 1, HIDDEN)),
        "wqkv": nrm(keys[2], (LAYERS, HIDDEN, 3 * HIDDEN), COMPUTE_DTYPE),  # fused Q|K|V
        "bqkv": zeros((LAYERS, 1, 3 * HIDDEN)),
        "wo": nrm(keys[3], (LAYERS, HIDDEN, HIDDEN), COMPUTE_DTYPE),
        "bo": zeros((LAYERS, 1, HIDDEN)),
        "ln2_g": ones((LAYERS, 1, HIDDEN)),
        "ln2_b": zeros((LAYERS, 1, HIDDEN)),
        "w1": nrm(keys[4], (LAYERS, HIDDEN, MLP), COMPUTE_DTYPE),
        "b1": zeros((LAYERS, 1, MLP)),
        "w2": nrm(keys[5], (LAYERS, MLP, HIDDEN), COMPUTE_DTYPE),
        "b2": zeros((LAYERS, 1, HIDDEN)),
        # fc_norm + classifier head
        "fc_g": ones((1, HIDDEN)),
        "fc_b": zeros((1, HIDDEN)),
        "head_w": nrm(keys[6], (HIDDEN, OUT_DIM), COMPUTE_DTYPE),
        "head_b": zeros((1, OUT_DIM)),
    }


_WEIGHT_ORDER = ["pe_w", "pe_b", "pos",
                 "ln1_g", "ln1_b", "wqkv", "bqkv", "wo", "bo",
                 "ln2_g", "ln2_b", "w1", "b1", "w2", "b2",
                 "fc_g", "fc_b", "head_w", "head_b"]


# ----------------------------- forward ----------------------------------------
def video_encoder_forward(x, lens, params):
    """x: (B, C, T, H, W) float32; lens unused for compute (matches the module).
    Returns (B, num_videos, OUT_DIM)."""
    del lens
    B, C, T, H, W = x.shape
    # x.permute(0, 2, 1, 3, 4)
    x = jnp.transpose(x, (0, 2, 1, 3, 4))                       # (B, T, C, H, W)
    # batch_videos: zero-pad to a multiple of 16 frames, chunk into clips of 16
    num_videos = -(-T // FRAMES)
    pad_t = num_videos * FRAMES - T
    if pad_t:
        x = jnp.pad(x, ((0, 0), (0, pad_t), (0, 0), (0, 0), (0, 0)))
    clips = x.reshape(B * num_videos, FRAMES, C, H, W)
    N = clips.shape[0]

    # Tubelet embedding == Conv3d(stride=kernel) == patch-flatten + matmul.
    # Flatten each (kt, ph, pw) tubelet in (C, kt, ph, pw) order to match
    # conv-weight flattening; token order is (t', h', w').
    # TODO(synk): this transpose still materializes one copy of the input in HBM;
    # expressing the gather through the patch-embed index_map would remove it.
    p = clips.reshape(N, FRAMES // TUBELET, TUBELET, C,
                      H // PATCH, PATCH, W // PATCH, PATCH)
    p = jnp.transpose(p, (0, 1, 4, 6, 3, 2, 5, 7))              # (N,T',Hp,Wp,C,kt,ph,pw)
    p = p.reshape(N, SEQ, PATCH_DIM).astype(COMPUTE_DTYPE)

    weights = [params[k] for k in _WEIGHT_ORDER]

    out = pl.pallas_call(
        _encoder_kernel,
        out_shape=jax.ShapeDtypeStruct((N, 1, OUT_DIM), jnp.float32),
        grid=(N,),
        in_specs=[pl.BlockSpec((1, SEQ, PATCH_DIM), lambda i: (i, 0, 0))]
                 + [_full_spec(w) for w in weights],
        out_specs=pl.BlockSpec((1, 1, OUT_DIM), lambda i: (i, 0, 0)),
        compiler_params=pltpu.CompilerParams(
            dimension_semantics=("parallel",)),                 # both TCs on v7x
    )(p, *weights)                                              # (N, 1, OUT_DIM)

    # unbatch_videos
    return out.reshape(B, num_videos, OUT_DIM)


# ----------------------------- main -------------------------------------------
if __name__ == "__main__":
    key = jax.random.PRNGKey(0)
    k_params, k_x = jax.random.split(key)
    params = init_params(k_params)

    B = 2
    x = jax.random.normal(k_x, (B, CHANS, FRAMES, IMG, IMG), dtype=jnp.float32)
    lens = jnp.array([FRAMES, FRAMES], dtype=jnp.int32)

    fwd = jax.jit(video_encoder_forward)
    out = fwd(x, lens, params)
    out = jax.block_until_ready(out)
    assert out.shape == (B, 1, OUT_DIM), out.shape
    assert bool(jnp.all(jnp.isfinite(out)))
    print("KERNEL_OK")
</pallas_src>

<mosaic_0001>
module attributes {stable_mosaic.version = 11 : i64} {
  func.func @_encoder_kernel(%arg0: i32, %arg1: memref<1x32x1536xbf16, #tpu.memory_space<vmem>>, %arg2: memref<1536x64xbf16, #tpu.memory_space<vmem>>, %arg3: memref<1x64xf32, #tpu.memory_space<vmem>>, %arg4: memref<32x64xf32, #tpu.memory_space<vmem>>, %arg5: memref<2x1x64xf32, #tpu.memory_space<vmem>>, %arg6: memref<2x1x64xf32, #tpu.memory_space<vmem>>, %arg7: memref<2x64x192xbf16, #tpu.memory_space<vmem>>, %arg8: memref<2x1x192xf32, #tpu.memory_space<vmem>>, %arg9: memref<2x64x64xbf16, #tpu.memory_space<vmem>>, %arg10: memref<2x1x64xf32, #tpu.memory_space<vmem>>, %arg11: memref<2x1x64xf32, #tpu.memory_space<vmem>>, %arg12: memref<2x1x64xf32, #tpu.memory_space<vmem>>, %arg13: memref<2x64x128xbf16, #tpu.memory_space<vmem>>, %arg14: memref<2x1x128xf32, #tpu.memory_space<vmem>>, %arg15: memref<2x128x64xbf16, #tpu.memory_space<vmem>>, %arg16: memref<2x1x64xf32, #tpu.memory_space<vmem>>, %arg17: memref<1x64xf32, #tpu.memory_space<vmem>>, %arg18: memref<1x64xf32, #tpu.memory_space<vmem>>, %arg19: memref<64x128xbf16, #tpu.memory_space<vmem>>, %arg20: memref<1x128xf32, #tpu.memory_space<vmem>>, %arg21: memref<1x1x128xf32, #tpu.memory_space<vmem>>) attributes {dimension_semantics = [#tpu.dimension_semantics<parallel>], iteration_bounds = array<i64: 2>, scalar_prefetch = 0 : i64, scratch_operands = 0 : i64, tpu.core_type = #tpu.core_type<tc>, window_params = [{transform_indices = @transform_0, window_bounds = array<i64: 1, 32, 1536>}, {pipeline_mode = #tpu.pipeline_mode<synchronous>, transform_indices = @transform_1, window_bounds = array<i64: 1536, 64>}, {pipeline_mode = #tpu.pipeline_mode<synchronous>, transform_indices = @transform_2, window_bounds = array<i64: 1, 64>}, {pipeline_mode = #tpu.pipeline_mode<synchronous>, transform_indices = @transform_3, window_bounds = array<i64: 32, 64>}, {pipeline_mode = #tpu.pipeline_mode<synchronous>, transform_indices = @transform_4, window_bounds = array<i64: 2, 1, 64>}, {pipeline_mode = #tpu.pipeline_mode<synchronous>, transform_indices = @transform_5, window_bounds = array<i64: 2, 1, 64>}, {pipeline_mode = #tpu.pipeline_mode<synchronous>, transform_indices = @transform_6, window_bounds = array<i64: 2, 64, 192>}, {pipeline_mode = #tpu.pipeline_mode<synchronous>, transform_indices = @transform_7, window_bounds = array<i64: 2, 1, 192>}, {pipeline_mode = #tpu.pipeline_mode<synchronous>, transform_indices = @transform_8, window_bounds = array<i64: 2, 64, 64>}, {pipeline_mode = #tpu.pipeline_mode<synchronous>, transform_indices = @transform_9, window_bounds = array<i64: 2, 1, 64>}, {pipeline_mode = #tpu.pipeline_mode<synchronous>, transform_indices = @transform_10, window_bounds = array<i64: 2, 1, 64>}, {pipeline_mode = #tpu.pipeline_mode<synchronous>, transform_indices = @transform_11, window_bounds = array<i64: 2, 1, 64>}, {pipeline_mode = #tpu.pipeline_mode<synchronous>, transform_indices = @transform_12, window_bounds = array<i64: 2, 64, 128>}, {pipeline_mode = #tpu.pipeline_mode<synchronous>, transform_indices = @transform_13, window_bounds = array<i64: 2, 1, 128>}, {pipeline_mode = #tpu.pipeline_mode<synchronous>, transform_indices = @transform_14, window_bounds = array<i64: 2, 128, 64>}, {pipeline_mode = #tpu.pipeline_mode<synchronous>, transform_indices = @transform_15, window_bounds = array<i64: 2, 1, 64>}, {pipeline_mode = #tpu.pipeline_mode<synchronous>, transform_indices = @transform_16, window_bounds = array<i64: 1, 64>}, {pipeline_mode = #tpu.pipeline_mode<synchronous>, transform_indices = @transform_17, window_bounds = array<i64: 1, 64>}, {pipeline_mode = #tpu.pipeline_mode<synchronous>, transform_indices = @transform_18, window_bounds = array<i64: 64, 128>}, {pipeline_mode = #tpu.pipeline_mode<synchronous>, transform_indices = @transform_19, window_bounds = array<i64: 1, 128>}, {transform_indices = @transform_20, window_bounds = array<i64: 1, 1, 128>}]} {
    %c0 = arith.constant 0 : index
    %c0_0 = arith.constant 0 : index
    %c0_1 = arith.constant 0 : index
    %0 = vector.load %arg1[%c0, %c0_0, %c0_1] : memref<1x32x1536xbf16, #tpu.memory_space<vmem>>, vector<1x32x1536xbf16>
    %1 = vector.shape_cast %0 : vector<1x32x1536xbf16> to vector<32x1536xbf16>
    %c0_2 = arith.constant 0 : index
    %c0_3 = arith.constant 0 : index
    %2 = vector.load %arg2[%c0_2, %c0_3] : memref<1536x64xbf16, #tpu.memory_space<vmem>>, vector<1536x64xbf16>
    %cst = arith.constant dense<0.000000e+00> : vector<32x64xf32>
    %3 = tpu.matmul %1, %2, %cst {dimension_numbers = #tpu.dot_dimension_numbers<[1], [0], [0], [1], [0, 0, 1, 1], [], []>} : vector<32x1536xbf16>, vector<1536x64xbf16>, vector<32x64xf32> -> vector<32x64xf32>
    %c0_4 = arith.constant 0 : index
    %c0_5 = arith.constant 0 : index
    %4 = vector.load %arg3[%c0_4, %c0_5] : memref<1x64xf32, #tpu.memory_space<vmem>>, vector<1x64xf32>
    %5 = vector.broadcast %4 : vector<1x64xf32> to vector<32x64xf32>
    %6 = arith.addf %3, %5 : vector<32x64xf32>
    %c0_6 = arith.constant 0 : index
    %c0_7 = arith.constant 0 : index
    %7 = vector.load %arg4[%c0_6, %c0_7] : memref<32x64xf32, #tpu.memory_space<vmem>>, vector<32x64xf32>
    %8 = arith.addf %6, %7 : vector<32x64xf32>
    %c0_8 = arith.constant 0 : index
    %c0_9 = arith.constant 0 : index
    %c0_10 = arith.constant 0 : index
    %9 = vector.load %arg5[%c0_8, %c0_9, %c0_10] : memref<2x1x64xf32, #tpu.memory_space<vmem>>, vector<1x1x64xf32>
    %10 = vector.shape_cast %9 : vector<1x1x64xf32> to vector<1x64xf32>
    %c0_11 = arith.constant 0 : index
    %c0_12 = arith.constant 0 : index
    %c0_13 = arith.constant 0 : index
    %11 = vector.load %arg6[%c0_11, %c0_12, %c0_13] : memref<2x1x64xf32, #tpu.memory_space<vmem>>, vector<1x1x64xf32>
    %12 = vector.shape_cast %11 : vector<1x1x64xf32> to vector<1x64xf32>
    %cst_14 = arith.constant dense<0.000000e+00> : vector<32xf32>
    %13 = vector.multi_reduction <add>, %8, %cst_14 [1] : vector<32x64xf32> to vector<32xf32>
    %14 = vector.shape_cast %13 : vector<32xf32> to vector<32x1xf32>
    %cst_15 = arith.constant 6.400000e+01 : f32
    %15 = vector.broadcast %cst_15 : f32 to vector<32x1xf32>
    %16 = arith.divf %14, %15 : vector<32x1xf32>
    %17 = vector.broadcast %16 : vector<32x1xf32> to vector<32x64xf32>
    %18 = arith.subf %8, %17 : vector<32x64xf32>
    %19 = arith.mulf %18, %18 : vector<32x64xf32>
    %cst_16 = arith.constant dense<0.000000e+00> : vector<32xf32>
    %20 = vector.multi_reduction <add>, %19, %cst_16 [1] : vector<32x64xf32> to vector<32xf32>
    %21 = vector.shape_cast %20 : vector<32xf32> to vector<32x1xf32>
    %cst_17 = arith.constant 6.400000e+01 : f32
    %22 = vector.broadcast %cst_17 : f32 to vector<32x1xf32>
    %23 = arith.divf %21, %22 : vector<32x1xf32>
    %24 = vector.broadcast %16 : vector<32x1xf32> to vector<32x64xf32>
    %25 = arith.subf %8, %24 : vector<32x64xf32>
    %cst_18 = arith.constant 9.99999996E-13 : f32
    %26 = vector.broadcast %cst_18 : f32 to vector<32x1xf32>
    %27 = arith.addf %23, %26 : vector<32x1xf32>
    %28 = math.rsqrt %27 : vector<32x1xf32>
    %29 = vector.broadcast %28 : vector<32x1xf32> to vector<32x64xf32>
    %30 = arith.mulf %25, %29 : vector<32x64xf32>
    %31 = vector.broadcast %10 : vector<1x64xf32> to vector<32x64xf32>
    %32 = arith.mulf %30, %31 : vector<32x64xf32>
    %33 = vector.broadcast %12 : vector<1x64xf32> to vector<32x64xf32>
    %34 = arith.addf %32, %33 : vector<32x64xf32>
    %35 = arith.truncf %34 : vector<32x64xf32> to vector<32x64xbf16>
    %c0_19 = arith.constant 0 : index
    %c0_20 = arith.constant 0 : index
    %c0_21 = arith.constant 0 : index
    %36 = vector.load %arg7[%c0_19, %c0_20, %c0_21] : memref<2x64x192xbf16, #tpu.memory_space<vmem>>, vector<1x64x192xbf16>
    %37 = vector.shape_cast %36 : vector<1x64x192xbf16> to vector<64x192xbf16>
    %cst_22 = arith.constant dense<0.000000e+00> : vector<32x192xf32>
    %38 = tpu.matmul %35, %37, %cst_22 {dimension_numbers = #tpu.dot_dimension_numbers<[1], [0], [0], [1], [0, 0, 1, 1], [], []>} : vector<32x64xbf16>, vector<64x192xbf16>, vector<32x192xf32> -> vector<32x192xf32>
    %c0_23 = arith.constant 0 : index
    %c0_24 = arith.constant 0 : index
    %c0_25 = arith.constant 0 : index
    %39 = vector.load %arg8[%c0_23, %c0_24, %c0_25] : memref<2x1x192xf32, #tpu.memory_space<vmem>>, vector<1x1x192xf32>
    %40 = vector.shape_cast %39 : vector<1x1x192xf32> to vector<1x192xf32>
    %41 = vector.broadcast %40 : vector<1x192xf32> to vector<32x192xf32>
    %42 = arith.addf %38, %41 : vector<32x192xf32>
    %43 = vector.extract_strided_slice %42 {offsets = [0, 0], sizes = [32, 16], strides = [1, 1]} : vector<32x192xf32> to vector<32x16xf32>
    %44 = arith.truncf %43 : vector<32x16xf32> to vector<32x16xbf16>
    %45 = vector.extract_strided_slice %42 {offsets = [0, 64], sizes = [32, 16], strides = [1, 1]} : vector<32x192xf32> to vector<32x16xf32>
    %46 = arith.truncf %45 : vector<32x16xf32> to vector<32x16xbf16>
    %47 = vector.extract_strided_slice %42 {offsets = [0, 128], sizes = [32, 16], strides = [1, 1]} : vector<32x192xf32> to vector<32x16xf32>
    %48 = arith.truncf %47 : vector<32x16xf32> to vector<32x16xbf16>
    %cst_26 = arith.constant dense<0.000000e+00> : vector<32x32xf32>
    %49 = tpu.matmul %44, %46, %cst_26 {dimension_numbers = #tpu.dot_dimension_numbers<[1], [1], [0], [0], [0, 0, 1, 0], [], []>} : vector<32x16xbf16>, vector<32x16xbf16>, vector<32x32xf32> -> vector<32x32xf32>
    %cst_27 = arith.constant 2.500000e-01 : f32
    %50 = vector.broadcast %cst_27 : f32 to vector<32x32xf32>
    %51 = arith.mulf %49, %50 : vector<32x32xf32>
    %cst_28 = arith.constant dense<0xFF800000> : vector<32xf32>
    %52 = vector.multi_reduction <maximumf>, %51, %cst_28 [1] : vector<32x32xf32> to vector<32xf32>
    %53 = vector.shape_cast %52 : vector<32xf32> to vector<32x1xf32>
    %54 = vector.broadcast %53 : vector<32x1xf32> to vector<32x32xf32>
    %55 = arith.subf %51, %54 : vector<32x32xf32>
    %56 = math.exp %55 : vector<32x32xf32>
    %cst_29 = arith.constant dense<0.000000e+00> : vector<32xf32>
    %57 = vector.multi_reduction <add>, %56, %cst_29 [1] : vector<32x32xf32> to vector<32xf32>
    %58 = vector.shape_cast %57 : vector<32xf32> to vector<32x1xf32>
    %59 = tpu.reciprocal %58 {approx = true} : vector<32x1xf32> -> vector<32x1xf32>
    %60 = vector.broadcast %59 : vector<32x1xf32> to vector<32x32xf32>
    %61 = arith.mulf %56, %60 : vector<32x32xf32>
    %62 = arith.truncf %61 : vector<32x32xf32> to vector<32x32xbf16>
    %cst_30 = arith.constant dense<0.000000e+00> : vector<32x16xf32>
    %63 = tpu.matmul %62, %48, %cst_30 {dimension_numbers = #tpu.dot_dimension_numbers<[1], [0], [0], [1], [0, 0, 1, 1], [], []>} : vector<32x32xbf16>, vector<32x16xbf16>, vector<32x16xf32> -> vector<32x16xf32>
    %64 = vector.extract_strided_slice %42 {offsets = [0, 16], sizes = [32, 16], strides = [1, 1]} : vector<32x192xf32> to vector<32x16xf32>
    %65 = arith.truncf %64 : vector<32x16xf32> to vector<32x16xbf16>
    %66 = vector.extract_strided_slice %42 {offsets = [0, 80], sizes = [32, 16], strides = [1, 1]} : vector<32x192xf32> to vector<32x16xf32>
    %67 = arith.truncf %66 : vector<32x16xf32> to vector<32x16xbf16>
    %68 = vector.extract_strided_slice %42 {offsets = [0, 144], sizes = [32, 16], strides = [1, 1]} : vector<32x192xf32> to vector<32x16xf32>
    %69 = arith.truncf %68 : vector<32x16xf32> to vector<32x16xbf16>
    %cst_31 = arith.constant dense<0.000000e+00> : vector<32x32xf32>
    %70 = tpu.matmul %65, %67, %cst_31 {dimension_numbers = #tpu.dot_dimension_numbers<[1], [1], [0], [0], [0, 0, 1, 0], [], []>} : vector<32x16xbf16>, vector<32x16xbf16>, vector<32x32xf32> -> vector<32x32xf32>
    %cst_32 = arith.constant 2.500000e-01 : f32
    %71 = vector.broadcast %cst_32 : f32 to vector<32x32xf32>
    %72 = arith.mulf %70, %71 : vector<32x32xf32>
    %cst_33 = arith.constant dense<0xFF800000> : vector<32xf32>
    %73 = vector.multi_reduction <maximumf>, %72, %cst_33 [1] : vector<32x32xf32> to vector<32xf32>
    %74 = vector.shape_cast %73 : vector<32xf32> to vector<32x1xf32>
    %75 = vector.broadcast %74 : vector<32x1xf32> to vector<32x32xf32>
    %76 = arith.subf %72, %75 : vector<32x32xf32>
    %77 = math.exp %76 : vector<32x32xf32>
    %cst_34 = arith.constant dense<0.000000e+00> : vector<32xf32>
    %78 = vector.multi_reduction <add>, %77, %cst_34 [1] : vector<32x32xf32> to vector<32xf32>
    %79 = vector.shape_cast %78 : vector<32xf32> to vector<32x1xf32>
    %80 = tpu.reciprocal %79 {approx = true} : vector<32x1xf32> -> vector<32x1xf32>
    %81 = vector.broadcast %80 : vector<32x1xf32> to vector<32x32xf32>
    %82 = arith.mulf %77, %81 : vector<32x32xf32>
    %83 = arith.truncf %82 : vector<32x32xf32> to vector<32x32xbf16>
    %cst_35 = arith.constant dense<0.000000e+00> : vector<32x16xf32>
    %84 = tpu.matmul %83, %69, %cst_35 {dimension_numbers = #tpu.dot_dimension_numbers<[1], [0], [0], [1], [0, 0, 1, 1], [], []>} : vector<32x32xbf16>, vector<32x16xbf16>, vector<32x16xf32> -> vector<32x16xf32>
    %85 = vector.extract_strided_slice %42 {offsets = [0, 32], sizes = [32, 16], strides = [1, 1]} : vector<32x192xf32> to vector<32x16xf32>
    %86 = arith.truncf %85 : vector<32x16xf32> to vector<32x16xbf16>
    %87 = vector.extract_strided_slice %42 {offsets = [0, 96], sizes = [32, 16], strides = [1, 1]} : vector<32x192xf32> to vector<32x16xf32>
    %88 = arith.truncf %87 : vector<32x16xf32> to vector<32x16xbf16>
    %89 = vector.extract_strided_slice %42 {offsets = [0, 160], sizes = [32, 16], strides = [1, 1]} : vector<32x192xf32> to vector<32x16xf32>
    %90 = arith.truncf %89 : vector<32x16xf32> to vector<32x16xbf16>
    %cst_36 = arith.constant dense<0.000000e+00> : vector<32x32xf32>
    %91 = tpu.matmul %86, %88, %cst_36 {dimension_numbers = #tpu.dot_dimension_numbers<[1], [1], [0], [0], [0, 0, 1, 0], [], []>} : vector<32x16xbf16>, vector<32x16xbf16>, vector<32x32xf32> -> vector<32x32xf32>
    %cst_37 = arith.constant 2.500000e-01 : f32
    %92 = vector.broadcast %cst_37 : f32 to vector<32x32xf32>
    %93 = arith.mulf %91, %92 : vector<32x32xf32>
    %cst_38 = arith.constant dense<0xFF800000> : vector<32xf32>
    %94 = vector.multi_reduction <maximumf>, %93, %cst_38 [1] : vector<32x32xf32> to vector<32xf32>
    %95 = vector.shape_cast %94 : vector<32xf32> to vector<32x1xf32>
    %96 = vector.broadcast %95 : vector<32x1xf32> to vector<32x32xf32>
    %97 = arith.subf %93, %96 : vector<32x32xf32>
    %98 = math.exp %97 : vector<32x32xf32>
    %cst_39 = arith.constant dense<0.000000e+00> : vector<32xf32>
    %99 = vector.multi_reduction <add>, %98, %cst_39 [1] : vector<32x32xf32> to vector<32xf32>
    %100 = vector.shape_cast %99 : vector<32xf32> to vector<32x1xf32>
    %101 = tpu.reciprocal %100 {approx = true} : vector<32x1xf32> -> vector<32x1xf32>
    %102 = vector.broadcast %101 : vector<32x1xf32> to vector<32x32xf32>
    %103 = arith.mulf %98, %102 : vector<32x32xf32>
    %104 = arith.truncf %103 : vector<32x32xf32> to vector<32x32xbf16>
    %cst_40 = arith.constant dense<0.000000e+00> : vector<32x16xf32>
    %105 = tpu.matmul %104, %90, %cst_40 {dimension_numbers = #tpu.dot_dimension_numbers<[1], [0], [0], [1], [0, 0, 1, 1], [], []>} : vector<32x32xbf16>, vector<32x16xbf16>, vector<32x16xf32> -> vector<32x16xf32>
    %106 = vector.extract_strided_slice %42 {offsets = [0, 48], sizes = [32, 16], strides = [1, 1]} : vector<32x192xf32> to vector<32x16xf32>
    %107 = arith.truncf %106 : vector<32x16xf32> to vector<32x16xbf16>
    %108 = vector.extract_strided_slice %42 {offsets = [0, 112], sizes = [32, 16], strides = [1, 1]} : vector<32x192xf32> to vector<32x16xf32>
    %109 = arith.truncf %108 : vector<32x16xf32> to vector<32x16xbf16>
    %110 = vector.extract_strided_slice %42 {offsets = [0, 176], sizes = [32, 16], strides = [1, 1]} : vector<32x192xf32> to vector<32x16xf32>
    %111 = arith.truncf %110 : vector<32x16xf32> to vector<32x16xbf16>
    %cst_41 = arith.constant dense<0.000000e+00> : vector<32x32xf32>
    %112 = tpu.matmul %107, %109, %cst_41 {dimension_numbers = #tpu.dot_dimension_numbers<[1], [1], [0], [0], [0, 0, 1, 0], [], []>} : vector<32x16xbf16>, vector<32x16xbf16>, vector<32x32xf32> -> vector<32x32xf32>
    %cst_42 = arith.constant 2.500000e-01 : f32
    %113 = vector.broadcast %cst_42 : f32 to vector<32x32xf32>
    %114 = arith.mulf %112, %113 : vector<32x32xf32>
    %cst_43 = arith.constant dense<0xFF800000> : vector<32xf32>
    %115 = vector.multi_reduction <maximumf>, %114, %cst_43 [1] : vector<32x32xf32> to vector<32xf32>
    %116 = vector.shape_cast %115 : vector<32xf32> to vector<32x1xf32>
    %117 = vector.broadcast %116 : vector<32x1xf32> to vector<32x32xf32>
    %118 = arith.subf %114, %117 : vector<32x32xf32>
    %119 = math.exp %118 : vector<32x32xf32>
    %cst_44 = arith.constant dense<0.000000e+00> : vector<32xf32>
    %120 = vector.multi_reduction <add>, %119, %cst_44 [1] : vector<32x32xf32> to vector<32xf32>
    %121 = vector.shape_cast %120 : vector<32xf32> to vector<32x1xf32>
    %122 = tpu.reciprocal %121 {approx = true} : vector<32x1xf32> -> vector<32x1xf32>
    %123 = vector.broadcast %122 : vector<32x1xf32> to vector<32x32xf32>
    %124 = arith.mulf %119, %123 : vector<32x32xf32>
    %125 = arith.truncf %124 : vector<32x32xf32> to vector<32x32xbf16>
    %cst_45 = arith.constant dense<0.000000e+00> : vector<32x16xf32>
    %126 = tpu.matmul %125, %111, %cst_45 {dimension_numbers = #tpu.dot_dimension_numbers<[1], [0], [0], [1], [0, 0, 1, 1], [], []>} : vector<32x32xbf16>, vector<32x16xbf16>, vector<32x16xf32> -> vector<32x16xf32>
    %127 = tpu.concatenate %63, %84, %105, %126 in 1 : vector<32x16xf32>, vector<32x16xf32>, vector<32x16xf32>, vector<32x16xf32> -> vector<32x64xf32>
    %128 = arith.truncf %127 : vector<32x64xf32> to vector<32x64xbf16>
    %c0_46 = arith.constant 0 : index
    %c0_47 = arith.constant 0 : index
    %c0_48 = arith.constant 0 : index
    %129 = vector.load %arg9[%c0_46, %c0_47, %c0_48] : memref<2x64x64xbf16, #tpu.memory_space<vmem>>, vector<1x64x64xbf16>
    %130 = vector.shape_cast %129 : vector<1x64x64xbf16> to vector<64x64xbf16>
    %cst_49 = arith.constant dense<0.000000e+00> : vector<32x64xf32>
    %131 = tpu.matmul %128, %130, %cst_49 {dimension_numbers = #tpu.dot_dimension_numbers<[1], [0], [0], [1], [0, 0, 1, 1], [], []>} : vector<32x64xbf16>, vector<64x64xbf16>, vector<32x64xf32> -> vector<32x64xf32>
    %132 = arith.addf %8, %131 : vector<32x64xf32>
    %c0_50 = arith.constant 0 : index
    %c0_51 = arith.constant 0 : index
    %c0_52 = arith.constant 0 : index
    %133 = vector.load %arg10[%c0_50, %c0_51, %c0_52] : memref<2x1x64xf32, #tpu.memory_space<vmem>>, vector<1x1x64xf32>
    %134 = vector.shape_cast %133 : vector<1x1x64xf32> to vector<1x64xf32>
    %135 = vector.broadcast %134 : vector<1x64xf32> to vector<32x64xf32>
    %136 = arith.addf %132, %135 : vector<32x64xf32>
    %c0_53 = arith.constant 0 : index
    %c0_54 = arith.constant 0 : index
    %c0_55 = arith.constant 0 : index
    %137 = vector.load %arg11[%c0_53, %c0_54, %c0_55] : memref<2x1x64xf32, #tpu.memory_space<vmem>>, vector<1x1x64xf32>
    %138 = vector.shape_cast %137 : vector<1x1x64xf32> to vector<1x64xf32>
    %c0_56 = arith.constant 0 : index
    %c0_57 = arith.constant 0 : index
    %c0_58 = arith.constant 0 : index
    %139 = vector.load %arg12[%c0_56, %c0_57, %c0_58] : memref<2x1x64xf32, #tpu.memory_space<vmem>>, vector<1x1x64xf32>
    %140 = vector.shape_cast %139 : vector<1x1x64xf32> to vector<1x64xf32>
    %cst_59 = arith.constant dense<0.000000e+00> : vector<32xf32>
    %141 = vector.multi_reduction <add>, %136, %cst_59 [1] : vector<32x64xf32> to vector<32xf32>
    %142 = vector.shape_cast %141 : vector<32xf32> to vector<32x1xf32>
    %cst_60 = arith.constant 6.400000e+01 : f32
    %143 = vector.broadcast %cst_60 : f32 to vector<32x1xf32>
    %144 = arith.divf %142, %143 : vector<32x1xf32>
    %145 = vector.broadcast %144 : vector<32x1xf32> to vector<32x64xf32>
    %146 = arith.subf %136, %145 : vector<32x64xf32>
    %147 = arith.mulf %146, %146 : vector<32x64xf32>
    %cst_61 = arith.constant dense<0.000000e+00> : vector<32xf32>
    %148 = vector.multi_reduction <add>, %147, %cst_61 [1] : vector<32x64xf32> to vector<32xf32>
    %149 = vector.shape_cast %148 : vector<32xf32> to vector<32x1xf32>
    %cst_62 = arith.constant 6.400000e+01 : f32
    %150 = vector.broadcast %cst_62 : f32 to vector<32x1xf32>
    %151 = arith.divf %149, %150 : vector<32x1xf32>
    %152 = vector.broadcast %144 : vector<32x1xf32> to vector<32x64xf32>
    %153 = arith.subf %136, %152 : vector<32x64xf32>
    %cst_63 = arith.constant 9.99999996E-13 : f32
    %154 = vector.broadcast %cst_63 : f32 to vector<32x1xf32>
    %155 = arith.addf %151, %154 : vector<32x1xf32>
    %156 = math.rsqrt %155 : vector<32x1xf32>
    %157 = vector.broadcast %156 : vector<32x1xf32> to vector<32x64xf32>
    %158 = arith.mulf %153, %157 : vector<32x64xf32>
    %159 = vector.broadcast %138 : vector<1x64xf32> to vector<32x64xf32>
    %160 = arith.mulf %158, %159 : vector<32x64xf32>
    %161 = vector.broadcast %140 : vector<1x64xf32> to vector<32x64xf32>
    %162 = arith.addf %160, %161 : vector<32x64xf32>
    %163 = arith.truncf %162 : vector<32x64xf32> to vector<32x64xbf16>
    %c0_64 = arith.constant 0 : index
    %c0_65 = arith.constant 0 : index
    %c0_66 = arith.constant 0 : index
    %164 = vector.load %arg13[%c0_64, %c0_65, %c0_66] : memref<2x64x128xbf16, #tpu.memory_space<vmem>>, vector<1x64x128xbf16>
    %165 = vector.shape_cast %164 : vector<1x64x128xbf16> to vector<64x128xbf16>
    %cst_67 = arith.constant dense<0.000000e+00> : vector<32x128xf32>
    %166 = tpu.matmul %163, %165, %cst_67 {dimension_numbers = #tpu.dot_dimension_numbers<[1], [0], [0], [1], [0, 0, 1, 1], [], []>} : vector<32x64xbf16>, vector<64x128xbf16>, vector<32x128xf32> -> vector<32x128xf32>
    %c0_68 = arith.constant 0 : index
    %c0_69 = arith.constant 0 : index
    %c0_70 = arith.constant 0 : index
    %167 = vector.load %arg14[%c0_68, %c0_69, %c0_70] : memref<2x1x128xf32, #tpu.memory_space<vmem>>, vector<1x1x128xf32>
    %168 = vector.shape_cast %167 : vector<1x1x128xf32> to vector<1x128xf32>
    %169 = vector.broadcast %168 : vector<1x128xf32> to vector<32x128xf32>
    %170 = arith.addf %166, %169 : vector<32x128xf32>
    %171 = arith.mulf %170, %170 : vector<32x128xf32>
    %172 = arith.mulf %170, %171 : vector<32x128xf32>
    %cst_71 = arith.constant 4.471500e-02 : f32
    %173 = vector.broadcast %cst_71 : f32 to vector<32x128xf32>
    %174 = arith.mulf %173, %172 : vector<32x128xf32>
    %175 = arith.addf %170, %174 : vector<32x128xf32>
    %cst_72 = arith.constant 0.797884583 : f32
    %176 = vector.broadcast %cst_72 : f32 to vector<32x128xf32>
    %177 = arith.mulf %176, %175 : vector<32x128xf32>
    %178 = math.tanh %177 : vector<32x128xf32>
    %cst_73 = arith.constant 1.000000e+00 : f32
    %179 = vector.broadcast %cst_73 : f32 to vector<32x128xf32>
    %180 = arith.addf %179, %178 : vector<32x128xf32>
    %cst_74 = arith.constant 5.000000e-01 : f32
    %181 = vector.broadcast %cst_74 : f32 to vector<32x128xf32>
    %182 = arith.mulf %181, %180 : vector<32x128xf32>
    %183 = arith.mulf %170, %182 : vector<32x128xf32>
    %184 = arith.truncf %183 : vector<32x128xf32> to vector<32x128xbf16>
    %c0_75 = arith.constant 0 : index
    %c0_76 = arith.constant 0 : index
    %c0_77 = arith.constant 0 : index
    %185 = vector.load %arg15[%c0_75, %c0_76, %c0_77] : memref<2x128x64xbf16, #tpu.memory_space<vmem>>, vector<1x128x64xbf16>
    %186 = vector.shape_cast %185 : vector<1x128x64xbf16> to vector<128x64xbf16>
    %cst_78 = arith.constant dense<0.000000e+00> : vector<32x64xf32>
    %187 = tpu.matmul %184, %186, %cst_78 {dimension_numbers = #tpu.dot_dimension_numbers<[1], [0], [0], [1], [0, 0, 1, 1], [], []>} : vector<32x128xbf16>, vector<128x64xbf16>, vector<32x64xf32> -> vector<32x64xf32>
    %188 = arith.addf %136, %187 : vector<32x64xf32>
    %c0_79 = arith.constant 0 : index
    %c0_80 = arith.constant 0 : index
    %c0_81 = arith.constant 0 : index
    %189 = vector.load %arg16[%c0_79, %c0_80, %c0_81] : memref<2x1x64xf32, #tpu.memory_space<vmem>>, vector<1x1x64xf32>
    %190 = vector.shape_cast %189 : vector<1x1x64xf32> to vector<1x64xf32>
    %191 = vector.broadcast %190 : vector<1x64xf32> to vector<32x64xf32>
    %192 = arith.addf %188, %191 : vector<32x64xf32>
    %c1 = arith.constant 1 : index
    %c0_82 = arith.constant 0 : index
    %c0_83 = arith.constant 0 : index
    %193 = vector.load %arg5[%c1, %c0_82, %c0_83] : memref<2x1x64xf32, #tpu.memory_space<vmem>>, vector<1x1x64xf32>
    %194 = vector.shape_cast %193 : vector<1x1x64xf32> to vector<1x64xf32>
    %c1_84 = arith.constant 1 : index
    %c0_85 = arith.constant 0 : index
    %c0_86 = arith.constant 0 : index
    %195 = vector.load %arg6[%c1_84, %c0_85, %c0_86] : memref<2x1x64xf32, #tpu.memory_space<vmem>>, vector<1x1x64xf32>
    %196 = vector.shape_cast %195 : vector<1x1x64xf32> to vector<1x64xf32>
    %cst_87 = arith.constant dense<0.000000e+00> : vector<32xf32>
    %197 = vector.multi_reduction <add>, %192, %cst_87 [1] : vector<32x64xf32> to vector<32xf32>
    %198 = vector.shape_cast %197 : vector<32xf32> to vector<32x1xf32>
    %cst_88 = arith.constant 6.400000e+01 : f32
    %199 = vector.broadcast %cst_88 : f32 to vector<32x1xf32>
    %200 = arith.divf %198, %199 : vector<32x1xf32>
    %201 = vector.broadcast %200 : vector<32x1xf32> to vector<32x64xf32>
    %202 = arith.subf %192, %201 : vector<32x64xf32>
    %203 = arith.mulf %202, %202 : vector<32x64xf32>
    %cst_89 = arith.constant dense<0.000000e+00> : vector<32xf32>
    %204 = vector.multi_reduction <add>, %203, %cst_89 [1] : vector<32x64xf32> to vector<32xf32>
    %205 = vector.shape_cast %204 : vector<32xf32> to vector<32x1xf32>
    %cst_90 = arith.constant 6.400000e+01 : f32
    %206 = vector.broadcast %cst_90 : f32 to vector<32x1xf32>
    %207 = arith.divf %205, %206 : vector<32x1xf32>
    %208 = vector.broadcast %200 : vector<32x1xf32> to vector<32x64xf32>
    %209 = arith.subf %192, %208 : vector<32x64xf32>
    %cst_91 = arith.constant 9.99999996E-13 : f32
    %210 = vector.broadcast %cst_91 : f32 to vector<32x1xf32>
    %211 = arith.addf %207, %210 : vector<32x1xf32>
    %212 = math.rsqrt %211 : vector<32x1xf32>
    %213 = vector.broadcast %212 : vector<32x1xf32> to vector<32x64xf32>
    %214 = arith.mulf %209, %213 : vector<32x64xf32>
    %215 = vector.broadcast %194 : vector<1x64xf32> to vector<32x64xf32>
    %216 = arith.mulf %214, %215 : vector<32x64xf32>
    %217 = vector.broadcast %196 : vector<1x64xf32> to vector<32x64xf32>
    %218 = arith.addf %216, %217 : vector<32x64xf32>
    %219 = arith.truncf %218 : vector<32x64xf32> to vector<32x64xbf16>
    %c1_92 = arith.constant 1 : index
    %c0_93 = arith.constant 0 : index
    %c0_94 = arith.constant 0 : index
    %220 = vector.load %arg7[%c1_92, %c0_93, %c0_94] : memref<2x64x192xbf16, #tpu.memory_space<vmem>>, vector<1x64x192xbf16>
    %221 = vector.shape_cast %220 : vector<1x64x192xbf16> to vector<64x192xbf16>
    %cst_95 = arith.constant dense<0.000000e+00> : vector<32x192xf32>
    %222 = tpu.matmul %219, %221, %cst_95 {dimension_numbers = #tpu.dot_dimension_numbers<[1], [0], [0], [1], [0, 0, 1, 1], [], []>} : vector<32x64xbf16>, vector<64x192xbf16>, vector<32x192xf32> -> vector<32x192xf32>
    %c1_96 = arith.constant 1 : index
    %c0_97 = arith.constant 0 : index
    %c0_98 = arith.constant 0 : index
    %223 = vector.load %arg8[%c1_96, %c0_97, %c0_98] : memref<2x1x192xf32, #tpu.memory_space<vmem>>, vector<1x1x192xf32>
    %224 = vector.shape_cast %223 : vector<1x1x192xf32> to vector<1x192xf32>
    %225 = vector.broadcast %224 : vector<1x192xf32> to vector<32x192xf32>
    %226 = arith.addf %222, %225 : vector<32x192xf32>
    %227 = vector.extract_strided_slice %226 {offsets = [0, 0], sizes = [32, 16], strides = [1, 1]} : vector<32x192xf32> to vector<32x16xf32>
    %228 = arith.truncf %227 : vector<32x16xf32> to vector<32x16xbf16>
    %229 = vector.extract_strided_slice %226 {offsets = [0, 64], sizes = [32, 16], strides = [1, 1]} : vector<32x192xf32> to vector<32x16xf32>
    %230 = arith.truncf %229 : vector<32x16xf32> to vector<32x16xbf16>
    %231 = vector.extract_strided_slice %226 {offsets = [0, 128], sizes = [32, 16], strides = [1, 1]} : vector<32x192xf32> to vector<32x16xf32>
    %232 = arith.truncf %231 : vector<32x16xf32> to vector<32x16xbf16>
    %cst_99 = arith.constant dense<0.000000e+00> : vector<32x32xf32>
    %233 = tpu.matmul %228, %230, %cst_99 {dimension_numbers = #tpu.dot_dimension_numbers<[1], [1], [0], [0], [0, 0, 1, 0], [], []>} : vector<32x16xbf16>, vector<32x16xbf16>, vector<32x32xf32> -> vector<32x32xf32>
    %cst_100 = arith.constant 2.500000e-01 : f32
    %234 = vector.broadcast %cst_100 : f32 to vector<32x32xf32>
    %235 = arith.mulf %233, %234 : vector<32x32xf32>
    %cst_101 = arith.constant dense<0xFF800000> : vector<32xf32>
    %236 = vector.multi_reduction <maximumf>, %235, %cst_101 [1] : vector<32x32xf32> to vector<32xf32>
    %237 = vector.shape_cast %236 : vector<32xf32> to vector<32x1xf32>
    %238 = vector.broadcast %237 : vector<32x1xf32> to vector<32x32xf32>
    %239 = arith.subf %235, %238 : vector<32x32xf32>
    %240 = math.exp %239 : vector<32x32xf32>
    %cst_102 = arith.constant dense<0.000000e+00> : vector<32xf32>
    %241 = vector.multi_reduction <add>, %240, %cst_102 [1] : vector<32x32xf32> to vector<32xf32>
    %242 = vector.shape_cast %241 : vector<32xf32> to vector<32x1xf32>
    %243 = tpu.reciprocal %242 {approx = true} : vector<32x1xf32> -> vector<32x1xf32>
    %244 = vector.broadcast %243 : vector<32x1xf32> to vector<32x32xf32>
    %245 = arith.mulf %240, %244 : vector<32x32xf32>
    %246 = arith.truncf %245 : vector<32x32xf32> to vector<32x32xbf16>
    %cst_103 = arith.constant dense<0.000000e+00> : vector<32x16xf32>
    %247 = tpu.matmul %246, %232, %cst_103 {dimension_numbers = #tpu.dot_dimension_numbers<[1], [0], [0], [1], [0, 0, 1, 1], [], []>} : vector<32x32xbf16>, vector<32x16xbf16>, vector<32x16xf32> -> vector<32x16xf32>
    %248 = vector.extract_strided_slice %226 {offsets = [0, 16], sizes = [32, 16], strides = [1, 1]} : vector<32x192xf32> to vector<32x16xf32>
    %249 = arith.truncf %248 : vector<32x16xf32> to vector<32x16xbf16>
    %250 = vector.extract_strided_slice %226 {offsets = [0, 80], sizes = [32, 16], strides = [1, 1]} : vector<32x192xf32> to vector<32x16xf32>
    %251 = arith.truncf %250 : vector<32x16xf32> to vector<32x16xbf16>
    %252 = vector.extract_strided_slice %226 {offsets = [0, 144], sizes = [32, 16], strides = [1, 1]} : vector<32x192xf32> to vector<32x16xf32>
    %253 = arith.truncf %252 : vector<32x16xf32> to vector<32x16xbf16>
    %cst_104 = arith.constant dense<0.000000e+00> : vector<32x32xf32>
    %254 = tpu.matmul %249, %251, %cst_104 {dimension_numbers = #tpu.dot_dimension_numbers<[1], [1], [0], [0], [0, 0, 1, 0], [], []>} : vector<32x16xbf16>, vector<32x16xbf16>, vector<32x32xf32> -> vector<32x32xf32>
    %cst_105 = arith.constant 2.500000e-01 : f32
    %255 = vector.broadcast %cst_105 : f32 to vector<32x32xf32>
    %256 = arith.mulf %254, %255 : vector<32x32xf32>
    %cst_106 = arith.constant dense<0xFF800000> : vector<32xf32>
    %257 = vector.multi_reduction <maximumf>, %256, %cst_106 [1] : vector<32x32xf32> to vector<32xf32>
    %258 = vector.shape_cast %257 : vector<32xf32> to vector<32x1xf32>
    %259 = vector.broadcast %258 : vector<32x1xf32> to vector<32x32xf32>
    %260 = arith.subf %256, %259 : vector<32x32xf32>
    %261 = math.exp %260 : vector<32x32xf32>
    %cst_107 = arith.constant dense<0.000000e+00> : vector<32xf32>
    %262 = vector.multi_reduction <add>, %261, %cst_107 [1] : vector<32x32xf32> to vector<32xf32>
    %263 = vector.shape_cast %262 : vector<32xf32> to vector<32x1xf32>
    %264 = tpu.reciprocal %263 {approx = true} : vector<32x1xf32> -> vector<32x1xf32>
    %265 = vector.broadcast %264 : vector<32x1xf32> to vector<32x32xf32>
    %266 = arith.mulf %261, %265 : vector<32x32xf32>
    %267 = arith.truncf %266 : vector<32x32xf32> to vector<32x32xbf16>
    %cst_108 = arith.constant dense<0.000000e+00> : vector<32x16xf32>
    %268 = tpu.matmul %267, %253, %cst_108 {dimension_numbers = #tpu.dot_dimension_numbers<[1], [0], [0], [1], [0, 0, 1, 1], [], []>} : vector<32x32xbf16>, vector<32x16xbf16>, vector<32x16xf32> -> vector<32x16xf32>
    %269 = vector.extract_strided_slice %226 {offsets = [0, 32], sizes = [32, 16], strides = [1, 1]} : vector<32x192xf32> to vector<32x16xf32>
    %270 = arith.truncf %269 : vector<32x16xf32> to vector<32x16xbf16>
    %271 = vector.extract_strided_slice %226 {offsets = [0, 96], sizes = [32, 16], strides = [1, 1]} : vector<32x192xf32> to vector<32x16xf32>
    %272 = arith.truncf %271 : vector<32x16xf32> to vector<32x16xbf16>
    %273 = vector.extract_strided_slice %226 {offsets = [0, 160], sizes = [32, 16], strides = [1, 1]} : vector<32x192xf32> to vector<32x16xf32>
    %274 = arith.truncf %273 : vector<32x16xf32> to vector<32x16xbf16>
    %cst_109 = arith.constant dense<0.000000e+00> : vector<32x32xf32>
    %275 = tpu.matmul %270, %272, %cst_109 {dimension_numbers = #tpu.dot_dimension_numbers<[1], [1], [0], [0], [0, 0, 1, 0], [], []>} : vector<32x16xbf16>, vector<32x16xbf16>, vector<32x32xf32> -> vector<32x32xf32>
    %cst_110 = arith.constant 2.500000e-01 : f32
    %276 = vector.broadcast %cst_110 : f32 to vector<32x32xf32>
    %277 = arith.mulf %275, %276 : vector<32x32xf32>
    %cst_111 = arith.constant dense<0xFF800000> : vector<32xf32>
    %278 = vector.multi_reduction <maximumf>, %277, %cst_111 [1] : vector<32x32xf32> to vector<32xf32>
    %279 = vector.shape_cast %278 : vector<32xf32> to vector<32x1xf32>
    %280 = vector.broadcast %279 : vector<32x1xf32> to vector<32x32xf32>
    %281 = arith.subf %277, %280 : vector<32x32xf32>
    %282 = math.exp %281 : vector<32x32xf32>
    %cst_112 = arith.constant dense<0.000000e+00> : vector<32xf32>
    %283 = vector.multi_reduction <add>, %282, %cst_112 [1] : vector<32x32xf32> to vector<32xf32>
    %284 = vector.shape_cast %283 : vector<32xf32> to vector<32x1xf32>
    %285 = tpu.reciprocal %284 {approx = true} : vector<32x1xf32> -> vector<32x1xf32>
    %286 = vector.broadcast %285 : vector<32x1xf32> to vector<32x32xf32>
    %287 = arith.mulf %282, %286 : vector<32x32xf32>
    %288 = arith.truncf %287 : vector<32x32xf32> to vector<32x32xbf16>
    %cst_113 = arith.constant dense<0.000000e+00> : vector<32x16xf32>
    %289 = tpu.matmul %288, %274, %cst_113 {dimension_numbers = #tpu.dot_dimension_numbers<[1], [0], [0], [1], [0, 0, 1, 1], [], []>} : vector<32x32xbf16>, vector<32x16xbf16>, vector<32x16xf32> -> vector<32x16xf32>
    %290 = vector.extract_strided_slice %226 {offsets = [0, 48], sizes = [32, 16], strides = [1, 1]} : vector<32x192xf32> to vector<32x16xf32>
    %291 = arith.truncf %290 : vector<32x16xf32> to vector<32x16xbf16>
    %292 = vector.extract_strided_slice %226 {offsets = [0, 112], sizes = [32, 16], strides = [1, 1]} : vector<32x192xf32> to vector<32x16xf32>
    %293 = arith.truncf %292 : vector<32x16xf32> to vector<32x16xbf16>
    %294 = vector.extract_strided_slice %226 {offsets = [0, 176], sizes = [32, 16], strides = [1, 1]} : vector<32x192xf32> to vector<32x16xf32>
    %295 = arith.truncf %294 : vector<32x16xf32> to vector<32x16xbf16>
    %cst_114 = arith.constant dense<0.000000e+00> : vector<32x32xf32>
    %296 = tpu.matmul %291, %293, %cst_114 {dimension_numbers = #tpu.dot_dimension_numbers<[1], [1], [0], [0], [0, 0, 1, 0], [], []>} : vector<32x16xbf16>, vector<32x16xbf16>, vector<32x32xf32> -> vector<32x32xf32>
    %cst_115 = arith.constant 2.500000e-01 : f32
    %297 = vector.broadcast %cst_115 : f32 to vector<32x32xf32>
    %298 = arith.mulf %296, %297 : vector<32x32xf32>
    %cst_116 = arith.constant dense<0xFF800000> : vector<32xf32>
    %299 = vector.multi_reduction <maximumf>, %298, %cst_116 [1] : vector<32x32xf32> to vector<32xf32>
    %300 = vector.shape_cast %299 : vector<32xf32> to vector<32x1xf32>
    %301 = vector.broadcast %300 : vector<32x1xf32> to vector<32x32xf32>
    %302 = arith.subf %298, %301 : vector<32x32xf32>
    %303 = math.exp %302 : vector<32x32xf32>
    %cst_117 = arith.constant dense<0.000000e+00> : vector<32xf32>
    %304 = vector.multi_reduction <add>, %303, %cst_117 [1] : vector<32x32xf32> to vector<32xf32>
    %305 = vector.shape_cast %304 : vector<32xf32> to vector<32x1xf32>
    %306 = tpu.reciprocal %305 {approx = true} : vector<32x1xf32> -> vector<32x1xf32>
    %307 = vector.broadcast %306 : vector<32x1xf32> to vector<32x32xf32>
    %308 = arith.mulf %303, %307 : vector<32x32xf32>
    %309 = arith.truncf %308 : vector<32x32xf32> to vector<32x32xbf16>
    %cst_118 = arith.constant dense<0.000000e+00> : vector<32x16xf32>
    %310 = tpu.matmul %309, %295, %cst_118 {dimension_numbers = #tpu.dot_dimension_numbers<[1], [0], [0], [1], [0, 0, 1, 1], [], []>} : vector<32x32xbf16>, vector<32x16xbf16>, vector<32x16xf32> -> vector<32x16xf32>
    %311 = tpu.concatenate %247, %268, %289, %310 in 1 : vector<32x16xf32>, vector<32x16xf32>, vector<32x16xf32>, vector<32x16xf32> -> vector<32x64xf32>
    %312 = arith.truncf %311 : vector<32x64xf32> to vector<32x64xbf16>
    %c1_119 = arith.constant 1 : index
    %c0_120 = arith.constant 0 : index
    %c0_121 = arith.constant 0 : index
    %313 = vector.load %arg9[%c1_119, %c0_120, %c0_121] : memref<2x64x64xbf16, #tpu.memory_space<vmem>>, vector<1x64x64xbf16>
    %314 = vector.shape_cast %313 : vector<1x64x64xbf16> to vector<64x64xbf16>
    %cst_122 = arith.constant dense<0.000000e+00> : vector<32x64xf32>
    %315 = tpu.matmul %312, %314, %cst_122 {dimension_numbers = #tpu.dot_dimension_numbers<[1], [0], [0], [1], [0, 0, 1, 1], [], []>} : vector<32x64xbf16>, vector<64x64xbf16>, vector<32x64xf32> -> vector<32x64xf32>
    %316 = arith.addf %192, %315 : vector<32x64xf32>
    %c1_123 = arith.constant 1 : index
    %c0_124 = arith.constant 0 : index
    %c0_125 = arith.constant 0 : index
    %317 = vector.load %arg10[%c1_123, %c0_124, %c0_125] : memref<2x1x64xf32, #tpu.memory_space<vmem>>, vector<1x1x64xf32>
    %318 = vector.shape_cast %317 : vector<1x1x64xf32> to vector<1x64xf32>
    %319 = vector.broadcast %318 : vector<1x64xf32> to vector<32x64xf32>
    %320 = arith.addf %316, %319 : vector<32x64xf32>
    %c1_126 = arith.constant 1 : index
    %c0_127 = arith.constant 0 : index
    %c0_128 = arith.constant 0 : index
    %321 = vector.load %arg11[%c1_126, %c0_127, %c0_128] : memref<2x1x64xf32, #tpu.memory_space<vmem>>, vector<1x1x64xf32>
    %322 = vector.shape_cast %321 : vector<1x1x64xf32> to vector<1x64xf32>
    %c1_129 = arith.constant 1 : index
    %c0_130 = arith.constant 0 : index
    %c0_131 = arith.constant 0 : index
    %323 = vector.load %arg12[%c1_129, %c0_130, %c0_131] : memref<2x1x64xf32, #tpu.memory_space<vmem>>, vector<1x1x64xf32>
    %324 = vector.shape_cast %323 : vector<1x1x64xf32> to vector<1x64xf32>
    %cst_132 = arith.constant dense<0.000000e+00> : vector<32xf32>
    %325 = vector.multi_reduction <add>, %320, %cst_132 [1] : vector<32x64xf32> to vector<32xf32>
    %326 = vector.shape_cast %325 : vector<32xf32> to vector<32x1xf32>
    %cst_133 = arith.constant 6.400000e+01 : f32
    %327 = vector.broadcast %cst_133 : f32 to vector<32x1xf32>
    %328 = arith.divf %326, %327 : vector<32x1xf32>
    %329 = vector.broadcast %328 : vector<32x1xf32> to vector<32x64xf32>
    %330 = arith.subf %320, %329 : vector<32x64xf32>
    %331 = arith.mulf %330, %330 : vector<32x64xf32>
    %cst_134 = arith.constant dense<0.000000e+00> : vector<32xf32>
    %332 = vector.multi_reduction <add>, %331, %cst_134 [1] : vector<32x64xf32> to vector<32xf32>
    %333 = vector.shape_cast %332 : vector<32xf32> to vector<32x1xf32>
    %cst_135 = arith.constant 6.400000e+01 : f32
    %334 = vector.broadcast %cst_135 : f32 to vector<32x1xf32>
    %335 = arith.divf %333, %334 : vector<32x1xf32>
    %336 = vector.broadcast %328 : vector<32x1xf32> to vector<32x64xf32>
    %337 = arith.subf %320, %336 : vector<32x64xf32>
    %cst_136 = arith.constant 9.99999996E-13 : f32
    %338 = vector.broadcast %cst_136 : f32 to vector<32x1xf32>
    %339 = arith.addf %335, %338 : vector<32x1xf32>
    %340 = math.rsqrt %339 : vector<32x1xf32>
    %341 = vector.broadcast %340 : vector<32x1xf32> to vector<32x64xf32>
    %342 = arith.mulf %337, %341 : vector<32x64xf32>
    %343 = vector.broadcast %322 : vector<1x64xf32> to vector<32x64xf32>
    %344 = arith.mulf %342, %343 : vector<32x64xf32>
    %345 = vector.broadcast %324 : vector<1x64xf32> to vector<32x64xf32>
    %346 = arith.addf %344, %345 : vector<32x64xf32>
    %347 = arith.truncf %346 : vector<32x64xf32> to vector<32x64xbf16>
    %c1_137 = arith.constant 1 : index
    %c0_138 = arith.constant 0 : index
    %c0_139 = arith.constant 0 : index
    %348 = vector.load %arg13[%c1_137, %c0_138, %c0_139] : memref<2x64x128xbf16, #tpu.memory_space<vmem>>, vector<1x64x128xbf16>
    %349 = vector.shape_cast %348 : vector<1x64x128xbf16> to vector<64x128xbf16>
    %cst_140 = arith.constant dense<0.000000e+00> : vector<32x128xf32>
    %350 = tpu.matmul %347, %349, %cst_140 {dimension_numbers = #tpu.dot_dimension_numbers<[1], [0], [0], [1], [0, 0, 1, 1], [], []>} : vector<32x64xbf16>, vector<64x128xbf16>, vector<32x128xf32> -> vector<32x128xf32>
    %c1_141 = arith.constant 1 : index
    %c0_142 = arith.constant 0 : index
    %c0_143 = arith.constant 0 : index
    %351 = vector.load %arg14[%c1_141, %c0_142, %c0_143] : memref<2x1x128xf32, #tpu.memory_space<vmem>>, vector<1x1x128xf32>
    %352 = vector.shape_cast %351 : vector<1x1x128xf32> to vector<1x128xf32>
    %353 = vector.broadcast %352 : vector<1x128xf32> to vector<32x128xf32>
    %354 = arith.addf %350, %353 : vector<32x128xf32>
    %355 = arith.mulf %354, %354 : vector<32x128xf32>
    %356 = arith.mulf %354, %355 : vector<32x128xf32>
    %cst_144 = arith.constant 4.471500e-02 : f32
    %357 = vector.broadcast %cst_144 : f32 to vector<32x128xf32>
    %358 = arith.mulf %357, %356 : vector<32x128xf32>
    %359 = arith.addf %354, %358 : vector<32x128xf32>
    %cst_145 = arith.constant 0.797884583 : f32
    %360 = vector.broadcast %cst_145 : f32 to vector<32x128xf32>
    %361 = arith.mulf %360, %359 : vector<32x128xf32>
    %362 = math.tanh %361 : vector<32x128xf32>
    %cst_146 = arith.constant 1.000000e+00 : f32
    %363 = vector.broadcast %cst_146 : f32 to vector<32x128xf32>
    %364 = arith.addf %363, %362 : vector<32x128xf32>
    %cst_147 = arith.constant 5.000000e-01 : f32
    %365 = vector.broadcast %cst_147 : f32 to vector<32x128xf32>
    %366 = arith.mulf %365, %364 : vector<32x128xf32>
    %367 = arith.mulf %354, %366 : vector<32x128xf32>
    %368 = arith.truncf %367 : vector<32x128xf32> to vector<32x128xbf16>
    %c1_148 = arith.constant 1 : index
    %c0_149 = arith.constant 0 : index
    %c0_150 = arith.constant 0 : index
    %369 = vector.load %arg15[%c1_148, %c0_149, %c0_150] : memref<2x128x64xbf16, #tpu.memory_space<vmem>>, vector<1x128x64xbf16>
    %370 = vector.shape_cast %369 : vector<1x128x64xbf16> to vector<128x64xbf16>
    %cst_151 = arith.constant dense<0.000000e+00> : vector<32x64xf32>
    %371 = tpu.matmul %368, %370, %cst_151 {dimension_numbers = #tpu.dot_dimension_numbers<[1], [0], [0], [1], [0, 0, 1, 1], [], []>} : vector<32x128xbf16>, vector<128x64xbf16>, vector<32x64xf32> -> vector<32x64xf32>
    %372 = arith.addf %320, %371 : vector<32x64xf32>
    %c1_152 = arith.constant 1 : index
    %c0_153 = arith.constant 0 : index
    %c0_154 = arith.constant 0 : index
    %373 = vector.load %arg16[%c1_152, %c0_153, %c0_154] : memref<2x1x64xf32, #tpu.memory_space<vmem>>, vector<1x1x64xf32>
    %374 = vector.shape_cast %373 : vector<1x1x64xf32> to vector<1x64xf32>
    %375 = vector.broadcast %374 : vector<1x64xf32> to vector<32x64xf32>
    %376 = arith.addf %372, %375 : vector<32x64xf32>
    %cst_155 = arith.constant dense<0.000000e+00> : vector<64xf32>
    %377 = vector.multi_reduction <add>, %376, %cst_155 [0] : vector<32x64xf32> to vector<64xf32>
    %378 = vector.shape_cast %377 : vector<64xf32> to vector<1x64xf32>
    %cst_156 = arith.constant 3.200000e+01 : f32
    %379 = vector.broadcast %cst_156 : f32 to vector<1x64xf32>
    %380 = arith.divf %378, %379 : vector<1x64xf32>
    %c0_157 = arith.constant 0 : index
    %c0_158 = arith.constant 0 : index
    %381 = vector.load %arg17[%c0_157, %c0_158] : memref<1x64xf32, #tpu.memory_space<vmem>>, vector<1x64xf32>
    %c0_159 = arith.constant 0 : index
    %c0_160 = arith.constant 0 : index
    %382 = vector.load %arg18[%c0_159, %c0_160] : memref<1x64xf32, #tpu.memory_space<vmem>>, vector<1x64xf32>
    %cst_161 = arith.constant dense<0.000000e+00> : vector<1xf32>
    %383 = vector.multi_reduction <add>, %380, %cst_161 [1] : vector<1x64xf32> to vector<1xf32>
    %384 = vector.shape_cast %383 : vector<1xf32> to vector<1x1xf32>
    %cst_162 = arith.constant 6.400000e+01 : f32
    %385 = vector.broadcast %cst_162 : f32 to vector<1x1xf32>
    %386 = arith.divf %384, %385 : vector<1x1xf32>
    %387 = vector.broadcast %386 : vector<1x1xf32> to vector<1x64xf32>
    %388 = arith.subf %380, %387 : vector<1x64xf32>
    %389 = arith.mulf %388, %388 : vector<1x64xf32>
    %cst_163 = arith.constant dense<0.000000e+00> : vector<1xf32>
    %390 = vector.multi_reduction <add>, %389, %cst_163 [1] : vector<1x64xf32> to vector<1xf32>
    %391 = vector.shape_cast %390 : vector<1xf32> to vector<1x1xf32>
    %cst_164 = arith.constant 6.400000e+01 : f32
    %392 = vector.broadcast %cst_164 : f32 to vector<1x1xf32>
    %393 = arith.divf %391, %392 : vector<1x1xf32>
    %394 = vector.broadcast %386 : vector<1x1xf32> to vector<1x64xf32>
    %395 = arith.subf %380, %394 : vector<1x64xf32>
    %cst_165 = arith.constant 9.99999996E-13 : f32
    %396 = vector.broadcast %cst_165 : f32 to vector<1x1xf32>
    %397 = arith.addf %393, %396 : vector<1x1xf32>
    %398 = math.rsqrt %397 : vector<1x1xf32>
    %399 = vector.broadcast %398 : vector<1x1xf32> to vector<1x64xf32>
    %400 = arith.mulf %395, %399 : vector<1x64xf32>
    %401 = arith.mulf %400, %381 : vector<1x64xf32>
    %402 = arith.addf %401, %382 : vector<1x64xf32>
    %403 = arith.truncf %402 : vector<1x64xf32> to vector<1x64xbf16>
    %c0_166 = arith.constant 0 : index
    %c0_167 = arith.constant 0 : index
    %404 = vector.load %arg19[%c0_166, %c0_167] : memref<64x128xbf16, #tpu.memory_space<vmem>>, vector<64x128xbf16>
    %cst_168 = arith.constant dense<0.000000e+00> : vector<1x128xf32>
    %405 = tpu.matmul %403, %404, %cst_168 {dimension_numbers = #tpu.dot_dimension_numbers<[1], [0], [0], [1], [0, 0, 1, 1], [], []>} : vector<1x64xbf16>, vector<64x128xbf16>, vector<1x128xf32> -> vector<1x128xf32>
    %c0_169 = arith.constant 0 : index
    %c0_170 = arith.constant 0 : index
    %406 = vector.load %arg20[%c0_169, %c0_170] : memref<1x128xf32, #tpu.memory_space<vmem>>, vector<1x128xf32>
    %407 = arith.addf %405, %406 : vector<1x128xf32>
    %c0_171 = arith.constant 0 : index
    %c0_172 = arith.constant 0 : index
    %c0_173 = arith.constant 0 : index
    %408 = vector.load %arg21[%c0_171, %c0_172, %c0_173] : memref<1x1x128xf32, #tpu.memory_space<vmem>>, vector<1x1x128xf32>
    %409 = vector.shape_cast %408 : vector<1x1x128xf32> to vector<1x128xf32>
    %410 = vector.shape_cast %407 : vector<1x128xf32> to vector<1x1x128xf32>
    tpu.vector_store %arg21[%c0_171, %c0_172, %c0_173], %410 {strides = array<i32>} : memref<1x1x128xf32, #tpu.memory_space<vmem>>, vector<1x1x128xf32>,
    return
  }
  func.func @transform_0(%arg0: i32) -> (i32, i32, i32) {
    %c0_i32 = arith.constant 0 : i32
    %c0_i32_0 = arith.constant 0 : i32
    %c0_i32_1 = arith.constant 0 : i32
    return %arg0, %c0_i32, %c0_i32_0 : i32, i32, i32
  }
  func.func @transform_1(%arg0: i32) -> (i32, i32) {
    %c0_i32 = arith.constant 0 : i32
    %c0_i32_0 = arith.constant 0 : i32
    %c0_i32_1 = arith.constant 0 : i32
    return %c0_i32, %c0_i32_0 : i32, i32
  }
  func.func @transform_2(%arg0: i32) -> (i32, i32) {
    %c0_i32 = arith.constant 0 : i32
    %c0_i32_0 = arith.constant 0 : i32
    %c0_i32_1 = arith.constant 0 : i32
    return %c0_i32, %c0_i32_0 : i32, i32
  }
  func.func @transform_3(%arg0: i32) -> (i32, i32) {
    %c0_i32 = arith.constant 0 : i32
    %c0_i32_0 = arith.constant 0 : i32
    %c0_i32_1 = arith.constant 0 : i32
    return %c0_i32, %c0_i32_0 : i32, i32
  }
  func.func @transform_4(%arg0: i32) -> (i32, i32, i32) {
    %c0_i32 = arith.constant 0 : i32
    %c0_i32_0 = arith.constant 0 : i32
    %c0_i32_1 = arith.constant 0 : i32
    %c0_i32_2 = arith.constant 0 : i32
    return %c0_i32, %c0_i32_0, %c0_i32_1 : i32, i32, i32
  }
  func.func @transform_5(%arg0: i32) -> (i32, i32, i32) {
    %c0_i32 = arith.constant 0 : i32
    %c0_i32_0 = arith.constant 0 : i32
    %c0_i32_1 = arith.constant 0 : i32
    %c0_i32_2 = arith.constant 0 : i32
    return %c0_i32, %c0_i32_0, %c0_i32_1 : i32, i32, i32
  }
  func.func @transform_6(%arg0: i32) -> (i32, i32, i32) {
    %c0_i32 = arith.constant 0 : i32
    %c0_i32_0 = arith.constant 0 : i32
    %c0_i32_1 = arith.constant 0 : i32
    %c0_i32_2 = arith.constant 0 : i32
    return %c0_i32, %c0_i32_0, %c0_i32_1 : i32, i32, i32
  }
  func.func @transform_7(%arg0: i32) -> (i32, i32, i32) {
    %c0_i32 = arith.constant 0 : i32
    %c0_i32_0 = arith.constant 0 : i32
    %c0_i32_1 = arith.constant 0 : i32
    %c0_i32_2 = arith.constant 0 : i32
    return %c0_i32, %c0_i32_0, %c0_i32_1 : i32, i32, i32
  }
  func.func @transform_8(%arg0: i32) -> (i32, i32, i32) {
    %c0_i32 = arith.constant 0 : i32
    %c0_i32_0 = arith.constant 0 : i32
    %c0_i32_1 = arith.constant 0 : i32
    %c0_i32_2 = arith.constant 0 : i32
    return %c0_i32, %c0_i32_0, %c0_i32_1 : i32, i32, i32
  }
  func.func @transform_9(%arg0: i32) -> (i32, i32, i32) {
    %c0_i32 = arith.constant 0 : i32
    %c0_i32_0 = arith.constant 0 : i32
    %c0_i32_1 = arith.constant 0 : i32
    %c0_i32_2 = arith.constant 0 : i32
    return %c0_i32, %c0_i32_0, %c0_i32_1 : i32, i32, i32
  }
  func.func @transform_10(%arg0: i32) -> (i32, i32, i32) {
    %c0_i32 = arith.constant 0 : i32
    %c0_i32_0 = arith.constant 0 : i32
    %c0_i32_1 = arith.constant 0 : i32
    %c0_i32_2 = arith.constant 0 : i32
    return %c0_i32, %c0_i32_0, %c0_i32_1 : i32, i32, i32
  }
  func.func @transform_11(%arg0: i32) -> (i32, i32, i32) {
    %c0_i32 = arith.constant 0 : i32
    %c0_i32_0 = arith.constant 0 : i32
    %c0_i32_1 = arith.constant 0 : i32
    %c0_i32_2 = arith.constant 0 : i32
    return %c0_i32, %c0_i32_0, %c0_i32_1 : i32, i32, i32
  }
  func.func @transform_12(%arg0: i32) -> (i32, i32, i32) {
    %c0_i32 = arith.constant 0 : i32
    %c0_i32_0 = arith.constant 0 : i32
    %c0_i32_1 = arith.constant 0 : i32
    %c0_i32_2 = arith.constant 0 : i32
    return %c0_i32, %c0_i32_0, %c0_i32_1 : i32, i32, i32
  }
  func.func @transform_13(%arg0: i32) -> (i32, i32, i32) {
    %c0_i32 = arith.constant 0 : i32
    %c0_i32_0 = arith.constant 0 : i32
    %c0_i32_1 = arith.constant 0 : i32
    %c0_i32_2 = arith.constant 0 : i32
    return %c0_i32, %c0_i32_0, %c0_i32_1 : i32, i32, i32
  }
  func.func @transform_14(%arg0: i32) -> (i32, i32, i32) {
    %c0_i32 = arith.constant 0 : i32
    %c0_i32_0 = arith.constant 0 : i32
    %c0_i32_1 = arith.constant 0 : i32
    %c0_i32_2 = arith.constant 0 : i32
    return %c0_i32, %c0_i32_0, %c0_i32_1 : i32, i32, i32
  }
  func.func @transform_15(%arg0: i32) -> (i32, i32, i32) {
    %c0_i32 = arith.constant 0 : i32
    %c0_i32_0 = arith.constant 0 : i32
    %c0_i32_1 = arith.constant 0 : i32
    %c0_i32_2 = arith.constant 0 : i32
    return %c0_i32, %c0_i32_0, %c0_i32_1 : i32, i32, i32
  }
  func.func @transform_16(%arg0: i32) -> (i32, i32) {
    %c0_i32 = arith.constant 0 : i32
    %c0_i32_0 = arith.constant 0 : i32
    %c0_i32_1 = arith.constant 0 : i32
    return %c0_i32, %c0_i32_0 : i32, i32
  }
  func.func @transform_17(%arg0: i32) -> (i32, i32) {
    %c0_i32 = arith.constant 0 : i32
    %c0_i32_0 = arith.constant 0 : i32
    %c0_i32_1 = arith.constant 0 : i32
    return %c0_i32, %c0_i32_0 : i32, i32
  }
  func.func @transform_18(%arg0: i32) -> (i32, i32) {
    %c0_i32 = arith.constant 0 : i32
    %c0_i32_0 = arith.constant 0 : i32
    %c0_i32_1 = arith.constant 0 : i32
    return %c0_i32, %c0_i32_0 : i32, i32
  }
  func.func @transform_19(%arg0: i32) -> (i32, i32) {
    %c0_i32 = arith.constant 0 : i32
    %c0_i32_0 = arith.constant 0 : i32
    %c0_i32_1 = arith.constant 0 : i32
    return %c0_i32, %c0_i32_0 : i32, i32
  }
  func.func @transform_20(%arg0: i32) -> (i32, i32, i32) {
    %c0_i32 = arith.constant 0 : i32
    %c0_i32_0 = arith.constant 0 : i32
    %c0_i32_1 = arith.constant 0 : i32
    return %arg0, %c0_i32, %c0_i32_0 : i32, i32, i32
  }
}

</mosaic_0001>

<bundles_post_ra>
// kernel: video_encoder_forward.1
= control target key start
LH: loop header
LB: loop body
LE: loop exit
PB: predicated region body
PF: predicated region fallthrough
CT: control target
= control target key end

     0   :  { %s7514_s0 = inlined_call_operand.vmem [shape: bf16[2,32,1536], index: 0, kind: input, shape index: {}]   ;;  %s7515_s1 = inlined_call_operand.vmem [shape: bf16[1536,64], index: 1, kind: input, shape index: {}]   ;;  %s7516_s2 = inlined_call_operand.vmem [shape: f32[1,64], index: 2, kind: input, shape index: {}]   ;;  %s7517_s3 = inlined_call_operand.vmem [shape: f32[32,64], index: 3, kind: input, shape index: {}]   ;;  %s7518_s4 = inlined_call_operand.vmem [shape: f32[2,1,64], index: 4, kind: input, shape index: {}]   ;;  %s7519_s5 = inlined_call_operand.vmem [shape: f32[2,1,64], index: 5, kind: input, shape index: {}]   ;;  %s7520_s6 = inlined_call_operand.vmem [shape: bf16[2,64,192], index: 6, kind: input, shape index: {}]   ;;  %s7521_s7 = inlined_call_operand.vmem [shape: f32[2,1,192], index: 7, kind: input, shape index: {}]   ;;  %s7522_s8 = inlined_call_operand.vmem [shape: bf16[2,64,64], index: 8, kind: input, shape index: {}]   ;;  %s7523_s9 = inlined_call_operand.vmem [shape: f32[2,1,64], index: 9, kind: input, shape index: {}]   ;;  %s7524_s10 = inlined_call_operand.vmem [shape: f32[2,1,64], index: 10, kind: input, shape index: {}]   ;;  %s7525_s11 = inlined_call_operand.vmem [shape: f32[2,1,64], index: 11, kind: input, shape index: {}]   ;;  %s7526_s12 = inlined_call_operand.vmem [shape: bf16[2,64,128], index: 12, kind: input, shape index: {}]   ;;  %s7527_s13 = inlined_call_operand.vmem [shape: f32[2,1,128], index: 13, kind: input, shape index: {}]   ;;  %s7528_s14 = inlined_call_operand.vmem [shape: bf16[2,128,64], index: 14, kind: input, shape index: {}]   ;;  %s7529_s15 = inlined_call_operand.vmem [shape: f32[2,1,64], index: 15, kind: input, shape index: {}]   ;;  %s7530_s16 = inlined_call_operand.vmem [shape: f32[1,64], index: 16, kind: input, shape index: {}]   ;;  %s7531_s17 = inlined_call_operand.vmem [shape: f32[1,64], index: 17, kind: input, shape index: {}]   ;;  %s7532_s18 = inlined_call_operand.vmem [shape: bf16[64,128], index: 18, kind: input, shape index: {}]   ;;  %s7533_s19 = inlined_call_operand.vmem [shape: f32[1,128], index: 19, kind: input, shape index: {}]   ;;  %s7534_s20 = inlined_call_operand.hbm [shape: f32[2,1,128], index: 20, kind: output, shape index: {}]  }
   0x1   :  { %7559 = sst [smem:[#allocation11_spill]] %s7514_s0 }
   0x2   :  { %7560 = sst [smem:[#allocation12_spill]] %s7515_s1 }
   0x3   :  { %7561 = sst [smem:[#allocation13_spill]] %s7516_s2 }
   0x4   :  { %7562 = sst [smem:[#allocation14_spill]] %s7517_s3 }
   0x5   :  { %7563 = sst [smem:[#allocation15_spill]] %s7518_s4 }
   0x6   :  { %7564 = sst [smem:[#allocation16_spill]] %s7519_s5 }
   0x7   :  { %7565 = sst [smem:[#allocation17_spill]] %s7534_s20 }
   0x8   :  { %25 = vsyncpa [#allocation3], 0 }
   0x9   :  { %27 = vsyncpa [#allocation3 + $0x1], 0  ;;  %s6343_s1 = smov 0   ;;  %s6345_s22 = smov 0  }
   0xa   :  { %s6347_s23 = smov 0   ;;  %s6349_s24 = smov 0  }
   0xb LB: > { %7566 = sst [smem:[#allocation5_spill]] %s6213_s1  ;;  %s6364_s2 = sadd.s32 4294967295, %s6225_s24   ;;  %s6225_s24 = sphi %s6349_s24, %s7591_s24   ;;  %s6221_s23 = sphi %s6347_s23, %s7593_s23   ;;  %s6217_s22 = sphi %s6345_s22, %s7595_s22   ;;  %s6213_s1 = sphi %s6343_s1, %s7594_s1  }
   0xc   : > { %7567 = sst [smem:[#allocation6_spill]] %s6221_s23  ;;  %s4870_s25 = sadd.s32 4294967294, %s6225_s24  }
   0xd   : > { %7568 = sst [smem:[#allocation7_spill]] %s6225_s24  ;;  %s6368_s3 = sadd.s32 1, %s6225_s24  }
   0xe   : > { %7569 = sst [smem:[#allocation8_spill]] %s6368_s3  ;;  %s465_s26 = sadd.s32 1, %s6221_s23 }
   0xf   : > { %s462_s27 = ssub.s32 %s6225_s24, %s6368_s3  ;;  %p475_p0 = scmp.ne.s32.totalorder %s6221_s23, %s6217_s22 }
  0x10   : > { %p463_p1 = scmp.eq.s32.totalorder %s462_s27, 0  ;;  %p476_p2 = scmp.eq.s32.totalorder %s6364_s2, 1 }
  0x11   : > { %p481_p3 = scmp.ne.s32.totalorder %s6217_s22, %s6213_s1  ;;  %p482_p4 = scmp.eq.s32.totalorder %s4870_s25, 1 }
  0x12   : > { %s6379_s28 = scalar_select %p463_p1, %s6221_s23, %s465_s26  }
  0x13   : > { %p6381_p5 = por %p476_p2, %p475_p0  ;;  %p6385_p6 = por %p482_p4, %p481_p3 }
  0x14   : > { %7570 = sst [smem:[#allocation9_spill]] %s6379_s28  ;;  %p4873_p7 = scmp.ge.s32.totalorder %s6225_s24, 1 }
  0x15   : > { %s7572_s29 = scalar_select %p6385_p6, 1, 0 }
  0x16   : > { %p565_p8 = scmp.lt.s32.totalorder %s6225_s24, 3 }
  0x17   : > { %7573 = sst [smem:[#allocation10_spill]] %s7572_s29 }
  0x18   : > { %p566_p9 = pnand %p4873_p7, %p565_p8 }
  0x19   : > { %s7574_s21 = sld [smem:[#allocation12_spill]] (!%p566_p9)  ;;  %p622_p10 = scmp.lt.s32.totalorder (!%p566_p9), %s6364_s2, 1  ;;  %vm1851_vm0 = vcmask (!%p566_p9), 523264   ;;  %vm2056_vm1 = vcmask (!%p566_p9), 130048   ;;  %vm2122_vm2 = vcmask (!%p566_p9), 261120   ;;  %vm2822_vm3 = vcmask (!%p566_p9), 392192  }
  0x1a   : > { %569 = sbr.rel (%p566_p9) target bundleno = 7827 (0x1e93), region = 100  ;;  %s7575_s20 = sld [smem:[#allocation11_spill]] (!%p566_p9)  ;;  %vm6236_vm4 = vmmov (!%p566_p9), 0  }
  0x1b   : > { %s7576_s3 = sld [smem:[#allocation13_spill]] (!%p566_p9)  ;;  %s7578_s30 = sld [smem:[#allocation15_spill]] (!%p566_p9) }
  0x1c   : > { %s7579_s5 = sld [smem:[#allocation16_spill]] (!%p566_p9)  ;;  %s7555_s23 = smov (!%p566_p9), 48  }
  0x1d   : > { %s7551_s1 = smov (!%p566_p9), 96   ;;  %s7547_s29 = smov (!%p566_p9), 16  }
  0x1e   : > { %s7545_s0 = smov (!%p566_p9), 80   ;;  %s7582_s27 = smov (!%p566_p9), 48  }
  0x1f   : > { %v5793_v0 = vld [vmem:[%s7574_s21 + $0x40] sm:$0xff] (!%p566_p9)   ;;  %v5797_v4 = vld [vmem:[%s7574_s21 + $0x48] sm:$0xff] (!%p566_p9)   ;;  %v5801_v8 = vld [vmem:[%s7574_s21 + $0x50] sm:$0xff] (!%p566_p9)   ;;  %s7583_s26 = smov (!%p566_p9), 96  }
  0x20   : > { %v5794_v1 = vld [vmem:[%s7574_s21 + $0xc0] sm:$0xff] (!%p566_p9)   ;;  %5158 = vmatprep.subr.bf16.mxu0 (!%p566_p9), %v5793_v0  ;;  %v5798_v5 = vld [vmem:[%s7574_s21 + $0xc8] sm:$0xff] (!%p566_p9)   ;;  %v5802_v9 = vld [vmem:[%s7574_s21 + $0xd0] sm:$0xff] (!%p566_p9)  }
  0x21   : > { %v5795_v2 = vld [vmem:[%s7574_s21] sm:$0xff]   ;;  %5186 = vmatprep.subr.bf16.mxu1 %v5794_v1  ;;  %v5799_v6 = vld [vmem:[%s7574_s21 + $0x8] sm:$0xff]   ;;  %v5803_v10 = vld [vmem:[%s7574_s21 + $0x10] sm:$0xff]   ;;  %s623_s28 = scalar_select %p622_p10, %s6364_s2, 1 }
  0x22   : > { %v5796_v3 = vld [vmem:[%s7574_s21 + $0x80] sm:$0xff]   ;;  %5159 = vmatpush3.bf16.msra.mxu0 %v5795_v2  ;;  %v5800_v7 = vld [vmem:[%s7574_s21 + $0x88] sm:$0xff]   ;;  %v5804_v11 = vld [vmem:[%s7574_s21 + $0x90] sm:$0xff]  }
  0x23   : > { %5187 = vmatpush3.bf16.msra.mxu1 %v5796_v3  ;;  %5160 = vmatprep.subr.bf16.mxu0 %v5797_v4  ;;  %v5805_v12 = vld [vmem:[%s7574_s21 + $0x58] sm:$0xff]   ;;  %v5809_v16 = vld [vmem:[%s7574_s21 + $0x60] sm:$0xff]   ;;  %v5813_v20 = vld [vmem:[%s7574_s21 + $0x68] sm:$0xff]   ;;  %s5683_s25 = smul.u32 192, %s623_s28  ;;  %s7581_s28 = smov 112  }
  0x24   : > { %5188 = vmatprep.subr.bf16.mxu1 %v5798_v5  ;;  %v5806_v13 = vld [vmem:[%s7574_s21 + $0xd8] sm:$0xff]   ;;  %v5810_v17 = vld [vmem:[%s7574_s21 + $0xe0] sm:$0xff]   ;;  %v5814_v21 = vld [vmem:[%s7574_s21 + $0xe8] sm:$0xff]  }
  0x25   : > { %v5807_v14 = vld [vmem:[%s7574_s21 + $0x18] sm:$0xff]   ;;  %v5811_v18 = vld [vmem:[%s7574_s21 + $0x20] sm:$0xff]   ;;  %v5815_v22 = vld [vmem:[%s7574_s21 + $0x28] sm:$0xff]   ;;  %s6486_s24 = scalar_lea.vmem %s7575_s20, %s5683_s25  ;;  %s7577_s20 = sld [smem:[#allocation14_spill]] }
  0x26   : > { %5161 = vmatpush3.bf16.msra.mxu0 %v5799_v6  ;;  %v5808_v15 = vld [vmem:[%s7574_s21 + $0x98] sm:$0xff]   ;;  %v5812_v19 = vld [vmem:[%s7574_s21 + $0xa0] sm:$0xff]   ;;  %v5816_v23 = vld [vmem:[%s7574_s21 + $0xa8] sm:$0xff]   ;;  %s7549_s25 = smov 32  }
  0x27   : > { %5189 = vmatpush3.bf16.msra.mxu1 %v5800_v7  ;;  %5162 = vmatprep.subr.bf16.mxu0 %v5801_v8  ;;  %v5817_v24 = vld [vmem:[%s7574_s21 + $0x70] sm:$0xff]   ;;  %v5821_v28 = vld [vmem:[%s7574_s21 + $0x78] sm:$0xff]   ;;  %v5831_v36 = vld [vmem:[%s7574_s21 + $0x140] sm:$0xff]  }
  0x28   : > { %5190 = vmatprep.subr.bf16.mxu1 %v5802_v9  ;;  %v5818_v25 = vld [vmem:[%s7574_s21 + $0xf0] sm:$0xff]   ;;  %v5822_v29 = vld [vmem:[%s7574_s21 + $0xf8] sm:$0xff]   ;;  %v5832_v37 = vld [vmem:[%s7574_s21 + $0x1c0] sm:$0xff]  }
  0x29   : > { %v5819_v26 = vld [vmem:[%s7574_s21 + $0x30] sm:$0xff]   ;;  %v5823_v30 = vld [vmem:[%s7574_s21 + $0x38] sm:$0xff]   ;;  %v5833_v38 = vld [vmem:[%s7574_s21 + $0x100] sm:$0xff]  }
  0x2a   : > { %5163 = vmatpush3.bf16.msra.mxu0 %v5803_v10  ;;  %v5820_v27 = vld [vmem:[%s7574_s21 + $0xb0] sm:$0xff]   ;;  %v5824_v31 = vld [vmem:[%s7574_s21 + $0xb8] sm:$0xff]   ;;  %v5834_v39 = vld [vmem:[%s7574_s21 + $0x180] sm:$0xff]  }
  0x2b   : > { %5191 = vmatpush3.bf16.msra.mxu1 %v5804_v11  ;;  %5164 = vmatprep.subr.bf16.mxu0 %v5805_v12  ;;  %v5825_v32 = vld [vmem:[%s6486_s24] ss:$48 sps:$4 sm:$0xff]   ;;  %v5827_v33 = vld [vmem:[%s6486_s24 + $0x4] ss:$48 sps:$4 sm:$0xff]   ;;  %v5828_v34 = vld [vmem:[%s6486_s24 + $0x8] ss:$48 sps:$4 sm:$0xff]  }
  0x2c   : > { %5192 = vmatprep.subr.bf16.mxu1 %v5806_v13  ;;  %v5830_v35 = vld [vmem:[%s6486_s24 + $0xc] ss:$48 sps:$4 sm:$0xff]   ;;  %1579 = vmatprep.mubr.bf16.mxu0 %v5827_v33  ;;  %v5839_v44 = vld [vmem:[%s7574_s21 + $0x150] sm:$0xff]   ;;  %v5847_v52 = vld [vmem:[%s7574_s21 + $0x160] sm:$0xff]  }
  0x2d   : > { %1628 = vmatprep.mubr.bf16.mxu1 %v5830_v35  ;;  %v5835_v40 = vld [vmem:[%s7574_s21 + $0x148] sm:$0xff]   ;;  %v5840_v45 = vld [vmem:[%s7574_s21 + $0x1d0] sm:$0xff]   ;;  %v5843_v48 = vld [vmem:[%s7574_s21 + $0x158] sm:$0xff]  }
  0x2e   : > { %5165 = vmatpush3.bf16.msra.mxu0 %v5807_v14  ;;  %v5836_v41 = vld [vmem:[%s7574_s21 + $0x1c8] sm:$0xff]   ;;  %v5841_v46 = vld [vmem:[%s7574_s21 + $0x110] sm:$0xff]   ;;  %v5844_v49 = vld [vmem:[%s7574_s21 + $0x1d8] sm:$0xff]  }
  0x2f   : > { %5193 = vmatpush3.bf16.msra.mxu1 %v5808_v15  ;;  %5166 = vmatprep.subr.bf16.mxu0 %v5809_v16  ;;  %v5837_v42 = vld [vmem:[%s7574_s21 + $0x108] sm:$0xff]   ;;  %v5842_v47 = vld [vmem:[%s7574_s21 + $0x190] sm:$0xff]   ;;  %v5845_v50 = vld [vmem:[%s7574_s21 + $0x118] sm:$0xff]  }
  0x30   : > { %5194 = vmatprep.subr.bf16.mxu1 %v5810_v17  ;;  %v5838_v43 = vld [vmem:[%s7574_s21 + $0x188] sm:$0xff]   ;;  %v5846_v51 = vld [vmem:[%s7574_s21 + $0x198] sm:$0xff]   ;;  %v5848_v53 = vld [vmem:[%s7574_s21 + $0x1e0] sm:$0xff]  }
  0x31   : > { %v5849_v54 = vld [vmem:[%s7574_s21 + $0x120] sm:$0xff]   ;;  %v5851_v56 = vld [vmem:[%s7574_s21 + $0x168] sm:$0xff]   ;;  %v5861_v0 = vld [vmem:[%s7574_s21 + $0x170] sm:$0xff]  }
  0x32   : > { %5167 = vmatpush3.bf16.msra.mxu0 %v5811_v18  ;;  %v5850_v55 = vld [vmem:[%s7574_s21 + $0x1a0] sm:$0xff]   ;;  %v5852_v57 = vld [vmem:[%s7574_s21 + $0x1e8] sm:$0xff]   ;;  %v5862_v1 = vld [vmem:[%s7574_s21 + $0x1f0] sm:$0xff]  }
  0x33   : > { %5195 = vmatpush3.bf16.msra.mxu1 %v5812_v19  ;;  %5168 = vmatprep.subr.bf16.mxu0 %v5813_v20  ;;  %v5853_v58 = vld [vmem:[%s6486_s24 + $0x64] ss:$48 sps:$4 sm:$0xff]   ;;  %v5855_v59 = vld [vmem:[%s7574_s21 + $0x128] sm:$0xff]   ;;  %v5857_v61 = vld [vmem:[%s6486_s24 + $0x60] ss:$48 sps:$4 sm:$0xff]  }
  0x34   : > { %5196 = vmatprep.subr.bf16.mxu1 %v5814_v21  ;;  %v5856_v60 = vld [vmem:[%s7574_s21 + $0x1a8] sm:$0xff]   ;;  %v5863_v2 = vld [vmem:[%s7574_s21 + $0x130] sm:$0xff]   ;;  %v5865_v4 = vld [vmem:[%s7574_s21 + $0x178] sm:$0xff]  }
  0x35   : > { %v5858_v62 = vld [vmem:[%s6486_s24 + $0x6c] ss:$48 sps:$4 sm:$0xff]   ;;  %v5860_v63 = vld [vmem:[%s6486_s24 + $0x68] ss:$48 sps:$4 sm:$0xff]   ;;  %v5864_v3 = vld [vmem:[%s7574_s21 + $0x1b0] sm:$0xff]  }
  0x36   : > { %5169 = vmatpush3.bf16.msra.mxu0 %v5815_v22  ;;  %v5866_v5 = vld [vmem:[%s7574_s21 + $0x1f8] sm:$0xff]   ;;  %v5869_v8 = vld [vmem:[%s6486_s24 + $0x10] ss:$48 sps:$4 sm:$0xff]   ;;  %v5871_v9 = vld [vmem:[%s6486_s24 + $0x14] ss:$48 sps:$4 sm:$0xff]  }
  0x37   : > { %5197 = vmatpush3.bf16.msra.mxu1 %v5816_v23  ;;  %5170 = vmatprep.subr.bf16.mxu0 %v5817_v24  ;;  %v5867_v6 = vld [vmem:[%s7574_s21 + $0x138] sm:$0xff]   ;;  %v5875_v12 = vld [vmem:[%s7574_s21 + $0x240] sm:$0xff]   ;;  %v5879_v16 = vld [vmem:[%s7574_s21 + $0x248] sm:$0xff]  }
  0x38   : > { %5198 = vmatprep.subr.bf16.mxu1 %v5818_v25  ;;  %v5868_v7 = vld [vmem:[%s7574_s21 + $0x1b8] sm:$0xff]   ;;  %v5876_v13 = vld [vmem:[%s7574_s21 + $0x2c0] sm:$0xff]   ;;  %v5880_v17 = vld [vmem:[%s7574_s21 + $0x2c8] sm:$0xff]  }
  0x39   : > { %v5872_v10 = vld [vmem:[%s6486_s24 + $0x18] ss:$48 sps:$4 sm:$0xff]   ;;  %v5874_v11 = vld [vmem:[%s6486_s24 + $0x1c] ss:$48 sps:$4 sm:$0xff]   ;;  %v5877_v14 = vld [vmem:[%s7574_s21 + $0x200] sm:$0xff]  }
  0x3a   : > { %5171 = vmatpush3.bf16.msra.mxu0 %v5819_v26  ;;  %v5878_v15 = vld [vmem:[%s7574_s21 + $0x280] sm:$0xff]   ;;  %v5881_v18 = vld [vmem:[%s7574_s21 + $0x208] sm:$0xff]   ;;  %v5886_v22 = vld [vmem:[%s7574_s21 + $0x250] sm:$0xff]  }
  0x3b   : > { %5199 = vmatpush3.bf16.msra.mxu1 %v5820_v27  ;;  %5172 = vmatprep.subr.bf16.mxu0 %v5821_v28  ;;  %v5882_v19 = vld [vmem:[%s7574_s21 + $0x288] sm:$0xff]   ;;  %v5883_v20 = vld [vmem:[%s6486_s24 + $0x74] ss:$48 sps:$4 sm:$0xff]   ;;  %v5885_v21 = vld [vmem:[%s6486_s24 + $0x70] ss:$48 sps:$4 sm:$0xff]  }
  0x3c   : > { %5200 = vmatprep.subr.bf16.mxu1 %v5822_v29  ;;  %v5887_v23 = vld [vmem:[%s7574_s21 + $0x2d0] sm:$0xff]   ;;  %v5888_v24 = vld [vmem:[%s6486_s24 + $0x7c] ss:$48 sps:$4 sm:$0xff]   ;;  %v5892_v27 = vld [vmem:[%s6486_s24 + $0x78] ss:$48 sps:$4 sm:$0xff]  }
  0x3d   : > { %v5890_v25 = vld [vmem:[%s7574_s21 + $0x210] sm:$0xff]   ;;  %v5893_v28 = vld [vmem:[%s7574_s21 + $0x258] sm:$0xff]   ;;  %v5898_v33 = vld [vmem:[%s7574_s21 + $0x2e0] sm:$0xff]  }
  0x3e   : > { %5173 = vmatpush3.bf16.msra.mxu0 %v5823_v30  ;;  %v5891_v26 = vld [vmem:[%s7574_s21 + $0x290] sm:$0xff]   ;;  %v5894_v29 = vld [vmem:[%s7574_s21 + $0x2d8] sm:$0xff]   ;;  %v5900_v35 = vld [vmem:[%s7574_s21 + $0x2a0] sm:$0xff]  }
  0x3f   : > { %5201 = vmatpush3.bf16.msra.mxu1 %v5824_v31  ;;  %5214 = vmatprep.subr.bf16.mxu0 %v5831_v36  ;;  %v5895_v30 = vld [vmem:[%s7574_s21 + $0x218] sm:$0xff]   ;;  %v5901_v36 = vld [vmem:[%s7574_s21 + $0x268] sm:$0xff]  }
  0x40   : > { %5242 = vmatprep.subr.bf16.mxu1 %v5832_v37  ;;  %v5896_v31 = vld [vmem:[%s7574_s21 + $0x298] sm:$0xff]   ;;  %v5902_v37 = vld [vmem:[%s7574_s21 + $0x2e8] sm:$0xff]  }
  0x41   : > { %1580 = vmatmul.mubr.bf16.vlgmr.msra.gmra.mrb[0].mxu0 %v5825_v32  ;;  %v5897_v32 = vld [vmem:[%s7574_s21 + $0x260] sm:$0xff]  }
  0x42   : > { %1629 = vmatmul.mubr.bf16.vlgmr.msra.gmra.mrb[0].mxu1 %v5828_v34  ;;  %5215 = vmatpush3.bf16.msra.mxu0 %v5833_v38  ;;  %v5899_v34 = vld [vmem:[%s7574_s21 + $0x220] sm:$0xff]   ;;  %v5903_v38 = vld [vmem:[%s7574_s21 + $0x228] sm:$0xff]  }
  0x43   : > { %5243 = vmatpush3.bf16.msra.mxu1 %v5834_v39  ;;  %5216 = vmatprep.subr.bf16.mxu0 %v5835_v40  ;;  %v5904_v39 = vld [vmem:[%s7574_s21 + $0x2a8] sm:$0xff]   ;;  %v5905_v40 = vld [vmem:[%s7574_s21 + $0x270] sm:$0xff]  }
  0x44   : > { %5244 = vmatprep.subr.bf16.mxu1 %v5836_v41  ;;  %1587 = vmatprep.mubr.bf16.mxu0 %v5853_v58  ;;  %v5906_v41 = vld [vmem:[%s7574_s21 + $0x2f0] sm:$0xff]   ;;  %v4875_v58 = vld [vmem:[%s7576_s3] ss:$0 sm:$0xff]  ;;  %s7557_s3 = smov 64  }
  0x45   : > { %1636 = vmatprep.mubr.bf16.mxu1 %v5858_v62 }
  0x46   : > { %5217 = vmatpush3.bf16.msra.mxu0 %v5837_v42  ;;  %v5907_v42 = vld [vmem:[%s7574_s21 + $0x230] sm:$0xff]  }
  0x47   : > { %5245 = vmatpush3.bf16.msra.mxu1 %v5838_v43  ;;  %5218 = vmatprep.subr.bf16.mxu0 %v5839_v44  ;;  %v5908_v43 = vld [vmem:[%s7574_s21 + $0x2b0] sm:$0xff]   ;;  %v5909_v44 = vld [vmem:[%s7574_s21 + $0x278] sm:$0xff]  }
  0x48   : > { %5246 = vmatprep.subr.bf16.mxu1 %v5840_v45  ;;  %v5910_v45 = vld [vmem:[%s7574_s21 + $0x2f8] sm:$0xff]  }
  0x49   : > { %1588 = vmatmul.mubr.bf16.gmra.mrb[4].mxu0 %v5857_v61 }
  0x4a   : > { %5219 = vmatpush3.bf16.msra.mxu0 %v5841_v46  ;;  %1637 = vmatmul.mubr.bf16.gmra.mrb[4].mxu1 %v5860_v63  ;;  %v5911_v46 = vld [vmem:[%s7574_s21 + $0x238] sm:$0xff]  }
  0x4b   : > { %5247 = vmatpush3.bf16.msra.mxu1 %v5842_v47  ;;  %5220 = vmatprep.subr.bf16.mxu0 %v5843_v48  ;;  %v5912_v47 = vld [vmem:[%s7574_s21 + $0x2b8] sm:$0xff]   ;;  %v5913_v48 = vld [vmem:[%s6486_s24 + $0x20] ss:$48 sps:$4 sm:$0xff]  }
  0x4c   : > { %5248 = vmatprep.subr.bf16.mxu1 %v5844_v49  ;;  %1677 = vmatprep.mubr.bf16.mxu0 %v5871_v9  ;;  %v5915_v49 = vld [vmem:[%s6486_s24 + $0x24] ss:$48 sps:$4 sm:$0xff]  }
  0x4d   : > { %1726 = vmatprep.mubr.bf16.mxu1 %v5874_v11 }
  0x4e   : > { %5221 = vmatpush3.bf16.msra.mxu0 %v5845_v50  ;;  %v5916_v50 = vld [vmem:[%s6486_s24 + $0x28] ss:$48 sps:$4 sm:$0xff]  }
  0x4f   : > { %5249 = vmatpush3.bf16.msra.mxu1 %v5846_v51  ;;  %5222 = vmatprep.subr.bf16.mxu0 %v5847_v52  ;;  %v5918_v51 = vld [vmem:[%s6486_s24 + $0x2c] ss:$48 sps:$4 sm:$0xff]   ;;  %v5919_v52 = vld [vmem:[%s6486_s24 + $0x84] ss:$48 sps:$4 sm:$0xff]  }
  0x50   : > { %5250 = vmatprep.subr.bf16.mxu1 %v5848_v53  ;;  %v5921_v53 = vld [vmem:[%s6486_s24 + $0x8c] ss:$48 sps:$4 sm:$0xff]  }
  0x52   : > { %5223 = vmatpush3.bf16.msra.mxu0 %v5849_v54  ;;  %v5923_v54 = vld [vmem:[%s6486_s24 + $0x80] ss:$48 sps:$4 sm:$0xff]  }
  0x53   : > { %5251 = vmatpush3.bf16.msra.mxu1 %v5850_v55  ;;  %5224 = vmatprep.subr.bf16.mxu0 %v5851_v56  ;;  %v5924_v55 = vld [vmem:[%s6486_s24 + $0x88] ss:$48 sps:$4 sm:$0xff]   ;;  %s7553_s24 = smov 112  }
  0x54   : > { %5252 = vmatprep.subr.bf16.mxu1 %v5852_v57 }
  0x56   : > { %5225 = vmatpush3.bf16.msra.mxu0 %v5855_v59 }
  0x57   : > { %5253 = vmatpush3.bf16.msra.mxu1 %v5856_v60  ;;  %5226 = vmatprep.subr.bf16.mxu0 %v5861_v0 }
  0x58   : > { %5254 = vmatprep.subr.bf16.mxu1 %v5862_v1 }
  0x5a   : > { %5227 = vmatpush3.bf16.msra.mxu0 %v5863_v2 }
  0x5b   : > { %5255 = vmatpush3.bf16.msra.mxu1 %v5864_v3  ;;  %5228 = vmatprep.subr.bf16.mxu0 %v5865_v4 }
  0x5c   : > { %5256 = vmatprep.subr.bf16.mxu1 %v5866_v5 }
  0x5e   : > { %5229 = vmatpush3.bf16.msra.mxu0 %v5867_v6 }
  0x5f   : > { %5257 = vmatpush3.bf16.msra.mxu1 %v5868_v7  ;;  %5270 = vmatprep.subr.bf16.mxu0 %v5875_v12 }
  0x60   : > { %5298 = vmatprep.subr.bf16.mxu1 %v5876_v13 }
  0x61   : > { %1678 = vmatmul.mubr.bf16.vlgmr.msra.gmra.mrb[8].mxu0 %v5869_v8 }
  0x62   : > { %1727 = vmatmul.mubr.bf16.vlgmr.msra.gmra.mrb[8].mxu1 %v5872_v10  ;;  %5271 = vmatpush3.bf16.msra.mxu0 %v5877_v14 }
  0x63   : > { %5299 = vmatpush3.bf16.msra.mxu1 %v5878_v15  ;;  %5272 = vmatprep.subr.bf16.mxu0 %v5879_v16 }
  0x64   : > { %5300 = vmatprep.subr.bf16.mxu1 %v5880_v17  ;;  %1685 = vmatprep.mubr.bf16.mxu0 %v5883_v20 }
  0x65   : > { %1734 = vmatprep.mubr.bf16.mxu1 %v5888_v24 }
  0x66   : > { %5273 = vmatpush3.bf16.msra.mxu0 %v5881_v18 }
  0x67   : > { %5301 = vmatpush3.bf16.msra.mxu1 %v5882_v19  ;;  %5274 = vmatprep.subr.bf16.mxu0 %v5886_v22 }
  0x68   : > { %5302 = vmatprep.subr.bf16.mxu1 %v5887_v23 }
  0x69   : > { %1686 = vmatmul.mubr.bf16.gmra.mrb[12].mxu0 %v5885_v21 }
  0x6a   : > { %5275 = vmatpush3.bf16.msra.mxu0 %v5890_v25  ;;  %1735 = vmatmul.mubr.bf16.gmra.mrb[12].mxu1 %v5892_v27 }
  0x6b   : > { %5303 = vmatpush3.bf16.msra.mxu1 %v5891_v26  ;;  %5276 = vmatprep.subr.bf16.mxu0 %v5893_v28 }
  0x6c   : > { %5304 = vmatprep.subr.bf16.mxu1 %v5894_v29  ;;  %1775 = vmatprep.mubr.bf16.mxu0 %v5915_v49 }
  0x6d   : > { %1824 = vmatprep.mubr.bf16.mxu1 %v5918_v51 }
  0x6e   : > { %5277 = vmatpush3.bf16.msra.mxu0 %v5895_v30 }
  0x6f   : > { %5305 = vmatpush3.bf16.msra.mxu1 %v5896_v31  ;;  %5278 = vmatprep.subr.bf16.mxu0 %v5897_v32 }
  0x70   : > { %5306 = vmatprep.subr.bf16.mxu1 %v5898_v33 }
  0x72   : > { %5279 = vmatpush3.bf16.msra.mxu0 %v5899_v34 }
  0x73   : > { %5307 = vmatpush3.bf16.msra.mxu1 %v5900_v35  ;;  %5280 = vmatprep.subr.bf16.mxu0 %v5901_v36 }
  0x74   : > { %5308 = vmatprep.subr.bf16.mxu1 %v5902_v37 }
  0x76   : > { %5281 = vmatpush3.bf16.msra.mxu0 %v5903_v38 }
  0x77   : > { %5309 = vmatpush3.bf16.msra.mxu1 %v5904_v39  ;;  %5282 = vmatprep.subr.bf16.mxu0 %v5905_v40 }
  0x78   : > { %5310 = vmatprep.subr.bf16.mxu1 %v5906_v41 }
  0x7a   : > { %5283 = vmatpush3.bf16.msra.mxu0 %v5907_v42 }
  0x7b   : > { %5311 = vmatpush3.bf16.msra.mxu1 %v5908_v43  ;;  %5284 = vmatprep.subr.bf16.mxu0 %v5909_v44 }
  0x7c   : > { %5312 = vmatprep.subr.bf16.mxu1 %v5910_v45 }
  0x7e   : > { %5285 = vmatpush3.bf16.msra.mxu0 %v5911_v46 }
  0x7f   : > { %5313 = vmatpush3.bf16.msra.mxu1 %v5912_v47 }
  0x81   : > { %1776 = vmatmul.mubr.bf16.vlgmr.msra.gmra.mrb[16].mxu0 %v5913_v48 }
  0x82   : > { %1825 = vmatmul.mubr.bf16.vlgmr.msra.gmra.mrb[16].mxu1 %v5916_v50  ;;  %1783 = vmatprep.mubr.bf16.mxu0 %v5919_v52 }
  0x83   : > { %1832 = vmatprep.mubr.bf16.mxu1 %v5921_v53 }
  0x89   : > { %1784 = vmatmul.mubr.bf16.gmra.mrb[20].mxu0 %v5923_v54 }
  0x8a   : > { %1833 = vmatmul.mubr.bf16.gmra.mrb[20].mxu1 %v5924_v55 }
 0x114   : > { %v5174_v56 = vpop.f32.mrb[0].mxu0 }
 0x115   : > { %v5202_v57 = vpop.f32.mrb[0].mxu1  ;;  %v5175_v59 = vpop.f32.mrb[1].mxu0 }
 0x116   : > { %v5176_v60 = vadd.f32 %v5175_v59, %v5174_v56  ;;  %v5203_v61 = vpop.f32.mrb[1].mxu1  ;;  %v5177_v62 = vpop.f32.mrb[2].mxu0 }
 0x117   : > { %v5204_v63 = vadd.f32 %v5203_v61, %v5202_v57  ;;  %v5205_v0 = vpop.f32.mrb[2].mxu1  ;;  %v5178_v1 = vpop.f32.mrb[3].mxu0 }
 0x118   : > { %v1582_v2 = vadd.f32 %v5176_v60, %v4875_v58  ;;  %v5179_v3 = vadd.f32 %v5178_v1, %v5177_v62  ;;  %v5206_v4 = vpop.f32.mrb[3].mxu1 }
 0x119   : > { %v5207_v5 = vadd.f32 %v5206_v4, %v5205_v0 }
 0x11a   : > { %v1631_v6 = vadd.f32 %v5204_v63, %v1582_v2  ;;  %v1585_v7 = vadd.f32 %v5179_v3, %v4875_v58 }
 0x11c   : > { %v1634_v8 = vadd.f32 %v5207_v5, %v1585_v7  ;;  %v5180_v9 = vpop.f32.mrb[4].mxu0  ;;  %v1841_v5 = vld [vmem:[%s7577_s20] sm:$0xff] }
 0x11d   : > { %v5181_v10 = vpop.f32.mrb[5].mxu0  ;;  %v5208_v13 = vpop.f32.mrb[4].mxu1 }
 0x11e   : > { %v5182_v11 = vadd.f32 %v5181_v10, %v5180_v9  ;;  %v5183_v12 = vpop.f32.mrb[6].mxu0  ;;  %v5209_v15 = vpop.f32.mrb[5].mxu1  ;;  %v1842_v9 = vld [vmem:[%s7577_s20 + $0x8] sm:$0xff] }
 0x11f   : > { %v5184_v14 = vpop.f32.mrb[7].mxu0  ;;  %v5210_v18 = vadd.f32 %v5209_v15, %v5208_v13  ;;  %v5211_v19 = vpop.f32.mrb[6].mxu1 }
 0x120   : > { %v1590_v16 = vadd.f32 %v5182_v11, %v4875_v58  ;;  %v5185_v17 = vadd.f32 %v5184_v14, %v5183_v12  ;;  %v5212_v20 = vpop.f32.mrb[7].mxu1 }
 0x121   : > { %v5213_v23 = vadd.f32 %v5212_v20, %v5211_v19 }
 0x122   : > { %v1593_v21 = vadd.f32 %v5185_v17, %v4875_v58  ;;  %v1639_v22 = vadd.f32 %v5210_v18, %v1590_v16 }
 0x124   : > { %v1642_v24 = vadd.f32 %v5213_v23, %v1593_v21 }
 0x134   : > { %v5230_v25 = vpop.f32.mrb[8].mxu0 }
 0x135   : > { %v5258_v26 = vpop.f32.mrb[8].mxu1  ;;  %v5231_v27 = vpop.f32.mrb[9].mxu0 }
 0x136   : > { %v5232_v28 = vadd.f32 %v5231_v27, %v5230_v25  ;;  %v5259_v29 = vpop.f32.mrb[9].mxu1  ;;  %v5233_v30 = vpop.f32.mrb[10].mxu0 }
 0x137   : > { %v5260_v31 = vadd.f32 %v5259_v29, %v5258_v26  ;;  %v5261_v32 = vpop.f32.mrb[10].mxu1  ;;  %v5234_v33 = vpop.f32.mrb[11].mxu0  ;;  %v1843_v26 = vld [vmem:[%s7577_s20 + $0x10] sm:$0xff] }
 0x138   : > { %v1680_v34 = vadd.f32 %v5232_v28, %v1631_v6  ;;  %v5235_v35 = vadd.f32 %v5234_v33, %v5233_v30  ;;  %v5262_v36 = vpop.f32.mrb[11].mxu1 }
 0x139   : > { %v5263_v37 = vadd.f32 %v5262_v36, %v5261_v32 }
 0x13a   : > { %v1729_v38 = vadd.f32 %v5260_v31, %v1680_v34  ;;  %v1683_v39 = vadd.f32 %v5235_v35, %v1634_v8  ;;  %v1844_v31 = vld [vmem:[%s7577_s20 + $0x18] sm:$0xff] }
 0x13c   : > { %v1732_v40 = vadd.f32 %v5263_v37, %v1683_v39  ;;  %v5236_v41 = vpop.f32.mrb[12].mxu0 }
 0x13d   : > { %v5237_v42 = vpop.f32.mrb[13].mxu0  ;;  %v5264_v48 = vpop.f32.mrb[12].mxu1 }
 0x13e   : > { %v5238_v43 = vadd.f32 %v5237_v42, %v5236_v41  ;;  %v5239_v44 = vpop.f32.mrb[14].mxu0  ;;  %v5265_v50 = vpop.f32.mrb[13].mxu1 }
 0x13f   : > { %v5240_v45 = vpop.f32.mrb[15].mxu0  ;;  %v5266_v51 = vadd.f32 %v5265_v50, %v5264_v48  ;;  %v5267_v52 = vpop.f32.mrb[14].mxu1 }
 0x140   : > { %v1688_v46 = vadd.f32 %v5238_v43, %v1639_v22  ;;  %v5241_v47 = vadd.f32 %v5240_v45, %v5239_v44  ;;  %v5268_v53 = vpop.f32.mrb[15].mxu1 }
 0x141   : > { %v5269_v55 = vadd.f32 %v5268_v53, %v5267_v52 }
 0x142   : > { %v1691_v49 = vadd.f32 %v5241_v47, %v1642_v24  ;;  %v1737_v54 = vadd.f32 %v5266_v51, %v1688_v46 }
 0x144   : > { %v1740_v56 = vadd.f32 %v5269_v55, %v1691_v49 }
 0x154   : > { %v5286_v57 = vpop.f32.mrb[16].mxu0 }
 0x155   : > { %v5287_v58 = vpop.f32.mrb[17].mxu0  ;;  %v5314_v59 = vpop.f32.mrb[16].mxu1 }
 0x156   : > { %v5288_v60 = vadd.f32 %v5287_v58, %v5286_v57  ;;  %v5289_v61 = vpop.f32.mrb[18].mxu0  ;;  %v5315_v62 = vpop.f32.mrb[17].mxu1  ;;  %v5927_v57 = vld [vmem:[%s7520_s6 + $0x4] ss:$8 sps:$4 sm:$0xff]   ;;  %v5925_v58 = vld [vmem:[%s7520_s6] ss:$8 sps:$4 sm:$0xff]  }
 0x157   : > { %v5290_v63 = vpop.f32.mrb[19].mxu0  ;;  %v5316_v1 = vadd.f32 %v5315_v62, %v5314_v59  ;;  %v5317_v2 = vpop.f32.mrb[18].mxu1  ;;  %1993 = vmatprep.subr.bf16.mxu0 %v5927_v57  ;;  %v5930_v59 = vld [vmem:[%s7520_s6 + $0x14] ss:$8 sps:$4 sm:$0xff]   ;;  %v5931_v62 = vld [vmem:[%s7520_s6 + $0x20] ss:$8 sps:$4 sm:$0xff]  }
 0x158   : > { %v1778_v0 = vadd.f32 %v5288_v60, %v1729_v38  ;;  %v5291_v3 = vadd.f32 %v5290_v63, %v5289_v61  ;;  %v5318_v4 = vpop.f32.mrb[19].mxu1  ;;  %1994 = vmatpush1.bf16.msra.mxu0 %v5925_v58  ;;  %v5928_v60 = vld [vmem:[%s7520_s6 + $0x10] ss:$8 sps:$4 sm:$0xff]   ;;  %v5933_v61 = vld [vmem:[%s7520_s6 + $0x24] ss:$8 sps:$4 sm:$0xff]  }
 0x159   : > { %v5319_v8 = vadd.f32 %v5318_v4, %v5317_v2  ;;  %1995 = vmatprep.subr.bf16.mxu0 %v5930_v59  ;;  %v5934_v63 = vld [vmem:[%s7520_s6 + $0x30] ss:$8 sps:$4 sm:$0xff]  }
 0x15a   : > { %v1827_v6 = vadd.f32 %v5316_v1, %v1778_v0  ;;  %v1781_v7 = vadd.f32 %v5291_v3, %v1732_v40  ;;  %v5936_v0 = vld [vmem:[%s7520_s6 + $0x34] ss:$8 sps:$4 sm:$0xff]   ;;  %v6227_v1 = vmov 0  }
 0x15b   : > { %2025 = vmatprep.mubr.bf16.mxu0 %v6227_v1 }
 0x15c   : > { %v1830_v10 = vadd.f32 %v5319_v8, %v1781_v7  ;;  %v5292_v11 = vpop.f32.mrb[20].mxu0  ;;  %v6719_v12 = vadd.f32 %v1841_v5, %v1827_v6  ;;  %1996 = vmatpush1.bf16.msra.mxu0 %v5928_v60 }
 0x15d   : > { %v5293_v13 = vpop.f32.mrb[21].mxu0  ;;  %v5320_v15 = vpop.f32.mrb[20].mxu1  ;;  %1997 = vmatprep.subr.bf16.mxu0 %v5933_v61 }
 0x15e   : > { %v6721_v14 = vadd.f32 %v1842_v9, %v1830_v10  ;;  %v5294_v16 = vadd.f32 %v5293_v13, %v5292_v11  ;;  %v5295_v17 = vpop.f32.mrb[22].mxu0  ;;  %v1852_v18 = vsel %vm1851_vm0, %v6719_v12, 0.0  ;;  %v5321_v19 = vpop.f32.mrb[21].mxu1 }
 0x15f   : > { %v5296_v20 = vpop.f32.mrb[23].mxu0  ;;  %1853 = vadd.xlane.f32.xlu0 %v1852_v18  ;;  %v5322_v22 = vadd.f32 %v5321_v19, %v5320_v15  ;;  %v5323_v23 = vpop.f32.mrb[22].mxu1  ;;  %v4996_v18 = vld [vmem:[%s7578_s30] ss:$0 sm:$0xff] }
 0x160   : > { %v1786_v21 = vadd.f32 %v5294_v16, %v1737_v54  ;;  %v5297_v24 = vadd.f32 %v5296_v20, %v5295_v17  ;;  %v5324_v25 = vpop.f32.mrb[23].mxu1  ;;  %v1855_v30 = vsel %vm1851_vm0, %v6721_v14, 0.0  ;;  %1998 = vmatpush1.bf16.msra.mxu0 %v5931_v62 }
 0x161   : > { %v5325_v29 = vadd.f32 %v5324_v25, %v5323_v23  ;;  %1999 = vmatprep.subr.bf16.mxu0 %v5936_v0 }
 0x162   : > { %v1835_v27 = vadd.f32 %v5322_v22, %v1786_v21  ;;  %v1789_v28 = vadd.f32 %v5297_v24, %v1740_v56  ;;  %v4997_v22 = vld [vmem:[%s7579_s5] ss:$0 sm:$0xff] }
 0x163   : > { %1856 = vadd.xlane.f32.xlu0 %v1855_v30 }
 0x164   : > { %v1838_v32 = vadd.f32 %v5325_v29, %v1789_v28  ;;  %v6733_v33 = vadd.f32 %v1843_v26, %v1835_v27  ;;  %2000 = vmatpush1.bf16.msra.mxu0 %v5934_v63 }
 0x166   : > { %v6735_v34 = vadd.f32 %v1844_v31, %v1838_v32  ;;  %v1858_v35 = vsel %vm1851_vm0, %v6733_v33, 0.0 }
 0x167   : > { %1859 = vadd.xlane.f32.xlu1 %v1858_v35 }
 0x168   : > { %v1861_v36 = vsel %vm1851_vm0, %v6735_v34, 0.0 }
 0x16b   : > { %1862 = vadd.xlane.f32.xlu1 %v1861_v36 }
 0x1ec   : > { %v1854_v37 = vpop.xlane.xlu0 %1853 }
 0x1ed   : > { %v1865_v38 = vmul.f32 0.015625, %v1854_v37 }
 0x1ef   : > { %v1869_v39 = vsub.f32 %v6719_v12, %v1865_v38  ;;  %v1937_v38 = vlaneseq }
 0x1f0   : > { %v1857_v40 = vpop.xlane.xlu0 %1856 }
 0x1f1   : > { %v1866_v41 = vmul.f32 0.015625, %v1857_v40  ;;  %v1873_v42 = vmul.f32 %v1869_v39, %v1869_v39 }
 0x1f3   : > { %v1870_v43 = vsub.f32 %v6721_v14, %v1866_v41  ;;  %v1877_v44 = vsel %vm1851_vm0, %v1873_v42, 0.0  ;;  %v1935_v41 = vld [vmem:[%s7521_s7] sm:$0x3] }
 0x1f4   : > { %v1860_v45 = vpop.xlane.xlu1 %1859  ;;  %1878 = vadd.xlane.f32.xlu0 %v1877_v44 }
 0x1f5   : > { %v1867_v46 = vmul.f32 0.015625, %v1860_v45  ;;  %v1874_v47 = vmul.f32 %v1870_v43, %v1870_v43 }
 0x1f7   : > { %v1871_v48 = vsub.f32 %v6733_v33, %v1867_v46  ;;  %v1880_v49 = vsel %vm1851_vm0, %v1874_v47, 0.0 }
 0x1f8   : > { %v1863_v50 = vpop.xlane.xlu1 %1862  ;;  %1881 = vadd.xlane.f32.xlu1 %v1880_v49 }
 0x1f9   : > { %v1868_v51 = vmul.f32 0.015625, %v1863_v50  ;;  %v1875_v52 = vmul.f32 %v1871_v48, %v1871_v48 }
 0x1fb   : > { %v1872_v53 = vsub.f32 %v6735_v34, %v1868_v51  ;;  %v1883_v54 = vsel %vm1851_vm0, %v1875_v52, 0.0 }
 0x1fc   : > { %1884 = vadd.xlane.f32.xlu0 %v1883_v54 }
 0x1fd   : > { %v1876_v55 = vmul.f32 %v1872_v53, %v1872_v53 }
 0x1ff   : > { %v1886_v56 = vsel %vm1851_vm0, %v1876_v55, 0.0 }
 0x200   : > { %1887 = vadd.xlane.f32.xlu1 %v1886_v56 }
 0x281   : > { %v1879_v2 = vpop.xlane.xlu0 %1878 }
 0x282   : > { %v1889_v3 = vmul.f32 0.015625, %v1879_v2 }
 0x284   : > { %v1893_v4 = vadd.f32 1e-12, %v1889_v3 }
 0x285   : > { %v1882_v5 = vpop.xlane.xlu1 %1881 }
 0x286   : > { %5985 = vrsqrt.f32 %v1893_v4  ;;  %v1890_v6 = vmul.f32 0.015625, %v1882_v5 }
 0x288   : > { %v1894_v7 = vadd.f32 1e-12, %v1890_v6 }
 0x289   : > { %v1885_v8 = vpop.xlane.xlu0 %1884 }
 0x28a   : > { %5987 = vrsqrt.f32 %v1894_v7  ;;  %v1891_v9 = vmul.f32 0.015625, %v1885_v8 }
 0x28c   : > { %v1895_v10 = vadd.f32 1e-12, %v1891_v9 }
 0x28d   : > { %v1888_v11 = vpop.xlane.xlu1 %1887 }
 0x28e   : > { %5989 = vrsqrt.f32 %v1895_v10  ;;  %v1892_v13 = vmul.f32 0.015625, %v1888_v11 }
 0x290   : > { %v5986_v15 = vpop.eup %5985  ;;  %v1896_v16 = vadd.f32 1e-12, %v1892_v13 }
 0x291   : > { %v1901_v17 = vmul.f32 %v5986_v15, %v1869_v39  ;;  %v6783_v39 = vshrl.u32 %v1937_v38, 7 }
 0x292   : > { %5991 = vrsqrt.f32 %v1896_v16 }
 0x293   : > { %v1911_v20 = vmul.f32 %v4996_v18, %v1901_v17  ;;  %v1939_v40 = vsub.s32 0, %v6783_v39  ;;  %v1943_v42 = vsub.s32 1, %v6783_v39 }
 0x294   : > { %v5988_v19 = vpop.eup %5987 }
 0x295   : > { %v1902_v21 = vmul.f32 %v5988_v19, %v1870_v43  ;;  %v1921_v25 = vadd.f32 %v4997_v22, %v1911_v20  ;;  %v1940_v43 = vrot.slane %v1935_v41, %v1939_v40  ;;  %v1944_v45 = vrot.slane %v1935_v41, %v1943_v42 }
 0x297   : > { %v1912_v23 = vmul.f32 %v4996_v18, %v1902_v21 }
 0x298   : > { %v5990_v24 = vpop.eup %5989 }
 0x299   : > { %v1922_v26 = vadd.f32 %v4997_v22, %v1912_v23  ;;  %v1903_v27 = vmul.f32 %v5990_v24, %v1871_v48 }
 0x29b   : > { %v1925_v28 = vpack.c.bf16 %v1922_v26, %v1921_v25  ;;  %v1913_v31 = vmul.f32 %v4996_v18, %v1903_v27 }
 0x29c   : > { %v5992_v29 = vpop.eup %5991 }
 0x29d   : > { %5006 = vmatmul.mubr.msk.bf16.vlgmr.msra.gmra.mrb[24].mxu0 %vm1851_vm0, %v1925_v28  ;;  %v1904_v30 = vmul.f32 %v5992_v29, %v1872_v53  ;;  %v1923_v35 = vadd.f32 %v4997_v22, %v1913_v31 }
 0x29e   : > { %2035 = vmatprep.mubr.bf16.mxu0 %v6227_v1 }
 0x29f   : > { %v1914_v32 = vmul.f32 %v4996_v18, %v1904_v30 }
 0x2a1   : > { %v1924_v36 = vadd.f32 %v4997_v22, %v1914_v32 }
 0x2a3   : > { %v1926_v37 = vpack.c.bf16 %v1924_v36, %v1923_v35 }
 0x2a5   : > { %5007 = vmatmul.mubr.msk.bf16.gmra.mrb[28].mxu0 %vm1851_vm0, %v1926_v37 }
 0x370   : > { %v2027_v44 = vpop.f32.mrb[24].mxu0 }
 0x371   : > { %v2029_v46 = vpop.f32.mrb[25].mxu0  ;;  %v2028_v48 = vadd.f32 %v2027_v44, %v1940_v43 }
 0x372   : > { %v2031_v47 = vpop.f32.mrb[26].mxu0  ;;  %v2030_v51 = vadd.f32 %v2029_v46, %v1944_v45 }
 0x373   : > { %v2032_v49 = vadd.f32 %v2031_v47, %v1940_v43  ;;  %v2033_v50 = vpop.f32.mrb[27].mxu0 }
 0x374   : > { %v2034_v52 = vadd.f32 %v2033_v50, %v1944_v45 }
 0x375   : > { %v6794_v53 = vpack.c.bf16 %v2032_v49, %v2028_v48 }
 0x376   : > { %v6796_v54 = vpack.c.bf16 %v2034_v52, %v2030_v51 }
 0x377   : > { %2228 = vrot.lane.b32.xlu1 %v6794_v53, %s7555_s23  ;;  %2052 = vrot.lane.b32.xlu0 %v6794_v53, %s7557_s3 }
 0x378   : > { %5443 = vmatprep.mubr.msk.bf16.mxu1 %vm2056_vm1, %v6794_v53  ;;  %v2037_v55 = vpop.f32.mrb[28].mxu0 }
 0x379   : > { %v2039_v56 = vpop.f32.mrb[29].mxu0  ;;  %v2038_v58 = vadd.f32 %v2037_v55, %v1940_v43 }
 0x37a   : > { %v2041_v57 = vpop.f32.mrb[30].mxu0  ;;  %v2040_v61 = vadd.f32 %v2039_v56, %v1944_v45 }
 0x37b   : > { %v2042_v59 = vadd.f32 %v2041_v57, %v1940_v43  ;;  %2224 = vrot.lane.b32.xlu0 %v6794_v53, %s7553_s24  ;;  %v2043_v60 = vpop.f32.mrb[31].mxu0 }
 0x37c   : > { %v2044_v62 = vadd.f32 %v2043_v60, %v1944_v45 }
 0x37d   : > { %v6806_v63 = vpack.c.bf16 %v2042_v59, %v2038_v58 }
 0x37e   : > { %v6808_v0 = vpack.c.bf16 %v2044_v62, %v2040_v61 }
 0x37f   : > { %2226 = vrot.lane.b32.xlu0 %v6806_v63, %s7553_s24  ;;  %2054 = vrot.lane.b32.xlu1 %v6806_v63, %s7557_s3  ;;  %s7585_s3 = smov 16  }
 0x383   : > { %2406 = vrot.lane.b32.xlu0 %v6794_v53, %s7551_s1  ;;  %2230 = vrot.lane.b32.xlu1 %v6806_v63, %s7555_s23 }
 0x387   : > { %2410 = vrot.lane.b32.xlu1 %v6794_v53, %s7549_s25 }
 0x38b   : > { %2412 = vrot.lane.b32.xlu1 %v6806_v63, %s7549_s25 }
 0x38f   : > { %2408 = vrot.lane.b32.xlu1 %v6806_v63, %s7551_s1 }
 0x3e9   : > { %v2229_v2 = vpop.permute.xlu1 %2228  ;;  %v2053_v3 = vpop.permute.xlu0 %2052 }
 0x3ea   : > { %5667 = vmatprep.subr.msk.bf16.mxu1 %vm2056_vm1, %v2053_v3  ;;  %5669 = vmatprep.subr.msk.bf16.mxu0 %vm2056_vm1, %v2229_v2  ;;  %v2064_v4 = vsel %vm2056_vm1, %v2053_v3, 0  ;;  %v2239_v5 = vsel %vm2056_vm1, %v2229_v2, 0 }
 0x3eb   : > { %5440 = vmatpush3.bf16.xpose.msra.mxu1 %v2064_v4  ;;  %5456 = vmatpush3.bf16.xpose.msra.mxu0 %v2239_v5 }
 0x3ed   : > { %v2225_v6 = vpop.permute.xlu0 %2224 }
 0x3ee   : > { %5459 = vmatprep.mubr.msk.bf16.mxu0 %vm2056_vm1, %v2225_v6 }
 0x3f1   : > { %v2055_v7 = vpop.permute.xlu1 %2054  ;;  %v2227_v11 = vpop.permute.xlu0 %2226 }
 0x3f2   : > { %5668 = vmatprep.subr.msk.bf16.mxu1 %vm2056_vm1, %v2055_v7  ;;  %v2067_v8 = vsel %vm2056_vm1, %v2055_v7, 0 }
 0x3f3   : > { %5442 = vmatpush3.bf16.xpose.msra.mxu1 %v2067_v8 }
 0x3f4   : > { %5447 = vmatprep.subr.bf16.mxu1 %v6796_v54 }
 0x3f5   : > { %v2231_v9 = vpop.permute.xlu1 %2230  ;;  %v2407_v16 = vpop.permute.xlu0 %2406 }
 0x3f6   : > { %5670 = vmatprep.subr.msk.bf16.mxu0 %vm2056_vm1, %v2231_v9  ;;  %v2242_v10 = vsel %vm2056_vm1, %v2231_v9, 0 }
 0x3f7   : > { %5458 = vmatpush3.bf16.xpose.msra.mxu0 %v2242_v10 }
 0x3f9   : > { %v2411_v13 = vpop.permute.xlu1 %2410 }
 0x3fa   : > { %5444 = vmatmul.mubr.msk.bf16.vlgmr.msra.gmra.mrb[24].mxu1 %vm2056_vm1, %v6806_v63  ;;  %5671 = vmatprep.subr.msk.bf16.mxu0 %vm2056_vm1, %v2411_v13  ;;  %v2421_v15 = vsel %vm2056_vm1, %v2411_v13, 0 }
 0x3fb   : > { %5448 = vmatpush3.bf16.msra.mxu1 %v6796_v54 }
 0x3fc   : > { %5449 = vmatprep.subr.bf16.mxu1 %v6808_v0 }
 0x3fd   : > { %v2413_v17 = vpop.permute.xlu1 %2412 }
 0x3fe   : > { %5460 = vmatmul.mubr.msk.bf16.vlgmr.msra.gmra.mrb[32].mxu0 %vm2056_vm1, %v2227_v11  ;;  %v2424_v18 = vsel %vm2056_vm1, %v2413_v17, 0 }
 0x3ff   : > { %5450 = vmatpush3.bf16.msra.mxu1 %v6808_v0  ;;  %5472 = vmatpush3.bf16.xpose.msra.mxu0 %v2421_v15 }
 0x400   : > { %5475 = vmatprep.mubr.msk.bf16.mxu0 %vm2056_vm1, %v2407_v16  ;;  %5672 = vmatprep.subr.msk.bf16.mxu0 %vm2056_vm1, %v2413_v17 }
 0x401   : > { %v2409_v19 = vpop.permute.xlu1 %2408 }
 0x407   : > { %5474 = vmatpush3.bf16.xpose.msra.mxu0 %v2424_v18 }
 0x40e   : > { %5476 = vmatmul.mubr.msk.bf16.vlgmr.msra.gmra.mrb[36].mxu0 %vm2056_vm1, %v2409_v19 }
 0x4cd   : > { %v5445_v20 = vpop.f32.mrb[24].mxu1 }
 0x4ce   : > { %v2120_v21 = vmul.f32 0.25, %v5445_v20  ;;  %v2103_v22 = vpop.f32.mrb[25].mxu1 }
 0x4cf   : > { %v5446_v23 = vpop.f32.mrb[26].mxu1  ;;  %v6846_v24 = vmul.f32 0.25, %v2103_v22 }
 0x4d0   : > { %v2106_v25 = vpop.f32.mrb[27].mxu1  ;;  %v2129_v26 = vsel %vm2122_vm2, %v2120_v21, -inf  ;;  %v2121_v32 = vmul.f32 0.25, %v5446_v23 }
 0x4d1   : > { %v2119_v27 = vmul.f32 0.25, %v2106_v25  ;;  %2130 = vmax.xlane.f32.xlu0 %v2129_v26  ;;  %v5461_v28 = vpop.f32.mrb[32].mxu0  ;;  %v2123_v37 = vsel %vm2122_vm2, %v6846_v24, -inf }
 0x4d2   : > { %v2278_v29 = vpop.f32.mrb[33].mxu0  ;;  %v2132_v44 = vsel %vm2122_vm2, %v2121_v32, -inf  ;;  %v2295_v46 = vmul.f32 0.25, %v5461_v28 }
 0x4d3   : > { %v5462_v30 = vpop.f32.mrb[34].mxu0  ;;  %v2126_v31 = vsel %vm2122_vm2, %v2119_v27, -inf  ;;  %v2293_v43 = vmul.f32 0.25, %v2278_v29 }
 0x4d4   : > { %v2296_v35 = vmul.f32 0.25, %v5462_v30  ;;  %2127 = vmax.xlane.f32.xlu1 %v2126_v31  ;;  %v2281_v36 = vpop.f32.mrb[35].mxu0  ;;  %v2303_v48 = vsel %vm2122_vm2, %v2295_v46, -inf }
 0x4d5   : > { %2124 = vmax.xlane.f32.xlu0 %v2123_v37  ;;  %v2294_v41 = vmul.f32 0.25, %v2281_v36  ;;  %v2297_v47 = vsel %vm2122_vm2, %v2293_v43, -inf }
 0x4d6   : > { %v2306_v38 = vsel %vm2122_vm2, %v2296_v35, -inf }
 0x4d7   : > { %v2300_v45 = vsel %vm2122_vm2, %v2294_v41, -inf }
 0x4d8   : > { %2307 = vmax.xlane.f32.xlu1 %v2306_v38 }
 0x4d9   : > { %2133 = vmax.xlane.f32.xlu0 %v2132_v44 }
 0x4dc   : > { %2301 = vmax.xlane.f32.xlu1 %v2300_v45 }
 0x4dd   : > { %2298 = vmax.xlane.f32.xlu0 %v2297_v47 }
 0x4e1   : > { %2304 = vmax.xlane.f32.xlu0 %v2303_v48  ;;  %v5477_v49 = vpop.f32.mrb[36].mxu0 }
 0x4e2   : > { %v2460_v50 = vpop.f32.mrb[37].mxu0  ;;  %v6859_v57 = vmul.f32 0.25, %v5477_v49 }
 0x4e3   : > { %v6857_v51 = vmul.f32 0.25, %v2460_v50  ;;  %v5478_v52 = vpop.f32.mrb[38].mxu0 }
 0x4e4   : > { %v2478_v55 = vmul.f32 0.25, %v5478_v52  ;;  %v2463_v56 = vpop.f32.mrb[39].mxu0  ;;  %v2485_v61 = vsel %vm2122_vm2, %v6859_v57, -inf }
 0x4e5   : > { %v2479_v58 = vsel %vm2122_vm2, %v6857_v51, -inf  ;;  %v2476_v59 = vmul.f32 0.25, %v2463_v56 }
 0x4e6   : > { %2480 = vmax.xlane.f32.xlu0 %v2479_v58  ;;  %v2488_v60 = vsel %vm2122_vm2, %v2478_v55, -inf }
 0x4e7   : > { %2489 = vmax.xlane.f32.xlu1 %v2488_v60  ;;  %v2482_v62 = vsel %vm2122_vm2, %v2476_v59, -inf }
 0x4ea   : > { %2486 = vmax.xlane.f32.xlu0 %v2485_v61 }
 0x4eb   : > { %2483 = vmax.xlane.f32.xlu1 %v2482_v62 }
 0x4fc   : > { %2347 = vrot.lane.b32.xlu1 %v6808_v0, %s7553_s24 }
 0x500   : > { %2525 = vrot.lane.b32.xlu1 %v6796_v54, %s7551_s1 }
 0x55e   : > { %v2131_v2 = vpop.xlane.xlu0 %2130 }
 0x55f   : > { %v2137_v3 = vsub.f32 %v2120_v21, %v2131_v2 }
 0x561   : > { %v2143_v4 = vmul.f32 1.442695, %v2137_v3  ;;  %v2128_v5 = vpop.xlane.xlu1 %2127 }
 0x562   : > { %v2125_v6 = vpop.xlane.xlu0 %2124  ;;  %v2136_v11 = vsub.f32 %v2119_v27, %v2128_v5 }
 0x563   : > { %5993 = vpow2.f32 %v2143_v4  ;;  %v2135_v18 = vsub.f32 %v6846_v24, %v2125_v6 }
 0x564   : > { %v2141_v20 = vmul.f32 1.442695, %v2136_v11 }
 0x565   : > { %v2308_v7 = vpop.xlane.xlu1 %2307  ;;  %v2139_v26 = vmul.f32 1.442695, %v2135_v18 }
 0x566   : > { %v2312_v8 = vsub.f32 %v2296_v35, %v2308_v7  ;;  %v2134_v9 = vpop.xlane.xlu0 %2133 }
 0x567   : > { %v2138_v10 = vsub.f32 %v2121_v32, %v2134_v9 }
 0x568   : > { %v2319_v13 = vmul.f32 1.442695, %v2312_v8 }
 0x569   : > { %v2145_v15 = vmul.f32 1.442695, %v2138_v10  ;;  %v2302_v16 = vpop.xlane.xlu1 %2301 }
 0x56a   : > { %v2299_v17 = vpop.xlane.xlu0 %2298  ;;  %v2310_v21 = vsub.f32 %v2294_v41, %v2302_v16 }
 0x56b   : > { %5995 = vpow2.f32 %v2145_v15  ;;  %v2309_v27 = vsub.f32 %v2293_v43, %v2299_v17 }
 0x56c   : > { %5997 = vpow2.f32 %v2319_v13  ;;  %v2315_v28 = vmul.f32 1.442695, %v2310_v21 }
 0x56d   : > { %v6872_v19 = vpop.eup %5993  ;;  %5999 = vpow2.f32 %v2141_v20  ;;  %v2313_v30 = vmul.f32 1.442695, %v2309_v27 }
 0x56e   : > { %v2305_v22 = vpop.xlane.xlu0 %2304  ;;  %v2153_v23 = vsel %vm2122_vm2, %v6872_v19, 0.0 }
 0x56f   : > { %v2311_v25 = vsub.f32 %v2295_v46, %v2305_v22  ;;  %2154 = vadd.xlane.f32.xlu0 %v2153_v23 }
 0x571   : > { %v2317_v29 = vmul.f32 1.442695, %v2311_v25 }
 0x573   : > { %6001 = vpow2.f32 %v2317_v29  ;;  %v2481_v2 = vpop.xlane.xlu0 %2480 }
 0x574   : > { %6003 = vpow2.f32 %v2139_v26  ;;  %v2490_v24 = vpop.xlane.xlu1 %2489  ;;  %v2491_v5 = vsub.f32 %v6857_v51, %v2481_v2 }
 0x575   : > { %v6876_v31 = vpop.eup %5995  ;;  %6005 = vpow2.f32 %v2315_v28  ;;  %v2494_v32 = vsub.f32 %v2478_v55, %v2490_v24 }
 0x576   : > { %v2156_v35 = vsel %vm2122_vm2, %v6876_v31, 0.0  ;;  %v6880_v36 = vpop.eup %5997  ;;  %6007 = vpow2.f32 %v2313_v30  ;;  %v2495_v7 = vmul.f32 1.442695, %v2491_v5 }
 0x577   : > { %v2501_v37 = vmul.f32 1.442695, %v2494_v32  ;;  %2157 = vadd.xlane.f32.xlu1 %v2156_v35  ;;  %v2330_v43 = vsel %vm2122_vm2, %v6880_v36, 0.0  ;;  %v6884_v44 = vpop.eup %5999  ;;  %v2487_v3 = vpop.xlane.xlu0 %2486 }
 0x578   : > { %v2484_v38 = vpop.xlane.xlu1 %2483  ;;  %v2150_v48 = vsel %vm2122_vm2, %v6884_v44, 0.0  ;;  %v2493_v4 = vsub.f32 %v6859_v57, %v2487_v3 }
 0x579   : > { %6009 = vpow2.f32 %v2501_v37  ;;  %v2492_v41 = vsub.f32 %v2476_v59, %v2484_v38 }
 0x57a   : > { %v2499_v6 = vmul.f32 1.442695, %v2493_v4 }
 0x57b   : > { %v2497_v45 = vmul.f32 1.442695, %v2492_v41  ;;  %2331 = vadd.xlane.f32.xlu1 %v2330_v43 }
 0x57d   : > { %v6886_v46 = vpop.eup %6001  ;;  %6011 = vpow2.f32 %v2497_v45 }
 0x57e   : > { %v6888_v47 = vpop.eup %6003  ;;  %v2327_v49 = vsel %vm2122_vm2, %v6886_v46, 0.0  ;;  %6013 = vpow2.f32 %v2499_v6 }
 0x57f   : > { %v6894_v50 = vpop.eup %6005  ;;  %2151 = vadd.xlane.f32.xlu1 %v2150_v48  ;;  %2328 = vadd.xlane.f32.xlu0 %v2327_v49  ;;  %v2147_v56 = vsel %vm2122_vm2, %v6888_v47, 0.0  ;;  %6015 = vpow2.f32 %v2495_v7 }
 0x580   : > { %v6896_v52 = vpop.eup %6007  ;;  %v2324_v55 = vsel %vm2122_vm2, %v6894_v50, 0.0 }
 0x581   : > { %v2321_v60 = vsel %vm2122_vm2, %v6896_v52, 0.0 }
 0x583   : > { %v6902_v58 = vpop.eup %6009  ;;  %2325 = vadd.xlane.f32.xlu1 %v2324_v55  ;;  %2148 = vadd.xlane.f32.xlu0 %v2147_v56 }
 0x584   : > { %v2512_v59 = vsel %vm2122_vm2, %v6902_v58, 0.0 }
 0x587   : > { %v6908_v61 = vpop.eup %6011  ;;  %2513 = vadd.xlane.f32.xlu1 %v2512_v59  ;;  %2322 = vadd.xlane.f32.xlu0 %v2321_v60 }
 0x588   : > { %v2506_v62 = vsel %vm2122_vm2, %v6908_v61, 0.0  ;;  %v6922_v8 = vpop.eup %6013 }
 0x589   : > { %v2509_v9 = vsel %vm2122_vm2, %v6922_v8, 0.0  ;;  %v6926_v10 = vpop.eup %6015 }
 0x58a   : > { %v2503_v11 = vsel %vm2122_vm2, %v6926_v10, 0.0 }
 0x58b   : > { %2507 = vadd.xlane.f32.xlu1 %v2506_v62 }
 0x59c   : > { %2527 = vrot.lane.b32.xlu1 %v6808_v0, %s7551_s1 }
 0x59d   : > { %2345 = vrot.lane.b32.xlu0 %v6796_v54, %s7553_s24  ;;  %s7586_s24 = smov 80  }
 0x5a0   : > { %2592 = vrot.lane.b32.xlu1 %v6806_v63, %s7547_s29 }
 0x5a4   : > { %2588 = vrot.lane.b32.xlu1 %v6806_v63, %s7545_s0  ;;  %v2348_v63 = vpop.permute.xlu1 %2347 }
 0x5a8   : > { %v2526_v51 = vpop.permute.xlu1 %2525 }
 0x5bc   : > { %2510 = vadd.xlane.f32.xlu0 %v2509_v9 }
 0x5c0   : > { %2504 = vadd.xlane.f32.xlu0 %v2503_v11 }
 0x5d6   : > { %2590 = vrot.lane.b32.xlu0 %v6794_v53, %s7547_s29 }
 0x5da   : > { %2586 = vrot.lane.b32.xlu0 %v6794_v53, %s7545_s0 }
 0x5fc   : > { %v2155_v13 = vpop.xlane.xlu0 %2154 }
 0x604   : > { %v2158_v57 = vpop.xlane.xlu1 %2157 }
 0x605   : > { %6017 = vrcp.f32 %v2158_v57 }
 0x608   : > { %v2332_v15 = vpop.xlane.xlu1 %2331 }
 0x60c   : > { %v2152_v16 = vpop.xlane.xlu1 %2151  ;;  %v2329_v17 = vpop.xlane.xlu0 %2328 }
 0x60d   : > { %6019 = vrcp.f32 %v2152_v16 }
 0x60e   : > { %6021 = vrcp.f32 %v2155_v13 }
 0x60f   : > { %v6018_v23 = vpop.eup %6017 }
 0x610   : > { %v2149_v18 = vpop.xlane.xlu0 %2148  ;;  %v2326_v20 = vpop.xlane.xlu1 %2325  ;;  %v2166_v27 = vmul.f32 %v6018_v23, %v6876_v31 }
 0x611   : > { %6023 = vrcp.f32 %v2149_v18 }
 0x612   : > { %6025 = vrcp.f32 %v2326_v20 }
 0x614   : > { %v2323_v21 = vpop.xlane.xlu0 %2322  ;;  %v2514_v32 = vpop.xlane.xlu1 %2513 }
 0x615   : > { %6027 = vrcp.f32 %v2323_v21 }
 0x616   : > { %6029 = vrcp.f32 %v2329_v17 }
 0x617   : > { %6031 = vrcp.f32 %v2332_v15  ;;  %v6020_v53 = vpop.eup %6019 }
 0x618   : > { %v2346_v22 = vpop.permute.xlu0 %2345  ;;  %v6022_v25 = vpop.eup %6021  ;;  %v2164_v29 = vmul.f32 %v6020_v53, %v6884_v44 }
 0x619   : > { %5463 = vmatprep.subr.bf16.mxu1 %v2346_v22  ;;  %v2165_v24 = vmul.f32 %v6022_v25, %v6872_v19  ;;  %v2508_v19 = vpop.xlane.xlu1 %2507 }
 0x61b   : > { %v6024_v26 = vpop.eup %6023  ;;  %v2168_v38 = vpack.c.bf16 %v2166_v27, %v2165_v24 }
 0x61c   : > { %v2163_v28 = vmul.f32 %v6024_v26, %v6888_v47  ;;  %v6026_v30 = vpop.eup %6025 }
 0x61d   : > { %v2338_v45 = vmul.f32 %v6026_v30, %v6894_v50 }
 0x61e   : > { %v2167_v35 = vpack.c.bf16 %v2164_v29, %v2163_v28 }
 0x61f   : > { %v6028_v37 = vpop.eup %6027 }
 0x620   : > { %v6030_v41 = vpop.eup %6029  ;;  %5451 = vmatprep.mubr.msk.bf16.mxu1 %vm2122_vm2, %v2167_v35  ;;  %v2337_v43 = vmul.f32 %v6028_v37, %v6896_v52  ;;  %v2528_v52 = vpop.permute.xlu1 %2527 }
 0x621   : > { %5452 = vmatmul.mubr.msk.bf16.vlgmr.msra.gmra.mrb[28].mxu1 %vm2122_vm2, %v2168_v38  ;;  %v6032_v31 = vpop.eup %6031  ;;  %v2339_v44 = vmul.f32 %v6030_v41, %v6886_v46 }
 0x622   : > { %5464 = vmatpush3.bf16.msra.mxu1 %v2346_v22  ;;  %v2341_v47 = vpack.c.bf16 %v2338_v45, %v2337_v43  ;;  %v2340_v48 = vmul.f32 %v6032_v31, %v6880_v36 }
 0x623   : > { %5465 = vmatprep.subr.bf16.mxu1 %v2348_v63 }
 0x624   : > { %5467 = vmatprep.mubr.msk.bf16.mxu1 %vm2122_vm2, %v2341_v47  ;;  %v2342_v49 = vpack.c.bf16 %v2340_v48, %v2339_v44  ;;  %v2593_v11 = vpop.permute.xlu1 %2592 }
 0x626   : > { %5466 = vmatpush3.bf16.msra.mxu1 %v2348_v63 }
 0x627   : > { %5479 = vmatprep.subr.bf16.mxu1 %v2526_v51 }
 0x629   : > { %5468 = vmatmul.mubr.msk.bf16.vlgmr.msra.gmra.mrb[32].mxu1 %vm2122_vm2, %v2342_v49 }
 0x62a   : > { %5480 = vmatpush3.bf16.msra.mxu1 %v2526_v51 }
 0x62b   : > { %5481 = vmatprep.subr.bf16.mxu1 %v2528_v52 }
 0x62e   : > { %5482 = vmatpush3.bf16.msra.mxu1 %v2528_v52 }
 0x649   : > { %v2511_v50 = vpop.xlane.xlu0 %2510 }
 0x64a   : > { %6033 = vrcp.f32 %v2511_v50 }
 0x64b   : > { %6035 = vrcp.f32 %v2508_v19 }
 0x64c   : > { %6037 = vrcp.f32 %v2514_v32 }
 0x64d   : > { %v2505_v46 = vpop.xlane.xlu0 %2504 }
 0x64e   : > { %6039 = vrcp.f32 %v2505_v46 }
 0x651   : > { %v2591_v55 = vpop.permute.xlu0 %2590 }
 0x652   : > { %5673 = vmatprep.subr.msk.bf16.mxu1 %vm2056_vm1, %v2591_v55  ;;  %v2601_v9 = vsel %vm2056_vm1, %v2591_v55, 0 }
 0x654   : > { %v6034_v56 = vpop.eup %6033 }
 0x655   : > { %v6036_v36 = vpop.eup %6035  ;;  %v2521_v62 = vmul.f32 %v6034_v56, %v6922_v8  ;;  %v2587_v7 = vpop.permute.xlu0 %2586  ;;  %v2604_v8 = vsel %vm2056_vm1, %v2593_v11, 0 }
 0x656   : > { %v6038_v59 = vpop.eup %6037  ;;  %v2520_v3 = vmul.f32 %v6036_v36, %v6908_v61  ;;  %v2589_v61 = vpop.permute.xlu1 %2588 }
 0x657   : > { %v2522_v4 = vmul.f32 %v6038_v59, %v6902_v58 }
 0x658   : > { %v6040_v60 = vpop.eup %6039 }
 0x659   : > { %v2519_v2 = vmul.f32 %v6040_v60, %v6926_v10  ;;  %v2524_v6 = vpack.c.bf16 %v2522_v4, %v2521_v62 }
 0x65b   : > { %v2523_v5 = vpack.c.bf16 %v2520_v3, %v2519_v2 }
 0x65d   : > { %5483 = vmatprep.mubr.msk.bf16.mxu1 %vm2122_vm2, %v2523_v5 }
 0x65e   : > { %5484 = vmatmul.mubr.msk.bf16.vlgmr.msra.gmra.mrb[36].mxu1 %vm2122_vm2, %v2524_v6 }
 0x65f   : > { %5488 = vmatpush3.bf16.xpose.msra.mxu1 %v2601_v9  ;;  %5491 = vmatprep.mubr.msk.bf16.mxu1 %vm2056_vm1, %v2587_v7 }
 0x660   : > { %5674 = vmatprep.subr.msk.bf16.mxu1 %vm2056_vm1, %v2593_v11 }
 0x667   : > { %5490 = vmatpush3.bf16.xpose.msra.mxu1 %v2604_v8 }
 0x66e   : > { %5492 = vmatmul.mubr.msk.bf16.vlgmr.msra.gmra.mrb[40].mxu1 %vm2056_vm1, %v2589_v61 }
 0x6f4   : > { %v6958_v58 = vpop.f32.mrb[28].mxu1 }
 0x6f5   : > { %v6960_v10 = vpop.f32.mrb[29].mxu1 }
 0x6f6   : > { %v6962_v63 = vpop.f32.mrb[30].mxu1 }
 0x6f7   : > { %v6964_v51 = vpop.f32.mrb[31].mxu1 }
 0x6fc   : > { %v5469_v57 = vpop.f32.mrb[32].mxu1 }
 0x6fd   : > { %v2391_v13 = vpop.f32.mrb[33].mxu1 }
 0x6fe   : > { %v5470_v15 = vpop.f32.mrb[34].mxu1 }
 0x6ff   : > { %v5738_v16 = vpack.i.bf16 %v5470_v15, %v5469_v57  ;;  %v2394_v17 = vpop.f32.mrb[35].mxu1 }
 0x700   : > { %v5733_v18 = vpack.i.bf16 %v2394_v17, %v2391_v13 }
 0x731   : > { %v5485_v20 = vpop.f32.mrb[36].mxu1 }
 0x732   : > { %v2571_v21 = vpop.f32.mrb[37].mxu1 }
 0x733   : > { %v5486_v22 = vpop.f32.mrb[38].mxu1 }
 0x734   : > { %v5748_v23 = vpack.i.bf16 %v5486_v22, %v5485_v20  ;;  %v2574_v53 = vpop.f32.mrb[39].mxu1  ;;  %v5937_v22 = vld [vmem:[%s7522_s8] sm:$0xff]  }
 0x735   : > { %v5743_v25 = vpack.i.bf16 %v2574_v53, %v2571_v21  ;;  %5503 = vmatprep.subr.bf16.mxu0 %v5937_v22  ;;  %v5939_v53 = vld [vmem:[%s7522_s8 + $0x10] sm:$0xff]  }
 0x736   : > { %5504 = vmatpush3.bf16.msra.mxu0 %v5937_v22 }
 0x741   : > { %v5493_v26 = vpop.f32.mrb[40].mxu1 }
 0x742   : > { %v2640_v27 = vpop.f32.mrb[41].mxu1  ;;  %v2657_v24 = vmul.f32 0.25, %v5493_v26 }
 0x743   : > { %v2655_v28 = vmul.f32 0.25, %v2640_v27  ;;  %v5494_v29 = vpop.f32.mrb[42].mxu1 }
 0x744   : > { %v2643_v30 = vpop.f32.mrb[43].mxu1  ;;  %v2658_v38 = vmul.f32 0.25, %v5494_v29  ;;  %v2665_v41 = vsel %vm2122_vm2, %v2657_v24, -inf }
 0x745   : > { %v2656_v32 = vmul.f32 0.25, %v2643_v30  ;;  %v2659_v35 = vsel %vm2122_vm2, %v2655_v28, -inf }
 0x746   : > { %2660 = vmax.xlane.f32.xlu0 %v2659_v35  ;;  %v2668_v43 = vsel %vm2122_vm2, %v2658_v38, -inf }
 0x747   : > { %v2662_v37 = vsel %vm2122_vm2, %v2656_v32, -inf }
 0x748   : > { %2663 = vmax.xlane.f32.xlu1 %v2662_v37 }
 0x74a   : > { %2666 = vmax.xlane.f32.xlu0 %v2665_v41 }
 0x74e   : > { %2669 = vmax.xlane.f32.xlu0 %v2668_v43 }
 0x7d3   : > { %v2661_v45 = vpop.xlane.xlu0 %2660 }
 0x7d4   : > { %v2671_v31 = vsub.f32 %v2655_v28, %v2661_v45 }
 0x7d5   : > { %v2664_v47 = vpop.xlane.xlu1 %2663 }
 0x7d6   : > { %v2675_v48 = vmul.f32 1.442695, %v2671_v31  ;;  %v2672_v49 = vsub.f32 %v2656_v32, %v2664_v47 }
 0x7d7   : > { %v2667_v44 = vpop.xlane.xlu0 %2666 }
 0x7d8   : > { %v2673_v19 = vsub.f32 %v2657_v24, %v2667_v44  ;;  %v2677_v55 = vmul.f32 1.442695, %v2672_v49 }
 0x7da   : > { %v2679_v52 = vmul.f32 1.442695, %v2673_v19 }
 0x7db   : > { %v2670_v50 = vpop.xlane.xlu0 %2669 }
 0x7dc   : > { %6041 = vpow2.f32 %v2679_v52  ;;  %v2674_v46 = vsub.f32 %v2658_v38, %v2670_v50 }
 0x7dd   : > { %6043 = vpow2.f32 %v2675_v48 }
 0x7de   : > { %v2681_v56 = vmul.f32 1.442695, %v2674_v46 }
 0x7e0   : > { %6045 = vpow2.f32 %v2681_v56 }
 0x7e1   : > { %6047 = vpow2.f32 %v2677_v55 }
 0x7e6   : > { %v6042_v36 = vpop.eup %6041 }
 0x7e7   : > { %v2689_v59 = vsel %vm2122_vm2, %v6042_v36, 0.0  ;;  %v6044_v60 = vpop.eup %6043 }
 0x7e8   : > { %2690 = vadd.xlane.f32.xlu0 %v2689_v59  ;;  %v2683_v2 = vsel %vm2122_vm2, %v6044_v60, 0.0 }
 0x7ea   : > { %v6046_v62 = vpop.eup %6045 }
 0x7eb   : > { %v2692_v3 = vsel %vm2122_vm2, %v6046_v62, 0.0  ;;  %v6048_v4 = vpop.eup %6047 }
 0x7ec   : > { %2684 = vadd.xlane.f32.xlu0 %v2683_v2  ;;  %2693 = vadd.xlane.f32.xlu1 %v2692_v3  ;;  %v2686_v5 = vsel %vm2122_vm2, %v6048_v4, 0.0 }
 0x7f0   : > { %2687 = vadd.xlane.f32.xlu1 %v2686_v5 }
 0x801   : > { %2707 = vrot.lane.b32.xlu1 %v6808_v0, %s7545_s0 }
 0x802   : > { %2705 = vrot.lane.b32.xlu0 %v6796_v54, %s7545_s0  ;;  %s7580_s0 = smov 64  }
 0x805   : > { %5734 = vrot.lane.b32.xlu1 %v5733_v18, %s7547_s29 }
 0x806   : > { %5744 = vrot.lane.b32.xlu0 %v5743_v25, %s7549_s25  ;;  %v5940_v25 = vld [vmem:[%s7522_s8 + $0x18] sm:$0xff]  }
 0x809   : > { %5739 = vrot.lane.b32.xlu1 %v5738_v16, %s7547_s29  ;;  %s7587_s29 = sld [smem:[#allocation17_spill]] }
 0x80d   : > { %5749 = vrot.lane.b32.xlu1 %v5748_v23, %s7549_s25  ;;  %v5938_v23 = vld [vmem:[%s7522_s8 + $0x8] sm:$0xff]  }
 0x80e   : > { %5505 = vmatprep.subr.bf16.mxu0 %v5938_v23 }
 0x80f   : > { %5506 = vmatpush3.bf16.msra.mxu0 %v5938_v23 }
 0x810   : > { %5507 = vmatprep.subr.bf16.mxu0 %v5939_v53 }
 0x813   : > { %5508 = vmatpush3.bf16.msra.mxu0 %v5939_v53 }
 0x814   : > { %5509 = vmatprep.subr.bf16.mxu0 %v5940_v25 }
 0x817   : > { %5510 = vmatpush3.bf16.msra.mxu0 %v5940_v25 }
 0x875   : > { %v2691_v6 = vpop.xlane.xlu0 %2690 }
 0x879   : > { %v2685_v7 = vpop.xlane.xlu0 %2684  ;;  %v2694_v9 = vpop.xlane.xlu1 %2693 }
 0x87a   : > { %6049 = vrcp.f32 %v2694_v9 }
 0x87b   : > { %6051 = vrcp.f32 %v2685_v7 }
 0x87c   : > { %6053 = vrcp.f32 %v2691_v6 }
 0x87d   : > { %v2706_v11 = vpop.permute.xlu0 %2705  ;;  %v2688_v8 = vpop.xlane.xlu1 %2687 }
 0x87e   : > { %6055 = vrcp.f32 %v2688_v8  ;;  %5495 = vmatprep.subr.bf16.mxu1 %v2706_v11 }
 0x87f   : > { %5496 = vmatpush3.bf16.msra.mxu1 %v2706_v11  ;;  %v5030_v11 = vld [vmem:[%s7523_s9] ss:$0 sm:$0xff] }
 0x881   : > { %v2708_v54 = vpop.permute.xlu1 %2707  ;;  %v5745_v38 = vpop.permute.xlu0 %5744 }
 0x882   : > { %5497 = vmatprep.subr.bf16.mxu1 %v2708_v54  ;;  %v5747_v19 = vunpack.i.h.bf16 %v5745_v38  ;;  %v5746_v48 = vunpack.i.l.bf16 %v5745_v38 }
 0x883   : > { %5498 = vmatpush3.bf16.msra.mxu1 %v2708_v54 }
 0x884   : > { %v6050_v0 = vpop.eup %6049 }
 0x885   : > { %v6052_v61 = vpop.eup %6051  ;;  %v2702_v15 = vmul.f32 %v6050_v0, %v6046_v62  ;;  %v5735_v32 = vpop.permute.xlu1 %5734 }
 0x886   : > { %v6054_v57 = vpop.eup %6053  ;;  %v2699_v16 = vmul.f32 %v6052_v61, %v6044_v60  ;;  %v5737_v41 = vunpack.i.h.bf16 %v5735_v32  ;;  %v5736_v43 = vunpack.i.l.bf16 %v5735_v32 }
 0x887   : > { %v2701_v18 = vmul.f32 %v6054_v57, %v6042_v36 }
 0x888   : > { %v6056_v13 = vpop.eup %6055  ;;  %v2815_v49 = vsel %vm2056_vm1, %v6964_v51, %v5737_v41  ;;  %v2814_v52 = vsel %vm2056_vm1, %v6960_v10, %v5736_v43 }
 0x889   : > { %v2700_v17 = vmul.f32 %v6056_v13, %v6048_v4  ;;  %v2704_v21 = vpack.c.bf16 %v2702_v15, %v2701_v18  ;;  %v5740_v35 = vpop.permute.xlu1 %5739  ;;  %v2818_v4 = vsel %vm2122_vm2, %v2814_v52, %v5746_v48  ;;  %v5943_v48 = vld [vmem:[%s7526_s12 + $0x10] sm:$0xff]  }
 0x88a   : > { %v5742_v45 = vunpack.i.h.bf16 %v5740_v35  ;;  %v5741_v31 = vunpack.i.l.bf16 %v5740_v35 }
 0x88b   : > { %v2703_v20 = vpack.c.bf16 %v2700_v17, %v2699_v16 }
 0x88c   : > { %v2817_v46 = vsel %vm2056_vm1, %v6962_v63, %v5742_v45  ;;  %v2816_v55 = vsel %vm2056_vm1, %v6958_v58, %v5741_v31  ;;  %v2819_v63 = vsel %vm2122_vm2, %v2815_v49, %v5747_v19  ;;  %v5942_v19 = vld [vmem:[%s7526_s12 + $0x8] sm:$0xff]   ;;  %v5944_v49 = vld [vmem:[%s7526_s12 + $0x18] sm:$0xff]  }
 0x88d   : > { %5499 = vmatprep.mubr.msk.bf16.mxu1 %vm2122_vm2, %v2703_v20  ;;  %v5750_v37 = vpop.permute.xlu1 %5749 }
 0x88e   : > { %5500 = vmatmul.mubr.msk.bf16.vlgmr.msra.gmra.mrb[44].mxu1 %vm2122_vm2, %v2704_v21  ;;  %v5752_v47 = vunpack.i.h.bf16 %v5750_v37  ;;  %v5751_v44 = vunpack.i.l.bf16 %v5750_v37 }
 0x890   : > { %v2820_v60 = vsel %vm2122_vm2, %v2816_v55, %v5751_v44  ;;  %v2821_v62 = vsel %vm2122_vm2, %v2817_v46, %v5752_v47  ;;  %v5941_v44 = vld [vmem:[%s7526_s12] sm:$0xff]  }
 0x891   : > { %5515 = vmatprep.subr.bf16.mxu1 %v5941_v44 }
 0x892   : > { %5516 = vmatpush3.bf16.msra.mxu1 %v5941_v44 }
 0x893   : > { %5517 = vmatprep.subr.bf16.mxu1 %v5942_v19 }
 0x896   : > { %5518 = vmatpush3.bf16.msra.mxu1 %v5942_v19 }
 0x897   : > { %5519 = vmatprep.subr.bf16.mxu1 %v5943_v48 }
 0x89a   : > { %5520 = vmatpush3.bf16.msra.mxu1 %v5943_v48 }
 0x89b   : > { %5521 = vmatprep.subr.bf16.mxu1 %v5944_v49 }
 0x89e   : > { %5522 = vmatpush3.bf16.msra.mxu1 %v5944_v49 }
 0x961   : > { %v5501_v26 = vpop.f32.mrb[44].mxu1 }
 0x962   : > { %v2751_v27 = vpop.f32.mrb[45].mxu1 }
 0x963   : > { %v5502_v28 = vpop.f32.mrb[46].mxu1 }
 0x964   : > { %v5758_v29 = vpack.i.bf16 %v5502_v28, %v5501_v26  ;;  %v2754_v30 = vpop.f32.mrb[47].mxu1 }
 0x965   : > { %v5753_v24 = vpack.i.bf16 %v2754_v30, %v2751_v27 }
 0x966   : > { %5759 = vrot.lane.b32.xlu1 %v5758_v29, %s7555_s23 }
 0x967   : > { %5754 = vrot.lane.b32.xlu0 %v5753_v24, %s7555_s23  ;;  %s7584_s23 = smov 32  }
 0x9d8   : > { %v5760_v50 = vpop.permute.xlu1 %5759 }
 0x9d9   : > { %v5762_v56 = vunpack.i.h.bf16 %v5760_v50  ;;  %v5761_v36 = vunpack.i.l.bf16 %v5760_v50  ;;  %v5755_v59 = vpop.permute.xlu0 %5754 }
 0x9da   : > { %v5757_v2 = vunpack.i.h.bf16 %v5755_v59  ;;  %v5756_v51 = vunpack.i.l.bf16 %v5755_v59 }
 0x9db   : > { %v2825_v3 = vsel %vm2822_vm3, %v2820_v60, %v5761_v36  ;;  %v2826_v10 = vsel %vm2822_vm3, %v2821_v62, %v5762_v56 }
 0x9dc   : > { %v2828_v5 = vpack.c.bf16 %v2826_v10, %v2825_v3  ;;  %v2823_v58 = vsel %vm2822_vm3, %v2818_v4, %v5756_v51  ;;  %v2824_v6 = vsel %vm2822_vm3, %v2819_v63, %v5757_v2  ;;  %v5031_v4 = vld [vmem:[%s7524_s10] ss:$0 sm:$0xff] }
 0x9dd   : > { %v2827_v7 = vpack.c.bf16 %v2824_v6, %v2823_v58 }
 0x9df   : > { %5511 = vmatprep.mubr.msk.bf16.mxu0 %vm1851_vm0, %v2827_v7 }
 0x9e0   : > { %5512 = vmatmul.mubr.msk.bf16.vlgmr.msra.gmra.mrb[40].mxu0 %vm1851_vm0, %v2828_v5 }
 0xab3   : > { %v5513_v9 = vpop.f32.mrb[40].mxu0 }
 0xab4   : > { %v2901_v8 = vpop.f32.mrb[41].mxu0  ;;  %v2918_v54 = vadd.f32 %v5513_v9, %v6733_v33  ;;  %v5032_v9 = vld [vmem:[%s7525_s11] ss:$0 sm:$0xff] }
 0xab5   : > { %v2916_v0 = vadd.f32 %v2901_v8, %v6719_v12  ;;  %v5514_v61 = vpop.f32.mrb[42].mxu0 }
 0xab6   : > { %v2904_v57 = vpop.f32.mrb[43].mxu0  ;;  %v7024_v16 = vadd.f32 %v5030_v11, %v2918_v54  ;;  %v2919_v17 = vadd.f32 %v5514_v61, %v6735_v34 }
 0xab7   : > { %v7021_v13 = vadd.f32 %v5030_v11, %v2916_v0  ;;  %v2917_v15 = vadd.f32 %v2904_v57, %v6721_v14 }
 0xab8   : > { %v7033_v12 = vadd.f32 %v5030_v11, %v2919_v17  ;;  %v2939_v21 = vsel %vm1851_vm0, %v7024_v16, 0.0 }
 0xab9   : > { %v7027_v18 = vadd.f32 %v5030_v11, %v2917_v15  ;;  %v2933_v20 = vsel %vm1851_vm0, %v7021_v13, 0.0 }
 0xaba   : > { %2934 = vadd.xlane.f32.xlu0 %v2933_v20  ;;  %v2942_v14 = vsel %vm1851_vm0, %v7033_v12, 0.0 }
 0xabb   : > { %v2936_v33 = vsel %vm1851_vm0, %v7027_v18, 0.0 }
 0xabc   : > { %2937 = vadd.xlane.f32.xlu1 %v2936_v33 }
 0xabe   : > { %2940 = vadd.xlane.f32.xlu0 %v2939_v21 }
 0xac2   : > { %2943 = vadd.xlane.f32.xlu0 %v2942_v14 }
 0xb47   : > { %v2935_v34 = vpop.xlane.xlu0 %2934 }
 0xb48   : > { %v2945_v22 = vmul.f32 0.015625, %v2935_v34  ;;  %v5945_v34 = vld [vmem:[%s7528_s14] sm:$0xff]  }
 0xb49   : > { %v2938_v23 = vpop.xlane.xlu1 %2937  ;;  %5527 = vmatprep.subr.bf16.mxu0 %v5945_v34 }
 0xb4a   : > { %v2949_v53 = vsub.f32 %v7021_v13, %v2945_v22  ;;  %v2946_v25 = vmul.f32 0.015625, %v2938_v23  ;;  %5528 = vmatpush3.bf16.msra.mxu0 %v5945_v34  ;;  %v5946_v22 = vld [vmem:[%s7528_s14 + $0x8] sm:$0xff]   ;;  %v5947_v23 = vld [vmem:[%s7528_s14 + $0x10] sm:$0xff]   ;;  %v5048_v34 = vld [vmem:[%s7529_s15] ss:$0 sm:$0xff] }
 0xb4b   : > { %v2941_v26 = vpop.xlane.xlu0 %2940  ;;  %5529 = vmatprep.subr.bf16.mxu0 %v5946_v22 }
 0xb4c   : > { %v2950_v27 = vsub.f32 %v7027_v18, %v2946_v25  ;;  %v2947_v28 = vmul.f32 0.015625, %v2941_v26  ;;  %v2953_v29 = vmul.f32 %v2949_v53, %v2949_v53  ;;  %v5949_v25 = vld [vmem:[%s7528_s14 + $0x20] sm:$0xff]   ;;  %v5950_v26 = vld [vmem:[%s7528_s14 + $0x28] sm:$0xff]  }
 0xb4e   : > { %v2951_v30 = vsub.f32 %v7024_v16, %v2947_v28  ;;  %v2957_v24 = vsel %vm1851_vm0, %v2953_v29, 0.0  ;;  %v2954_v32 = vmul.f32 %v2950_v27, %v2950_v27  ;;  %5530 = vmatpush3.bf16.msra.mxu0 %v5946_v22  ;;  %v5952_v28 = vld [vmem:[%s7528_s14 + $0x38] sm:$0xff]   ;;  %v5033_v29 = vld [vmem:[%s7527_s13] ss:$0 sm:$0xff] }
 0xb4f   : > { %2958 = vadd.xlane.f32.xlu0 %v2957_v24  ;;  %v2944_v35 = vpop.xlane.xlu0 %2943  ;;  %5531 = vmatprep.subr.bf16.mxu0 %v5947_v23 }
 0xb50   : > { %v2948_v37 = vmul.f32 0.015625, %v2944_v35  ;;  %v2960_v38 = vsel %vm1851_vm0, %v2954_v32, 0.0  ;;  %v2955_v41 = vmul.f32 %v2951_v30, %v2951_v30 }
 0xb51   : > { %2961 = vadd.xlane.f32.xlu1 %v2960_v38 }
 0xb52   : > { %v2952_v43 = vsub.f32 %v7033_v12, %v2948_v37  ;;  %v2963_v45 = vsel %vm1851_vm0, %v2955_v41, 0.0  ;;  %5532 = vmatpush3.bf16.msra.mxu0 %v5947_v23 }
 0xb53   : > { %2964 = vadd.xlane.f32.xlu0 %v2963_v45 }
 0xb54   : > { %v2956_v31 = vmul.f32 %v2952_v43, %v2952_v43 }
 0xb56   : > { %v2966_v47 = vsel %vm1851_vm0, %v2956_v31, 0.0 }
 0xb57   : > { %2967 = vadd.xlane.f32.xlu1 %v2966_v47 }
 0xbdc   : > { %v2959_v52 = vpop.xlane.xlu0 %2958 }
 0xbdd   : > { %v2969_v50 = vmul.f32 0.015625, %v2959_v52 }
 0xbde   : > { %v2962_v46 = vpop.xlane.xlu1 %2961 }
 0xbdf   : > { %v2973_v55 = vadd.f32 1e-12, %v2969_v50  ;;  %v2970_v56 = vmul.f32 0.015625, %v2962_v46 }
 0xbe0   : > { %v2965_v36 = vpop.xlane.xlu0 %2964 }
 0xbe1   : > { %6057 = vrsqrt.f32 %v2973_v55  ;;  %v2974_v59 = vadd.f32 1e-12, %v2970_v56  ;;  %v2971_v60 = vmul.f32 0.015625, %v2965_v36 }
 0xbe3   : > { %6059 = vrsqrt.f32 %v2974_v59  ;;  %v2975_v62 = vadd.f32 1e-12, %v2971_v60 }
 0xbe4   : > { %v2968_v2 = vpop.xlane.xlu1 %2967 }
 0xbe5   : > { %6061 = vrsqrt.f32 %v2975_v62  ;;  %v2972_v51 = vmul.f32 0.015625, %v2968_v2 }
 0xbe7   : > { %v2976_v3 = vadd.f32 1e-12, %v2972_v51 }
 0xbe9   : > { %6063 = vrsqrt.f32 %v2976_v3 }
 0xbeb   : > { %v6058_v10 = vpop.eup %6057 }
 0xbec   : > { %v2981_v63 = vmul.f32 %v6058_v10, %v2949_v53  ;;  %v5948_v53 = vld [vmem:[%s7528_s14 + $0x18] sm:$0xff]  }
 0xbed   : > { %v6060_v5 = vpop.eup %6059  ;;  %5533 = vmatprep.subr.bf16.mxu0 %v5948_v53 }
 0xbee   : > { %v2982_v58 = vmul.f32 %v6060_v5, %v2950_v27  ;;  %v2991_v6 = vmul.f32 %v5031_v4, %v2981_v63  ;;  %5534 = vmatpush3.bf16.msra.mxu0 %v5948_v53  ;;  %v5951_v27 = vld [vmem:[%s7528_s14 + $0x30] sm:$0xff]  }
 0xbef   : > { %v6062_v7 = vpop.eup %6061  ;;  %5535 = vmatprep.subr.bf16.mxu0 %v5949_v25 }
 0xbf0   : > { %v2983_v11 = vmul.f32 %v6062_v7, %v2951_v30  ;;  %v2992_v8 = vmul.f32 %v5031_v4, %v2982_v58  ;;  %v3001_v54 = vadd.f32 %v5032_v9, %v2991_v6 }
 0xbf2   : > { %v3002_v0 = vadd.f32 %v5032_v9, %v2992_v8  ;;  %v2993_v57 = vmul.f32 %v5031_v4, %v2983_v11  ;;  %5536 = vmatpush3.bf16.msra.mxu0 %v5949_v25 }
 0xbf3   : > { %v6064_v61 = vpop.eup %6063  ;;  %5537 = vmatprep.subr.bf16.mxu0 %v5950_v26 }
 0xbf4   : > { %v2984_v15 = vmul.f32 %v6064_v61, %v2952_v43  ;;  %v3005_v17 = vpack.c.bf16 %v3002_v0, %v3001_v54  ;;  %v3003_v33 = vadd.f32 %v5032_v9, %v2993_v57 }
 0xbf6   : > { %v2994_v20 = vmul.f32 %v5031_v4, %v2984_v15  ;;  %5523 = vmatprep.mubr.msk.bf16.mxu1 %vm1851_vm0, %v3005_v17  ;;  %5538 = vmatpush3.bf16.msra.mxu0 %v5950_v26 }
 0xbf7   : > { %5539 = vmatprep.subr.bf16.mxu0 %v5951_v27 }
 0xbf8   : > { %v3004_v21 = vadd.f32 %v5032_v9, %v2994_v20 }
 0xbfa   : > { %v3006_v14 = vpack.c.bf16 %v3004_v21, %v3003_v33  ;;  %5540 = vmatpush3.bf16.msra.mxu0 %v5951_v27 }
 0xbfb   : > { %5541 = vmatprep.subr.bf16.mxu0 %v5952_v28 }
 0xbfc   : > { %5524 = vmatmul.mubr.msk.bf16.vlgmr.msra.gmra.mrb[48].mxu1 %vm1851_vm0, %v3006_v14 }
 0xbfd   : > { %3445 = vmatprep.mubr.bf16.mxu1 %v6227_v1 }
 0xbfe   : > { %5542 = vmatpush3.bf16.msra.mxu0 %v5952_v28 }
 0xccf   : > { %v5525_v30 = vpop.f32.mrb[48].mxu1 }
 0xcd0   : > { %v3095_v24 = vadd.f32 %v5525_v30, %v5033_v29  ;;  %v3086_v32 = vpop.f32.mrb[49].mxu1 }
 0xcd1   : > { %v3087_v35 = vadd.f32 %v5033_v29, %v3086_v32  ;;  %v5526_v37 = vpop.f32.mrb[50].mxu1 }
 0xcd2   : > { %v3103_v38 = vmul.f32 %v3095_v24, %v3095_v24  ;;  %v3098_v41 = vadd.f32 %v5526_v37, %v5033_v29  ;;  %v3089_v43 = vpop.f32.mrb[51].mxu1 }
 0xcd3   : > { %v3101_v45 = vmul.f32 %v3087_v35, %v3087_v35  ;;  %v3090_v31 = vadd.f32 %v5033_v29, %v3089_v43 }
 0xcd4   : > { %v3107_v47 = vmul.f32 %v3103_v38, %v3095_v24  ;;  %v3104_v44 = vmul.f32 %v3098_v41, %v3098_v41 }
 0xcd5   : > { %v3105_v19 = vmul.f32 %v3101_v45, %v3087_v35  ;;  %v3102_v48 = vmul.f32 %v3090_v31, %v3090_v31 }
 0xcd6   : > { %v3111_v49 = vmul.f32 0.044715, %v3107_v47  ;;  %v3108_v52 = vmul.f32 %v3104_v44, %v3098_v41 }
 0xcd7   : > { %v3109_v50 = vmul.f32 0.044715, %v3105_v19  ;;  %v3106_v46 = vmul.f32 %v3102_v48, %v3090_v31 }
 0xcd8   : > { %v3115_v55 = vadd.f32 %v3111_v49, %v3095_v24  ;;  %v3112_v56 = vmul.f32 0.044715, %v3108_v52 }
 0xcd9   : > { %v3113_v36 = vadd.f32 %v3109_v50, %v3087_v35  ;;  %v3110_v59 = vmul.f32 0.044715, %v3106_v46 }
 0xcda   : > { %v3119_v60 = vmul.f32 0.7978846, %v3115_v55  ;;  %v3116_v62 = vadd.f32 %v3112_v56, %v3098_v41 }
 0xcdb   : > { %v3117_v2 = vmul.f32 0.7978846, %v3113_v36  ;;  %v3114_v51 = vadd.f32 %v3110_v59, %v3090_v31 }
 0xcdc   : > { %6065 = vtanh.f32 %v3119_v60  ;;  %v3120_v3 = vmul.f32 0.7978846, %v3116_v62  ;;  %v5955_v62 = vld [vmem:[%s7520_s6 + $0x44] ss:$8 sps:$4 sm:$0xff]  }
 0xcdd   : > { %6067 = vtanh.f32 %v3117_v2  ;;  %v3118_v10 = vmul.f32 0.7978846, %v3114_v51  ;;  %v5953_v2 = vld [vmem:[%s7520_s6 + $0x40] ss:$8 sps:$4 sm:$0xff]   ;;  %3413 = vmatprep.subr.bf16.mxu1 %v5955_v62  ;;  %v5958_v51 = vld [vmem:[%s7520_s6 + $0x54] ss:$8 sps:$4 sm:$0xff]  }
 0xcde   : > { %6069 = vtanh.f32 %v3120_v3  ;;  %3414 = vmatpush1.bf16.msra.mxu1 %v5953_v2  ;;  %v5956_v3 = vld [vmem:[%s7520_s6 + $0x50] ss:$8 sps:$4 sm:$0xff]  }
 0xcdf   : > { %6071 = vtanh.f32 %v3118_v10  ;;  %3415 = vmatprep.subr.bf16.mxu1 %v5958_v51  ;;  %v5961_v10 = vld [vmem:[%s7520_s6 + $0x64] ss:$8 sps:$4 sm:$0xff]  }
 0xce2   : > { %3416 = vmatpush1.bf16.msra.mxu1 %v5956_v3 }
 0xce3   : > { %3417 = vmatprep.subr.bf16.mxu1 %v5961_v10 }
 0xce6   : > { %v6066_v4 = vpop.eup %6065 }
 0xce7   : > { %v6068_v63 = vpop.eup %6067  ;;  %v3127_v5 = vadd.f32 1.0, %v6066_v4  ;;  %v5959_v4 = vld [vmem:[%s7520_s6 + $0x60] ss:$8 sps:$4 sm:$0xff]  }
 0xce8   : > { %v6070_v58 = vpop.eup %6069  ;;  %v3125_v6 = vadd.f32 1.0, %v6068_v63  ;;  %3418 = vmatpush1.bf16.msra.mxu1 %v5959_v4  ;;  %v5964_v63 = vld [vmem:[%s7520_s6 + $0x74] ss:$8 sps:$4 sm:$0xff]  }
 0xce9   : > { %v6072_v7 = vpop.eup %6071  ;;  %v3131_v9 = vmul.f32 0.5, %v3127_v5  ;;  %v3128_v11 = vadd.f32 1.0, %v6070_v58  ;;  %v5962_v5 = vld [vmem:[%s7520_s6 + $0x70] ss:$8 sps:$4 sm:$0xff]   ;;  %3419 = vmatprep.subr.bf16.mxu1 %v5964_v63 }
 0xcea   : > { %v3126_v8 = vadd.f32 1.0, %v6072_v7  ;;  %v3129_v54 = vmul.f32 0.5, %v3125_v6 }
 0xceb   : > { %v3132_v0 = vmul.f32 0.5, %v3128_v11  ;;  %v3135_v57 = vmul.f32 %v3131_v9, %v3095_v24 }
 0xcec   : > { %v3130_v61 = vmul.f32 0.5, %v3126_v8  ;;  %v3133_v17 = vmul.f32 %v3129_v54, %v3087_v35  ;;  %3420 = vmatpush1.bf16.msra.mxu1 %v5962_v5 }
 0xced   : > { %v3136_v15 = vmul.f32 %v3132_v0, %v3098_v41 }
 0xcee   : > { %v3134_v20 = vmul.f32 %v3130_v61, %v3090_v31 }
 0xcef   : > { %v3138_v33 = vpack.c.bf16 %v3136_v15, %v3135_v57 }
 0xcf0   : > { %v3137_v21 = vpack.c.bf16 %v3134_v20, %v3133_v17 }
 0xcf2   : > { %5543 = vmatprep.mubr.bf16.mxu0 %v3137_v21 }
 0xcf3   : > { %5544 = vmatmul.mubr.bf16.vlgmr.msra.gmra.mrb[44].mxu0 %v3138_v33  ;;  %v5051_v33 = vld [vmem:[%s7578_s30 + $0x1] ss:$0 sm:$0xff] }
 0xdc6   : > { %v5545_v14 = vpop.f32.mrb[44].mxu0 }
 0xdc7   : > { %v3237_v22 = vpop.f32.mrb[45].mxu0  ;;  %v3254_v23 = vadd.f32 %v5545_v14, %v7024_v16 }
 0xdc8   : > { %v3252_v53 = vadd.f32 %v3237_v22, %v7021_v13  ;;  %v5546_v25 = vpop.f32.mrb[46].mxu0 }
 0xdc9   : > { %v3240_v26 = vpop.f32.mrb[47].mxu0  ;;  %v3255_v28 = vadd.f32 %v5546_v25, %v7033_v12  ;;  %v7104_v30 = vadd.f32 %v5048_v34, %v3254_v23 }
 0xdca   : > { %v7100_v27 = vadd.f32 %v5048_v34, %v3252_v53  ;;  %v3253_v29 = vadd.f32 %v3240_v26, %v7027_v18  ;;  %v5052_v53 = vld [vmem:[%s7579_s5 + $0x1] ss:$0 sm:$0xff] }
 0xdcb   : > { %v7110_v35 = vadd.f32 %v5048_v34, %v3255_v28  ;;  %v3277_v16 = vsel %vm1851_vm0, %v7104_v30, 0.0 }
 0xdcc   : > { %v7106_v24 = vadd.f32 %v5048_v34, %v3253_v29  ;;  %v3271_v32 = vsel %vm1851_vm0, %v7100_v27, 0.0 }
 0xdcd   : > { %3272 = vadd.xlane.f32.xlu0 %v3271_v32  ;;  %v3280_v18 = vsel %vm1851_vm0, %v7110_v35, 0.0 }
 0xdce   : > { %v3274_v13 = vsel %vm1851_vm0, %v7106_v24, 0.0 }
 0xdcf   : > { %3275 = vadd.xlane.f32.xlu1 %v3274_v13 }
 0xdd1   : > { %3278 = vadd.xlane.f32.xlu0 %v3277_v16 }
 0xdd3   : > { %3281 = vadd.xlane.f32.xlu1 %v3280_v18 }
 0xe5a   : > { %v3273_v12 = vpop.xlane.xlu0 %3272 }
 0xe5b   : > { %v3283_v37 = vmul.f32 0.015625, %v3273_v12 }
 0xe5c   : > { %v3276_v38 = vpop.xlane.xlu1 %3275 }
 0xe5d   : > { %v3287_v41 = vsub.f32 %v7100_v27, %v3283_v37  ;;  %v3284_v43 = vmul.f32 0.015625, %v3276_v38 }
 0xe5e   : > { %v3279_v45 = vpop.xlane.xlu0 %3278 }
 0xe5f   : > { %v3288_v31 = vsub.f32 %v7106_v24, %v3284_v43  ;;  %v3285_v47 = vmul.f32 0.015625, %v3279_v45  ;;  %v3291_v44 = vmul.f32 %v3287_v41, %v3287_v41  ;;  %v5061_v43 = vld [vmem:[%s7521_s7 + $0x2] sm:$0x3] }
 0xe60   : > { %v3282_v19 = vpop.xlane.xlu1 %3281  ;;  %v3360_v45 = vrot.slane %v5061_v43, %v1939_v40 }
 0xe61   : > { %v3289_v48 = vsub.f32 %v7104_v30, %v3285_v47  ;;  %v3286_v49 = vmul.f32 0.015625, %v3282_v19  ;;  %v3295_v52 = vsel %vm1851_vm0, %v3291_v44, 0.0  ;;  %v3292_v50 = vmul.f32 %v3288_v31, %v3288_v31 }
 0xe62   : > { %3296 = vadd.xlane.f32.xlu0 %v3295_v52  ;;  %v3364_v47 = vrot.slane %v5061_v43, %v1943_v42 }
 0xe63   : > { %v3290_v46 = vsub.f32 %v7110_v35, %v3286_v49  ;;  %v3298_v55 = vsel %vm1851_vm0, %v3292_v50, 0.0  ;;  %v3293_v56 = vmul.f32 %v3289_v48, %v3289_v48 }
 0xe64   : > { %3299 = vadd.xlane.f32.xlu1 %v3298_v55 }
 0xe65   : > { %v3301_v36 = vsel %vm1851_vm0, %v3293_v56, 0.0  ;;  %v3294_v59 = vmul.f32 %v3290_v46, %v3290_v46 }
 0xe66   : > { %3302 = vadd.xlane.f32.xlu0 %v3301_v36 }
 0xe67   : > { %v3304_v60 = vsel %vm1851_vm0, %v3294_v59, 0.0 }
 0xe68   : > { %3305 = vadd.xlane.f32.xlu1 %v3304_v60 }
 0xeef   : > { %v3297_v58 = vpop.xlane.xlu0 %3296 }
 0xef0   : > { %v3307_v6 = vmul.f32 0.015625, %v3297_v58 }
 0xef1   : > { %v3300_v7 = vpop.xlane.xlu1 %3299 }
 0xef2   : > { %v3311_v9 = vadd.f32 1e-12, %v3307_v6  ;;  %v3308_v11 = vmul.f32 0.015625, %v3300_v7 }
 0xef3   : > { %v3303_v8 = vpop.xlane.xlu0 %3302 }
 0xef4   : > { %6073 = vrsqrt.f32 %v3311_v9  ;;  %v3312_v54 = vadd.f32 1e-12, %v3308_v11  ;;  %v3309_v0 = vmul.f32 0.015625, %v3303_v8 }
 0xef5   : > { %v3306_v61 = vpop.xlane.xlu1 %3305 }
 0xef6   : > { %6075 = vrsqrt.f32 %v3312_v54  ;;  %v3313_v57 = vadd.f32 1e-12, %v3309_v0  ;;  %v3310_v15 = vmul.f32 0.015625, %v3306_v61 }
 0xef8   : > { %6077 = vrsqrt.f32 %v3313_v57  ;;  %v3314_v17 = vadd.f32 1e-12, %v3310_v15 }
 0xefa   : > { %6079 = vrsqrt.f32 %v3314_v17 }
 0xefe   : > { %v6074_v20 = vpop.eup %6073 }
 0xeff   : > { %v3319_v21 = vmul.f32 %v6074_v20, %v3287_v41 }
 0xf00   : > { %v6076_v14 = vpop.eup %6075 }
 0xf01   : > { %v3329_v34 = vmul.f32 %v5051_v33, %v3319_v21  ;;  %v3320_v22 = vmul.f32 %v6076_v14, %v3288_v31 }
 0xf02   : > { %v6078_v23 = vpop.eup %6077 }
 0xf03   : > { %v3330_v25 = vmul.f32 %v5051_v33, %v3320_v22  ;;  %v3321_v28 = vmul.f32 %v6078_v23, %v3289_v48  ;;  %v3339_v32 = vadd.f32 %v5052_v53, %v3329_v34 }
 0xf04   : > { %v6080_v26 = vpop.eup %6079 }
 0xf05   : > { %v3322_v29 = vmul.f32 %v6080_v26, %v3290_v46  ;;  %v3340_v13 = vadd.f32 %v5052_v53, %v3330_v25  ;;  %v3331_v12 = vmul.f32 %v5051_v33, %v3321_v28 }
 0xf07   : > { %v3343_v16 = vpack.c.bf16 %v3340_v13, %v3339_v32  ;;  %v3332_v18 = vmul.f32 %v5051_v33, %v3322_v29  ;;  %v3341_v38 = vadd.f32 %v5052_v53, %v3331_v12 }
 0xf09   : > { %5070 = vmatmul.mubr.msk.bf16.vlgmr.msra.gmra.mrb[52].mxu1 %vm1851_vm0, %v3343_v16  ;;  %v3342_v37 = vadd.f32 %v5052_v53, %v3332_v18 }
 0xf0a   : > { %3455 = vmatprep.mubr.bf16.mxu1 %v6227_v1 }
 0xf0b   : > { %v3344_v41 = vpack.c.bf16 %v3342_v37, %v3341_v38 }
 0xf11   : > { %5071 = vmatmul.mubr.msk.bf16.gmra.mrb[56].mxu1 %vm1851_vm0, %v3344_v41 }
 0xfdc   : > { %v3447_v31 = vpop.f32.mrb[52].mxu1 }
 0xfdd   : > { %v3449_v44 = vpop.f32.mrb[53].mxu1  ;;  %v3448_v48 = vadd.f32 %v3447_v31, %v3360_v45 }
 0xfde   : > { %v3451_v19 = vpop.f32.mrb[54].mxu1  ;;  %v3450_v52 = vadd.f32 %v3449_v44, %v3364_v47 }
 0xfdf   : > { %v3452_v1 = vadd.f32 %v3451_v19, %v3360_v45  ;;  %v3453_v49 = vpop.f32.mrb[55].mxu1 }
 0xfe0   : > { %v3454_v50 = vadd.f32 %v3453_v49, %v3364_v47 }
 0xfe1   : > { %v7166_v46 = vpack.c.bf16 %v3452_v1, %v3448_v48 }
 0xfe2   : > { %v7168_v55 = vpack.c.bf16 %v3454_v50, %v3450_v52 }
 0xfe3   : > { %3472 = vrot.lane.b32.xlu0 %v7166_v46, %s7580_s0  ;;  %5551 = vmatprep.mubr.msk.bf16.mxu1 %vm2056_vm1, %v7166_v46 }
 0xfe4   : > { %v3457_v40 = vpop.f32.mrb[56].mxu1  ;;  %5555 = vmatprep.subr.bf16.mxu0 %v7168_v55 }
 0xfe5   : > { %v3459_v39 = vpop.f32.mrb[57].mxu1  ;;  %5556 = vmatpush3.bf16.msra.mxu0 %v7168_v55  ;;  %v3458_v56 = vadd.f32 %v3457_v40, %v3360_v45 }
 0xfe6   : > { %v3461_v42 = vpop.f32.mrb[58].mxu1  ;;  %v3460_v60 = vadd.f32 %v3459_v39, %v3364_v47 }
 0xfe7   : > { %v3462_v36 = vadd.f32 %v3461_v42, %v3360_v45  ;;  %3642 = vrot.lane.b32.xlu0 %v7166_v46, %s7581_s28  ;;  %v3463_v59 = vpop.f32.mrb[59].mxu1 }
 0xfe8   : > { %v3464_v62 = vadd.f32 %v3463_v59, %v3364_v47 }
 0xfe9   : > { %v7178_v2 = vpack.c.bf16 %v3462_v36, %v3458_v56 }
 0xfea   : > { %v7180_v51 = vpack.c.bf16 %v3464_v62, %v3460_v60 }
 0xfeb   : > { %3474 = vrot.lane.b32.xlu1 %v7178_v2, %s7580_s0 }
 0xfec   : > { %5557 = vmatprep.subr.bf16.mxu0 %v7180_v51 }
 0xfed   : > { %5558 = vmatpush3.bf16.msra.mxu0 %v7180_v51 }
 0xfef   : > { %3646 = vrot.lane.b32.xlu1 %v7166_v46, %s7582_s27 }
 0xff3   : > { %3648 = vrot.lane.b32.xlu1 %v7178_v2, %s7582_s27 }
 0xff7   : > { %3644 = vrot.lane.b32.xlu1 %v7178_v2, %s7581_s28 }
0x1055   : > { %v3473_v3 = vpop.permute.xlu0 %3472 }
0x1056   : > { %v3483_v10 = vsel %vm2056_vm1, %v3473_v3, 0  ;;  %5675 = vmatprep.subr.msk.bf16.mxu1 %vm2056_vm1, %v3473_v3 }
0x1057   : > { %5548 = vmatpush3.bf16.xpose.msra.mxu1 %v3483_v10 }
0x1059   : > { %v3643_v58 = vpop.permute.xlu0 %3642 }
0x105d   : > { %v3475_v4 = vpop.permute.xlu1 %3474 }
0x105e   : > { %v3486_v63 = vsel %vm2056_vm1, %v3475_v4, 0  ;;  %5676 = vmatprep.subr.msk.bf16.mxu1 %vm2056_vm1, %v3475_v4 }
0x105f   : > { %5550 = vmatpush3.bf16.xpose.msra.mxu1 %v3486_v63 }
0x1061   : > { %v3647_v5 = vpop.permute.xlu1 %3646 }
0x1062   : > { %5677 = vmatprep.subr.msk.bf16.mxu1 %vm2056_vm1, %v3647_v5  ;;  %v3657_v6 = vsel %vm2056_vm1, %v3647_v5, 0 }
0x1065   : > { %v3649_v7 = vpop.permute.xlu1 %3648 }
0x1066   : > { %5552 = vmatmul.mubr.msk.bf16.vlgmr.msra.gmra.mrb[60].mxu1 %vm2056_vm1, %v7178_v2  ;;  %v3660_v9 = vsel %vm2056_vm1, %v3649_v7, 0 }
0x1067   : > { %5564 = vmatpush3.bf16.xpose.msra.mxu1 %v3657_v6  ;;  %5567 = vmatprep.mubr.msk.bf16.mxu1 %vm2056_vm1, %v3643_v58 }
0x1068   : > { %5678 = vmatprep.subr.msk.bf16.mxu1 %vm2056_vm1, %v3649_v7 }
0x1069   : > { %v3645_v11 = vpop.permute.xlu1 %3644 }
0x106f   : > { %5566 = vmatpush3.bf16.xpose.msra.mxu1 %v3660_v9 }
0x1076   : > { %5568 = vmatmul.mubr.msk.bf16.vlgmr.msra.gmra.mrb[64].mxu1 %vm2056_vm1, %v3645_v11 }
0x1139   : > { %v5553_v8 = vpop.f32.mrb[60].mxu1 }
0x113a   : > { %v3522_v54 = vpop.f32.mrb[61].mxu1  ;;  %v3539_v15 = vmul.f32 0.25, %v5553_v8 }
0x113b   : > { %v3537_v0 = vmul.f32 0.25, %v3522_v54  ;;  %v5554_v61 = vpop.f32.mrb[62].mxu1 }
0x113c   : > { %v3525_v57 = vpop.f32.mrb[63].mxu1  ;;  %v3540_v21 = vmul.f32 0.25, %v5554_v61  ;;  %v3547_v14 = vsel %vm2122_vm2, %v3539_v15, -inf }
0x113d   : > { %v3538_v17 = vmul.f32 0.25, %v3525_v57  ;;  %v3541_v20 = vsel %vm2122_vm2, %v3537_v0, -inf }
0x113e   : > { %3542 = vmax.xlane.f32.xlu0 %v3541_v20  ;;  %v3550_v34 = vsel %vm2122_vm2, %v3540_v21, -inf }
0x113f   : > { %v3544_v33 = vsel %vm2122_vm2, %v3538_v17, -inf }
0x1140   : > { %3545 = vmax.xlane.f32.xlu1 %v3544_v33 }
0x1142   : > { %3548 = vmax.xlane.f32.xlu0 %v3547_v14 }
0x1146   : > { %3551 = vmax.xlane.f32.xlu0 %v3550_v34 }
0x1149   : > { %v5569_v22 = vpop.f32.mrb[64].mxu1 }
0x114a   : > { %v3696_v23 = vpop.f32.mrb[65].mxu1  ;;  %v3713_v28 = vmul.f32 0.25, %v5569_v22 }
0x114b   : > { %v3711_v53 = vmul.f32 0.25, %v3696_v23  ;;  %v5570_v25 = vpop.f32.mrb[66].mxu1 }
0x114c   : > { %v3699_v26 = vpop.f32.mrb[67].mxu1  ;;  %v3714_v13 = vmul.f32 0.25, %v5570_v25  ;;  %v3721_v18 = vsel %vm2122_vm2, %v3713_v28, -inf }
0x114d   : > { %v3712_v29 = vmul.f32 0.25, %v3699_v26  ;;  %v3715_v32 = vsel %vm2122_vm2, %v3711_v53, -inf }
0x114e   : > { %3716 = vmax.xlane.f32.xlu0 %v3715_v32  ;;  %v3724_v12 = vsel %vm2122_vm2, %v3714_v13, -inf }
0x114f   : > { %v3718_v16 = vsel %vm2122_vm2, %v3712_v29, -inf }
0x1150   : > { %3719 = vmax.xlane.f32.xlu1 %v3718_v16 }
0x1152   : > { %3722 = vmax.xlane.f32.xlu0 %v3721_v18 }
0x1154   : > { %3725 = vmax.xlane.f32.xlu1 %v3724_v12 }
0x11cb   : > { %v3543_v37 = vpop.xlane.xlu0 %3542 }
0x11cc   : > { %v3553_v38 = vsub.f32 %v3537_v0, %v3543_v37 }
0x11cd   : > { %v3546_v41 = vpop.xlane.xlu1 %3545 }
0x11ce   : > { %v3557_v31 = vmul.f32 1.442695, %v3553_v38  ;;  %v3554_v47 = vsub.f32 %v3538_v17, %v3546_v41 }
0x11cf   : > { %v3549_v43 = vpop.xlane.xlu0 %3548 }
0x11d0   : > { %v3555_v45 = vsub.f32 %v3539_v15, %v3549_v43  ;;  %v3559_v1 = vmul.f32 1.442695, %v3554_v47 }
0x11d2   : > { %v3561_v44 = vmul.f32 1.442695, %v3555_v45 }
0x11d3   : > { %v3552_v19 = vpop.xlane.xlu0 %3551 }
0x11d4   : > { %6081 = vpow2.f32 %v3561_v44  ;;  %v3556_v48 = vsub.f32 %v3540_v21, %v3552_v19 }
0x11d5   : > { %6083 = vpow2.f32 %v3557_v31 }
0x11d6   : > { %v3563_v49 = vmul.f32 1.442695, %v3556_v48 }
0x11d8   : > { %6085 = vpow2.f32 %v3563_v49 }
0x11d9   : > { %6087 = vpow2.f32 %v3559_v1 }
0x11db   : > { %v3717_v52 = vpop.xlane.xlu0 %3716 }
0x11dc   : > { %v3727_v40 = vsub.f32 %v3711_v53, %v3717_v52 }
0x11dd   : > { %v3720_v9 = vpop.xlane.xlu1 %3719 }
0x11de   : > { %v6082_v50 = vpop.eup %6081  ;;  %v3731_v60 = vmul.f32 1.442695, %v3727_v40  ;;  %v3728_v54 = vsub.f32 %v3712_v29, %v3720_v9 }
0x11df   : > { %v3723_v39 = vpop.xlane.xlu0 %3722  ;;  %v3571_v42 = vsel %vm2122_vm2, %v6082_v50, 0.0  ;;  %v6084_v56 = vpop.eup %6083 }
0x11e0   : > { %v3729_v36 = vsub.f32 %v3713_v28, %v3723_v39  ;;  %3572 = vadd.xlane.f32.xlu0 %v3571_v42  ;;  %v3565_v3 = vsel %vm2122_vm2, %v6084_v56, 0.0  ;;  %v3733_v61 = vmul.f32 1.442695, %v3728_v54 }
0x11e1   : > { %v3726_v11 = vpop.xlane.xlu1 %3725 }
0x11e2   : > { %v6086_v59 = vpop.eup %6085  ;;  %v3735_v62 = vmul.f32 1.442695, %v3729_v36  ;;  %v3730_v8 = vsub.f32 %v3714_v13, %v3726_v11 }
0x11e3   : > { %v3574_v10 = vsel %vm2122_vm2, %v6086_v59, 0.0  ;;  %v6088_v4 = vpop.eup %6087 }
0x11e4   : > { %6089 = vpow2.f32 %v3735_v62  ;;  %3566 = vadd.xlane.f32.xlu0 %v3565_v3  ;;  %3575 = vadd.xlane.f32.xlu1 %v3574_v10  ;;  %v3568_v63 = vsel %vm2122_vm2, %v6088_v4, 0.0  ;;  %v3737_v0 = vmul.f32 1.442695, %v3730_v8 }
0x11e5   : > { %6091 = vpow2.f32 %v3731_v60 }
0x11e6   : > { %6093 = vpow2.f32 %v3737_v0 }
0x11e7   : > { %6095 = vpow2.f32 %v3733_v61 }
0x11e8   : > { %3569 = vadd.xlane.f32.xlu1 %v3568_v63 }
0x11ee   : > { %v7216_v5 = vpop.eup %6089 }
0x11ef   : > { %v3745_v58 = vsel %vm2122_vm2, %v7216_v5, 0.0  ;;  %v7220_v6 = vpop.eup %6091 }
0x11f0   : > { %3746 = vadd.xlane.f32.xlu0 %v3745_v58  ;;  %v3739_v7 = vsel %vm2122_vm2, %v7220_v6, 0.0  ;;  %v6094_v57 = vpop.eup %6093 }
0x11f1   : > { %v3748_v15 = vsel %vm2122_vm2, %v6094_v57, 0.0  ;;  %v6096_v17 = vpop.eup %6095 }
0x11f2   : > { %v3742_v20 = vsel %vm2122_vm2, %v6096_v17, 0.0 }
0x11f4   : > { %3740 = vadd.xlane.f32.xlu0 %v3739_v7 }
0x11f9   : > { %3765 = vrot.lane.b32.xlu1 %v7180_v51, %s7581_s28 }
0x120a   : > { %3763 = vrot.lane.b32.xlu0 %v7168_v55, %s7581_s28  ;;  %s620_s28 = sand.u32 1, %s6217_s22  }
0x120e   : > { %3824 = vrot.lane.b32.xlu0 %v7166_v46, %s7583_s26 }
0x121d   : > { %3749 = vadd.xlane.f32.xlu1 %v3748_v15 }
0x1221   : > { %3743 = vadd.xlane.f32.xlu1 %v3742_v20 }
0x1232   : > { %3828 = vrot.lane.b32.xlu1 %v7166_v46, %s7584_s23 }
0x1236   : > { %3830 = vrot.lane.b32.xlu1 %v7178_v2, %s7584_s23 }
0x123a   : > { %3826 = vrot.lane.b32.xlu1 %v7178_v2, %s7583_s26 }
0x126d   : > { %v3573_v33 = vpop.xlane.xlu0 %3572 }
0x1271   : > { %v3567_v21 = vpop.xlane.xlu0 %3566  ;;  %v3576_v14 = vpop.xlane.xlu1 %3575 }
0x1272   : > { %6097 = vrcp.f32 %v3576_v14 }
0x1273   : > { %6099 = vrcp.f32 %v3567_v21 }
0x1274   : > { %6101 = vrcp.f32 %v3573_v33 }
0x1275   : > { %v3570_v34 = vpop.xlane.xlu1 %3569 }
0x1276   : > { %6103 = vrcp.f32 %v3570_v34 }
0x1279   : > { %v3766_v38 = vpop.permute.xlu1 %3765 }
0x127c   : > { %v6098_v22 = vpop.eup %6097 }
0x127d   : > { %v3747_v23 = vpop.xlane.xlu0 %3746  ;;  %v6100_v53 = vpop.eup %6099  ;;  %v3584_v28 = vmul.f32 %v6098_v22, %v6086_v59 }
0x127e   : > { %v6102_v25 = vpop.eup %6101  ;;  %v3581_v32 = vmul.f32 %v6100_v53, %v6084_v56 }
0x127f   : > { %v3583_v16 = vmul.f32 %v6102_v25, %v6082_v50 }
0x1280   : > { %v6104_v26 = vpop.eup %6103 }
0x1281   : > { %v3741_v29 = vpop.xlane.xlu0 %3740  ;;  %v3582_v13 = vmul.f32 %v6104_v26, %v6088_v4  ;;  %v3586_v12 = vpack.c.bf16 %v3584_v28, %v3583_v16 }
0x1283   : > { %v3585_v18 = vpack.c.bf16 %v3582_v13, %v3581_v32 }
0x1285   : > { %v3764_v37 = vpop.permute.xlu0 %3763  ;;  %5559 = vmatprep.mubr.msk.bf16.mxu0 %vm2122_vm2, %v3585_v18 }
0x1286   : > { %5560 = vmatmul.mubr.msk.bf16.vlgmr.msra.gmra.mrb[48].mxu0 %vm2122_vm2, %v3586_v12  ;;  %5571 = vmatprep.subr.bf16.mxu0 %v3764_v37 }
0x1287   : > { %5572 = vmatpush3.bf16.msra.mxu0 %v3764_v37 }
0x1288   : > { %5573 = vmatprep.subr.bf16.mxu0 %v3766_v38 }
0x1289   : > { %v3825_v39 = vpop.permute.xlu0 %3824 }
0x128b   : > { %5574 = vmatpush3.bf16.msra.mxu0 %v3766_v38 }
0x12aa   : > { %v3750_v41 = vpop.xlane.xlu1 %3749 }
0x12ab   : > { %6105 = vrcp.f32 %v3750_v41 }
0x12ac   : > { %6107 = vrcp.f32 %v3741_v29 }
0x12ad   : > { %6109 = vrcp.f32 %v3747_v23 }
0x12ae   : > { %v3744_v43 = vpop.xlane.xlu1 %3743 }
0x12af   : > { %6111 = vrcp.f32 %v3744_v43 }
0x12b2   : > { %v3829_v45 = vpop.permute.xlu1 %3828 }
0x12b3   : > { %5679 = vmatprep.subr.msk.bf16.mxu0 %vm2056_vm1, %v3829_v45  ;;  %v3839_v42 = vsel %vm2056_vm1, %v3829_v45, 0 }
0x12b5   : > { %v6106_v31 = vpop.eup %6105 }
0x12b6   : > { %v6108_v47 = vpop.eup %6107  ;;  %v3758_v48 = vmul.f32 %v6106_v31, %v6094_v57  ;;  %v3831_v56 = vpop.permute.xlu1 %3830 }
0x12b7   : > { %v6110_v44 = vpop.eup %6109  ;;  %v3755_v1 = vmul.f32 %v6108_v47, %v7220_v6  ;;  %v3842_v36 = vsel %vm2056_vm1, %v3831_v56, 0 }
0x12b8   : > { %v3757_v52 = vmul.f32 %v6110_v44, %v7216_v5 }
0x12b9   : > { %v6112_v19 = vpop.eup %6111 }
0x12ba   : > { %v3756_v49 = vmul.f32 %v6112_v19, %v6096_v17  ;;  %v3760_v40 = vpack.c.bf16 %v3758_v48, %v3757_v52  ;;  %v3827_v59 = vpop.permute.xlu1 %3826 }
0x12bc   : > { %v3759_v50 = vpack.c.bf16 %v3756_v49, %v3755_v1 }
0x12be   : > { %5575 = vmatprep.mubr.msk.bf16.mxu0 %vm2122_vm2, %v3759_v50 }
0x12bf   : > { %5576 = vmatmul.mubr.msk.bf16.vlgmr.msra.gmra.mrb[52].mxu0 %vm2122_vm2, %v3760_v40 }
0x12c0   : > { %5580 = vmatpush3.bf16.xpose.msra.mxu0 %v3839_v42  ;;  %5583 = vmatprep.mubr.msk.bf16.mxu0 %vm2056_vm1, %v3825_v39 }
0x12c1   : > { %5680 = vmatprep.subr.msk.bf16.mxu0 %vm2056_vm1, %v3831_v56 }
0x12c8   : > { %5582 = vmatpush3.bf16.xpose.msra.mxu0 %v3842_v36 }
0x12cf   : > { %5584 = vmatmul.mubr.msk.bf16.vlgmr.msra.gmra.mrb[56].mxu0 %vm2056_vm1, %v3827_v59 }
0x1359   : > { %v7250_v60 = vpop.f32.mrb[48].mxu0 }
0x135a   : > { %v7252_v62 = vpop.f32.mrb[49].mxu0 }
0x135b   : > { %v7254_v3 = vpop.f32.mrb[50].mxu0 }
0x135c   : > { %v7256_v10 = vpop.f32.mrb[51].mxu0 }
0x1392   : > { %v7258_v4 = vpop.f32.mrb[52].mxu0 }
0x1393   : > { %v7260_v63 = vpop.f32.mrb[53].mxu0 }
0x1394   : > { %v7262_v5 = vpop.f32.mrb[54].mxu0 }
0x1395   : > { %v5768_v58 = vpack.i.bf16 %v7262_v5, %v7258_v4  ;;  %v7266_v6 = vpop.f32.mrb[55].mxu0 }
0x1396   : > { %v5763_v7 = vpack.i.bf16 %v7266_v6, %v7260_v63 }
0x13a2   : > { %v5585_v9 = vpop.f32.mrb[56].mxu0 }
0x13a3   : > { %v3878_v11 = vpop.f32.mrb[57].mxu0  ;;  %v3895_v61 = vmul.f32 0.25, %v5585_v9 }
0x13a4   : > { %v3893_v8 = vmul.f32 0.25, %v3878_v11  ;;  %v5586_v54 = vpop.f32.mrb[58].mxu0 }
0x13a5   : > { %v3881_v0 = vpop.f32.mrb[59].mxu0  ;;  %v3896_v20 = vmul.f32 0.25, %v5586_v54  ;;  %v3903_v33 = vsel %vm2122_vm2, %v3895_v61, -inf }
0x13a6   : > { %v3894_v57 = vmul.f32 0.25, %v3881_v0  ;;  %v3897_v15 = vsel %vm2122_vm2, %v3893_v8, -inf }
0x13a7   : > { %3898 = vmax.xlane.f32.xlu0 %v3897_v15  ;;  %v3906_v21 = vsel %vm2122_vm2, %v3896_v20, -inf }
0x13a8   : > { %v3900_v17 = vsel %vm2122_vm2, %v3894_v57, -inf }
0x13a9   : > { %3901 = vmax.xlane.f32.xlu1 %v3900_v17 }
0x13ab   : > { %3904 = vmax.xlane.f32.xlu0 %v3903_v33 }
0x13af   : > { %3907 = vmax.xlane.f32.xlu0 %v3906_v21 }
0x13ba   : > { %3945 = vrot.lane.b32.xlu1 %v7180_v51, %s7583_s26 }
0x1434   : > { %v3899_v14 = vpop.xlane.xlu0 %3898 }
0x1435   : > { %v3909_v34 = vsub.f32 %v3893_v8, %v3899_v14 }
0x1436   : > { %v3902_v22 = vpop.xlane.xlu1 %3901 }
0x1437   : > { %v3913_v25 = vmul.f32 1.442695, %v3909_v34  ;;  %v3910_v26 = vsub.f32 %v3894_v57, %v3902_v22 }
0x1438   : > { %v3905_v23 = vpop.xlane.xlu0 %3904 }
0x1439   : > { %v3911_v53 = vsub.f32 %v3895_v61, %v3905_v23  ;;  %v3915_v13 = vmul.f32 1.442695, %v3910_v26 }
0x143a   : > { %v3946_v47 = vpop.permute.xlu1 %3945 }
0x143b   : > { %v3917_v28 = vmul.f32 1.442695, %v3911_v53 }
0x143c   : > { %v3908_v29 = vpop.xlane.xlu0 %3907 }
0x143d   : > { %6113 = vpow2.f32 %v3917_v28  ;;  %v3912_v32 = vsub.f32 %v3896_v20, %v3908_v29 }
0x143e   : > { %6115 = vpow2.f32 %v3913_v25 }
0x143f   : > { %v3919_v16 = vmul.f32 1.442695, %v3912_v32 }
0x1441   : > { %6117 = vpow2.f32 %v3919_v16 }
0x1442   : > { %6119 = vpow2.f32 %v3915_v13 }
0x1447   : > { %v6114_v18 = vpop.eup %6113 }
0x1448   : > { %v3927_v12 = vsel %vm2122_vm2, %v6114_v18, 0.0  ;;  %v6116_v37 = vpop.eup %6115 }
0x1449   : > { %3928 = vadd.xlane.f32.xlu0 %v3927_v12  ;;  %v3921_v41 = vsel %vm2122_vm2, %v6116_v37, 0.0 }
0x144b   : > { %v6118_v38 = vpop.eup %6117 }
0x144c   : > { %v3930_v43 = vsel %vm2122_vm2, %v6118_v38, 0.0  ;;  %v6120_v45 = vpop.eup %6119 }
0x144d   : > { %3922 = vadd.xlane.f32.xlu0 %v3921_v41  ;;  %3931 = vadd.xlane.f32.xlu1 %v3930_v43  ;;  %v3924_v31 = vsel %vm2122_vm2, %v6120_v45, 0.0 }
0x1451   : > { %3925 = vadd.xlane.f32.xlu1 %v3924_v31 }
0x1462   : > { %4008 = vrot.lane.b32.xlu1 %v7166_v46, %s7585_s3 }
0x1463   : > { %3943 = vrot.lane.b32.xlu0 %v7168_v55, %s7583_s26  ;;  %s4803_s26 = scalar_lea.sflag [#allocation3], %s620_s28 }
0x1466   : > { %4010 = vrot.lane.b32.xlu1 %v7178_v2, %s7585_s3 }
0x1467   : > { %4004 = vrot.lane.b32.xlu0 %v7166_v46, %s7586_s24 }
0x146a   : > { %4006 = vrot.lane.b32.xlu1 %v7178_v2, %s7586_s24 }
0x14d6   : > { %v3929_v44 = vpop.xlane.xlu0 %3928 }
0x14da   : > { %v3923_v19 = vpop.xlane.xlu0 %3922  ;;  %v3932_v48 = vpop.xlane.xlu1 %3931 }
0x14db   : > { %6121 = vrcp.f32 %v3932_v48 }
0x14dc   : > { %6123 = vrcp.f32 %v3923_v19 }
0x14dd   : > { %6125 = vrcp.f32 %v3929_v44 }
0x14de   : > { %v3944_v1 = vpop.permute.xlu0 %3943  ;;  %v3926_v49 = vpop.xlane.xlu1 %3925 }
0x14df   : > { %6127 = vrcp.f32 %v3926_v49  ;;  %5587 = vmatprep.subr.bf16.mxu1 %v3944_v1 }
0x14e0   : > { %5588 = vmatpush3.bf16.msra.mxu1 %v3944_v1 }
0x14e1   : > { %5589 = vmatprep.subr.bf16.mxu1 %v3946_v47 }
0x14e2   : > { %v4009_v52 = vpop.permute.xlu1 %4008  ;;  %v4005_v11 = vpop.permute.xlu0 %4004 }
0x14e3   : > { %v4019_v8 = vsel %vm2056_vm1, %v4009_v52, 0 }
0x14e4   : > { %5590 = vmatpush3.bf16.msra.mxu1 %v3946_v47 }
0x14e5   : > { %5681 = vmatprep.subr.msk.bf16.mxu1 %vm2056_vm1, %v4009_v52  ;;  %v6122_v46 = vpop.eup %6121 }
0x14e6   : > { %v6124_v50 = vpop.eup %6123  ;;  %v3940_v39 = vmul.f32 %v6122_v46, %v6118_v38  ;;  %v4011_v54 = vpop.permute.xlu1 %4010 }
0x14e7   : > { %v6126_v2 = vpop.eup %6125  ;;  %v3937_v42 = vmul.f32 %v6124_v50, %v6116_v37  ;;  %v4022_v0 = vsel %vm2056_vm1, %v4011_v54, 0 }
0x14e8   : > { %v3939_v36 = vmul.f32 %v6126_v2, %v6114_v18 }
0x14e9   : > { %v6128_v40 = vpop.eup %6127 }
0x14ea   : > { %v3938_v56 = vmul.f32 %v6128_v40, %v6120_v45  ;;  %v3942_v9 = vpack.c.bf16 %v3940_v39, %v3939_v36  ;;  %v4007_v61 = vpop.permute.xlu1 %4006 }
0x14ec   : > { %v3941_v59 = vpack.c.bf16 %v3938_v56, %v3937_v42 }
0x14ee   : > { %5591 = vmatprep.mubr.msk.bf16.mxu1 %vm2122_vm2, %v3941_v59 }
0x14ef   : > { %5592 = vmatmul.mubr.msk.bf16.vlgmr.msra.gmra.mrb[68].mxu1 %vm2122_vm2, %v3942_v9 }
0x14f0   : > { %5596 = vmatpush3.bf16.xpose.msra.mxu1 %v4019_v8  ;;  %5599 = vmatprep.mubr.msk.bf16.mxu1 %vm2056_vm1, %v4005_v11 }
0x14f1   : > { %5682 = vmatprep.subr.msk.bf16.mxu1 %vm2056_vm1, %v4011_v54 }
0x14f8   : > { %5598 = vmatpush3.bf16.xpose.msra.mxu1 %v4022_v0  ;;  %v5965_v0 = vld [vmem:[%s7522_s8 + $0x20] sm:$0xff]  }
0x14ff   : > { %5600 = vmatmul.mubr.msk.bf16.vlgmr.msra.gmra.mrb[72].mxu1 %vm2056_vm1, %v4007_v61  ;;  %v5966_v61 = vld [vmem:[%s7522_s8 + $0x28] sm:$0xff]  }
0x15c2   : > { %v5593_v57 = vpop.f32.mrb[68].mxu1 }
0x15c3   : > { %v3989_v15 = vpop.f32.mrb[69].mxu1 }
0x15c4   : > { %v5594_v17 = vpop.f32.mrb[70].mxu1 }
0x15c5   : > { %v5778_v20 = vpack.i.bf16 %v5594_v17, %v5593_v57  ;;  %v3992_v33 = vpop.f32.mrb[71].mxu1  ;;  %v5967_v57 = vld [vmem:[%s7522_s8 + $0x30] sm:$0xff]  }
0x15c6   : > { %v5773_v21 = vpack.i.bf16 %v3992_v33, %v3989_v15  ;;  %v5968_v15 = vld [vmem:[%s7522_s8 + $0x38] sm:$0xff]  }
0x15d2   : > { %v5601_v14 = vpop.f32.mrb[72].mxu1 }
0x15d3   : > { %v4058_v34 = vpop.f32.mrb[73].mxu1  ;;  %v4075_v25 = vmul.f32 0.25, %v5601_v14 }
0x15d4   : > { %v4073_v22 = vmul.f32 0.25, %v4058_v34  ;;  %v5602_v23 = vpop.f32.mrb[74].mxu1 }
0x15d5   : > { %v4061_v53 = vpop.f32.mrb[75].mxu1  ;;  %v4076_v32 = vmul.f32 0.25, %v5602_v23  ;;  %v4083_v13 = vsel %vm2122_vm2, %v4075_v25, -inf }
0x15d6   : > { %v4074_v26 = vmul.f32 0.25, %v4061_v53  ;;  %v4077_v28 = vsel %vm2122_vm2, %v4073_v22, -inf }
0x15d7   : > { %4078 = vmax.xlane.f32.xlu0 %v4077_v28  ;;  %v4086_v16 = vsel %vm2122_vm2, %v4076_v32, -inf }
0x15d8   : > { %v4080_v29 = vsel %vm2122_vm2, %v4074_v26, -inf }
0x15d9   : > { %4081 = vmax.xlane.f32.xlu1 %v4080_v29 }
0x15db   : > { %4084 = vmax.xlane.f32.xlu0 %v4083_v13 }
0x15df   : > { %4087 = vmax.xlane.f32.xlu0 %v4086_v16 }
0x1664   : > { %v4079_v18 = vpop.xlane.xlu0 %4078 }
0x1665   : > { %v4089_v12 = vsub.f32 %v4073_v22, %v4079_v18 }
0x1666   : > { %v4082_v37 = vpop.xlane.xlu1 %4081 }
0x1667   : > { %v4093_v43 = vmul.f32 1.442695, %v4089_v12  ;;  %v4090_v45 = vsub.f32 %v4074_v26, %v4082_v37 }
0x1668   : > { %v4085_v38 = vpop.xlane.xlu0 %4084 }
0x1669   : > { %v4091_v41 = vsub.f32 %v4075_v25, %v4085_v38  ;;  %v4095_v19 = vmul.f32 1.442695, %v4090_v45 }
0x166b   : > { %v4097_v31 = vmul.f32 1.442695, %v4091_v41 }
0x166c   : > { %v4088_v47 = vpop.xlane.xlu0 %4087 }
0x166d   : > { %6129 = vpow2.f32 %v4097_v31  ;;  %v4092_v44 = vsub.f32 %v4076_v32, %v4088_v47 }
0x166e   : > { %6131 = vpow2.f32 %v4093_v43 }
0x166f   : > { %v4099_v48 = vmul.f32 1.442695, %v4092_v44 }
0x1671   : > { %6133 = vpow2.f32 %v4099_v48 }
0x1672   : > { %6135 = vpow2.f32 %v4095_v19 }
0x1677   : > { %v6130_v1 = vpop.eup %6129 }
0x1678   : > { %v4107_v49 = vsel %vm2122_vm2, %v6130_v1, 0.0  ;;  %v6132_v52 = vpop.eup %6131 }
0x1679   : > { %4108 = vadd.xlane.f32.xlu0 %v4107_v49  ;;  %v4101_v50 = vsel %vm2122_vm2, %v6132_v52, 0.0 }
0x167b   : > { %v6134_v46 = vpop.eup %6133 }
0x167c   : > { %v4110_v2 = vsel %vm2122_vm2, %v6134_v46, 0.0  ;;  %v6136_v40 = vpop.eup %6135 }
0x167d   : > { %4102 = vadd.xlane.f32.xlu0 %v4101_v50  ;;  %4111 = vadd.xlane.f32.xlu1 %v4110_v2  ;;  %v4104_v39 = vsel %vm2122_vm2, %v6136_v40, 0.0 }
0x1681   : > { %4105 = vadd.xlane.f32.xlu1 %v4104_v39  ;;  %v5103_v39 = vld [vmem:[%s7523_s9 + $0x1] ss:$0 sm:$0xff] }
0x1692   : > { %4125 = vrot.lane.b32.xlu1 %v7180_v51, %s7586_s24 }
0x1693   : > { %4123 = vrot.lane.b32.xlu0 %v7168_v55, %s7586_s24 }
0x1696   : > { %5764 = vrot.lane.b32.xlu1 %v5763_v7, %s7585_s3 }
0x1697   : > { %5774 = vrot.lane.b32.xlu0 %v5773_v21, %s7584_s23 }
0x169a   : > { %5769 = vrot.lane.b32.xlu1 %v5768_v58, %s7585_s3  ;;  %s5155_s3 = sshll.u32 %s6364_s2, 4 }
0x169b   : > { %s7472_s0 = scalar_lea.hbm %s7587_s29, %s5155_s3 }
0x169e   : > { %5779 = vrot.lane.b32.xlu1 %v5778_v20, %s7584_s23  ;;  %s6237_s23 = smov [#allocation2]  }
0x169f   : > { %s6167_s5 = sshll.u32 %s6237_s23, 4  ;;  %s6168_s5 = int_to_ptr.vmem [resolvable:$false] %s6167_s5 }
0x16a0   : > { %s6169_s1 = scalar_lea.vmem %s6168_s5, 32 }
0x1706   : > { %v4109_v42 = vpop.xlane.xlu0 %4108 }
0x170a   : > { %v4103_v56 = vpop.xlane.xlu0 %4102  ;;  %v4112_v51 = vpop.xlane.xlu1 %4111 }
0x170b   : > { %6137 = vrcp.f32 %v4112_v51 }
0x170c   : > { %6139 = vrcp.f32 %v4103_v56 }
0x170d   : > { %6141 = vrcp.f32 %v4109_v42 }
0x170e   : > { %v4124_v55 = vpop.permute.xlu0 %4123  ;;  %v4106_v36 = vpop.xlane.xlu1 %4105 }
0x170f   : > { %6143 = vrcp.f32 %v4106_v36  ;;  %5603 = vmatprep.subr.bf16.mxu0 %v4124_v55 }
0x1710   : > { %5604 = vmatpush3.bf16.msra.mxu0 %v4124_v55 }
0x1712   : > { %v4126_v63 = vpop.permute.xlu1 %4125  ;;  %v5775_v28 = vpop.permute.xlu0 %5774 }
0x1713   : > { %5605 = vmatprep.subr.bf16.mxu0 %v4126_v63  ;;  %v5777_v18 = vunpack.i.h.bf16 %v5775_v28  ;;  %v5776_v12 = vunpack.i.l.bf16 %v5775_v28  ;;  %v5969_v28 = vld [vmem:[%s7526_s12 + $0x20] sm:$0xff]  }
0x1714   : > { %5606 = vmatpush3.bf16.msra.mxu0 %v4126_v63  ;;  %5623 = vmatprep.subr.bf16.mxu1 %v5969_v28 }
0x1715   : > { %v6138_v6 = vpop.eup %6137  ;;  %5611 = vmatprep.subr.bf16.mxu0 %v5965_v0  ;;  %5624 = vmatpush3.bf16.msra.mxu1 %v5969_v28 }
0x1716   : > { %v6140_v7 = vpop.eup %6139  ;;  %v4120_v58 = vmul.f32 %v6138_v6, %v6134_v46  ;;  %v5765_v22 = vpop.permute.xlu1 %5764 }
0x1717   : > { %v6142_v4 = vpop.eup %6141  ;;  %v4117_v59 = vmul.f32 %v6140_v7, %v6132_v52  ;;  %v5767_v25 = vunpack.i.h.bf16 %v5765_v22  ;;  %v5766_v26 = vunpack.i.l.bf16 %v5765_v22 }
0x1718   : > { %v4119_v11 = vmul.f32 %v6142_v4, %v6130_v1 }
0x1719   : > { %v6144_v5 = vpop.eup %6143  ;;  %v4233_v37 = vsel %vm2056_vm1, %v7256_v10, %v5767_v25  ;;  %v4232_v38 = vsel %vm2056_vm1, %v7252_v62, %v5766_v26 }
0x171a   : > { %v4118_v9 = vmul.f32 %v6144_v5, %v6136_v40  ;;  %v4122_v54 = vpack.c.bf16 %v4120_v58, %v4119_v11  ;;  %v5770_v23 = vpop.permute.xlu1 %5769  ;;  %v4236_v52 = vsel %vm2122_vm2, %v4232_v38, %v5776_v12 }
0x171b   : > { %v5772_v29 = vunpack.i.h.bf16 %v5770_v23  ;;  %v5771_v32 = vunpack.i.l.bf16 %v5770_v23 }
0x171c   : > { %v4121_v8 = vpack.c.bf16 %v4118_v9, %v4117_v59 }
0x171d   : > { %v4235_v43 = vsel %vm2056_vm1, %v7254_v3, %v5772_v29  ;;  %v4234_v45 = vsel %vm2056_vm1, %v7250_v60, %v5771_v32  ;;  %v4237_v3 = vsel %vm2122_vm2, %v4233_v37, %v5777_v18  ;;  %v5970_v29 = vld [vmem:[%s7526_s12 + $0x28] sm:$0xff]   ;;  %v5971_v32 = vld [vmem:[%s7526_s12 + $0x30] sm:$0xff]  }
0x171e   : > { %5607 = vmatprep.mubr.msk.bf16.mxu0 %vm2122_vm2, %v4121_v8  ;;  %v5780_v53 = vpop.permute.xlu1 %5779  ;;  %5625 = vmatprep.subr.bf16.mxu1 %v5970_v29 }
0x171f   : > { %5608 = vmatmul.mubr.msk.bf16.vlgmr.msra.gmra.mrb[60].mxu0 %vm2122_vm2, %v4122_v54  ;;  %v5782_v13 = vunpack.i.h.bf16 %v5780_v53  ;;  %v5781_v16 = vunpack.i.l.bf16 %v5780_v53  ;;  %5626 = vmatpush3.bf16.msra.mxu1 %v5970_v29 }
0x1720   : > { %5612 = vmatpush3.bf16.msra.mxu0 %v5965_v0  ;;  %5627 = vmatprep.subr.bf16.mxu1 %v5971_v32 }
0x1721   : > { %5613 = vmatprep.subr.bf16.mxu0 %v5966_v61  ;;  %v4238_v19 = vsel %vm2122_vm2, %v4234_v45, %v5781_v16  ;;  %v4239_v48 = vsel %vm2122_vm2, %v4235_v43, %v5782_v13  ;;  %v5972_v13 = vld [vmem:[%s7526_s12 + $0x38] sm:$0xff]  }
0x1723   : > { %5628 = vmatpush3.bf16.msra.mxu1 %v5971_v32 }
0x1724   : > { %5614 = vmatpush3.bf16.msra.mxu0 %v5966_v61  ;;  %5629 = vmatprep.subr.bf16.mxu1 %v5972_v13 }
0x1725   : > { %5615 = vmatprep.subr.bf16.mxu0 %v5967_v57 }
0x1727   : > { %5630 = vmatpush3.bf16.msra.mxu1 %v5972_v13 }
0x1728   : > { %5616 = vmatpush3.bf16.msra.mxu0 %v5967_v57 }
0x1729   : > { %5617 = vmatprep.subr.bf16.mxu0 %v5968_v15 }
0x172c   : > { %5618 = vmatpush3.bf16.msra.mxu0 %v5968_v15 }
0x17f2   : > { %v5609_v17 = vpop.f32.mrb[60].mxu0 }
0x17f3   : > { %v4169_v20 = vpop.f32.mrb[61].mxu0 }
0x17f4   : > { %v5610_v33 = vpop.f32.mrb[62].mxu0 }
0x17f5   : > { %v5788_v21 = vpack.i.bf16 %v5610_v33, %v5609_v17  ;;  %v4172_v14 = vpop.f32.mrb[63].mxu0 }
0x17f6   : > { %v5783_v34 = vpack.i.bf16 %v4172_v14, %v4169_v20 }
0x17f7   : > { %5789 = vrot.lane.b32.xlu1 %v5788_v21, %s7582_s27 }
0x17f8   : > { %5784 = vrot.lane.b32.xlu0 %v5783_v34, %s7582_s27  ;;  %s621_s27 = scalar_lea.vmem [#allocation2], %s620_s28 }
0x17f9   : > { %s4815_s24 = sshll.u32 %s621_s27, 4  ;;  %s7474_s24 = int_to_ptr.vmem [resolvable:$true] %s4815_s24 }
0x17fa   : > { %s6163_s2 = scalar_lea.vmem %s7474_s24, 16  ;;  %p6170_p0 = scmp.lt.s32.totalorder %s7474_s24, %s6168_s5 }
0x17fb   : > { %p6164_p11 = scmp.ne.s32.totalorder %s7474_s24, %s6163_s2  ;;  %p6171_p1 = scmp.lt.s32.totalorder %s6169_s1, %s6163_s2 }
0x17fd   : > { %p6165_p12 = pnand %p6164_p11, %p6381_p5  ;;  %p6172_p2 = por %p6171_p1, %p6170_p0 }
0x17ff   : > { %p6166_p13 = pneg %p6165_p12 }
0x1801   : > { %p6173_p3 = pnand %p6172_p2, %p6166_p13 }
0x1869   : > { %v5790_v41 = vpop.permute.xlu1 %5789 }
0x186a   : > { %v5792_v31 = vunpack.i.h.bf16 %v5790_v41  ;;  %v5791_v47 = vunpack.i.l.bf16 %v5790_v41  ;;  %v5785_v44 = vpop.permute.xlu0 %5784 }
0x186b   : > { %v5787_v1 = vunpack.i.h.bf16 %v5785_v44  ;;  %v5786_v49 = vunpack.i.l.bf16 %v5785_v44 }
0x186c   : > { %v4242_v10 = vsel %vm2822_vm3, %v4238_v19, %v5791_v47  ;;  %v4243_v62 = vsel %vm2822_vm3, %v4239_v48, %v5792_v31 }
0x186d   : > { %v4245_v46 = vpack.c.bf16 %v4243_v62, %v4242_v10  ;;  %v4240_v60 = vsel %vm2822_vm3, %v4236_v52, %v5786_v49  ;;  %v4241_v50 = vsel %vm2822_vm3, %v4237_v3, %v5787_v1  ;;  %v5106_v1 = vld [vmem:[%s7524_s10 + $0x1] ss:$0 sm:$0xff] }
0x186e   : > { %v4244_v2 = vpack.c.bf16 %v4241_v50, %v4240_v60 }
0x1870   : > { %5619 = vmatprep.mubr.msk.bf16.mxu0 %vm1851_vm0, %v4244_v2 }
0x1871   : > { %5620 = vmatmul.mubr.msk.bf16.vlgmr.msra.gmra.mrb[64].mxu0 %vm1851_vm0, %v4245_v46  ;;  %v5107_v46 = vld [vmem:[%s7525_s11 + $0x1] ss:$0 sm:$0xff] }
0x1944   : > { %v5621_v40 = vpop.f32.mrb[64].mxu0 }
0x1945   : > { %v4319_v42 = vpop.f32.mrb[65].mxu0  ;;  %v4336_v56 = vadd.f32 %v5621_v40, %v7104_v30 }
0x1946   : > { %v4334_v51 = vadd.f32 %v4319_v42, %v7100_v27  ;;  %v5622_v55 = vpop.f32.mrb[66].mxu0 }
0x1947   : > { %v4322_v36 = vpop.f32.mrb[67].mxu0  ;;  %v7362_v7 = vadd.f32 %v5103_v39, %v4336_v56  ;;  %v4337_v4 = vadd.f32 %v5622_v55, %v7110_v35 }
0x1948   : > { %v7359_v63 = vadd.f32 %v5103_v39, %v4334_v51  ;;  %v4335_v6 = vadd.f32 %v4322_v36, %v7106_v24 }
0x1949   : > { %v7371_v27 = vadd.f32 %v5103_v39, %v4337_v4  ;;  %v4360_v59 = vsel %vm1851_vm0, %v7362_v7, 0.0 }
0x194a   : > { %v7365_v5 = vadd.f32 %v5103_v39, %v4335_v6  ;;  %v4354_v58 = vsel %vm1851_vm0, %v7359_v63, 0.0 }
0x194b   : > { %4355 = vadd.xlane.f32.xlu0 %v4354_v58  ;;  %v4363_v24 = vsel %vm1851_vm0, %v7371_v27, 0.0  ;;  %v5973_v58 = vld [vmem:[%s7528_s14 + $0x40] sm:$0xff]  }
0x194c   : > { %v4357_v30 = vsel %vm1851_vm0, %v7365_v5, 0.0  ;;  %5635 = vmatprep.subr.bf16.mxu0 %v5973_v58 }
0x194d   : > { %4358 = vadd.xlane.f32.xlu1 %v4357_v30  ;;  %5636 = vmatpush3.bf16.msra.mxu0 %v5973_v58  ;;  %v5974_v30 = vld [vmem:[%s7528_s14 + $0x48] sm:$0xff]  }
0x194e   : > { %5637 = vmatprep.subr.bf16.mxu0 %v5974_v30 }
0x194f   : > { %4361 = vadd.xlane.f32.xlu0 %v4360_v59  ;;  %v5975_v59 = vld [vmem:[%s7528_s14 + $0x50] sm:$0xff]  }
0x1951   : > { %5638 = vmatpush3.bf16.msra.mxu0 %v5974_v30 }
0x1952   : > { %5639 = vmatprep.subr.bf16.mxu0 %v5975_v59 }
0x1953   : > { %4364 = vadd.xlane.f32.xlu0 %v4363_v24  ;;  %v5976_v24 = vld [vmem:[%s7528_s14 + $0x58] sm:$0xff]  }
0x1955   : > { %5640 = vmatpush3.bf16.msra.mxu0 %v5975_v59 }
0x1956   : > { %5641 = vmatprep.subr.bf16.mxu0 %v5976_v24 }
0x1959   : > { %5642 = vmatpush3.bf16.msra.mxu0 %v5976_v24 }
0x19d8   : > { %v4356_v35 = vpop.xlane.xlu0 %4355 }
0x19d9   : > { %v4366_v9 = vmul.f32 0.015625, %v4356_v35  ;;  %v5977_v35 = vld [vmem:[%s7528_s14 + $0x60] sm:$0xff]  }
0x19da   : > { %v4359_v11 = vpop.xlane.xlu1 %4358  ;;  %5643 = vmatprep.subr.bf16.mxu0 %v5977_v35 }
0x19db   : > { %v4370_v8 = vsub.f32 %v7359_v63, %v4366_v9  ;;  %v4367_v54 = vmul.f32 0.015625, %v4359_v11  ;;  %5644 = vmatpush3.bf16.msra.mxu0 %v5977_v35  ;;  %v5978_v9 = vld [vmem:[%s7528_s14 + $0x68] sm:$0xff]   ;;  %v5979_v11 = vld [vmem:[%s7528_s14 + $0x70] sm:$0xff]  }
0x19dc   : > { %v4362_v0 = vpop.xlane.xlu0 %4361  ;;  %5645 = vmatprep.subr.bf16.mxu0 %v5978_v9 }
0x19dd   : > { %v4371_v61 = vsub.f32 %v7365_v5, %v4367_v54  ;;  %v4368_v57 = vmul.f32 0.015625, %v4362_v0  ;;  %v4374_v15 = vmul.f32 %v4370_v8, %v4370_v8  ;;  %v5117_v54 = vld [vmem:[%s7527_s13 + $0x1] ss:$0 sm:$0xff] }
0x19df   : > { %v4372_v17 = vsub.f32 %v7362_v7, %v4368_v57  ;;  %v4378_v20 = vsel %vm1851_vm0, %v4374_v15, 0.0  ;;  %v4375_v33 = vmul.f32 %v4371_v61, %v4371_v61  ;;  %5646 = vmatpush3.bf16.msra.mxu0 %v5978_v9 }
0x19e0   : > { %4379 = vadd.xlane.f32.xlu0 %v4378_v20  ;;  %v4365_v21 = vpop.xlane.xlu0 %4364  ;;  %5647 = vmatprep.subr.bf16.mxu0 %v5979_v11 }
0x19e1   : > { %v4369_v14 = vmul.f32 0.015625, %v4365_v21  ;;  %v4381_v34 = vsel %vm1851_vm0, %v4375_v33, 0.0  ;;  %v4376_v22 = vmul.f32 %v4372_v17, %v4372_v17 }
0x19e2   : > { %4382 = vadd.xlane.f32.xlu1 %v4381_v34 }
0x19e3   : > { %v4373_v23 = vsub.f32 %v7371_v27, %v4369_v14  ;;  %v4384_v53 = vsel %vm1851_vm0, %v4376_v22, 0.0  ;;  %5648 = vmatpush3.bf16.msra.mxu0 %v5979_v11 }
0x19e4   : > { %4385 = vadd.xlane.f32.xlu0 %v4384_v53 }
0x19e5   : > { %v4377_v25 = vmul.f32 %v4373_v23, %v4373_v23 }
0x19e7   : > { %v4387_v26 = vsel %vm1851_vm0, %v4377_v25, 0.0 }
0x19e8   : > { %4388 = vadd.xlane.f32.xlu1 %v4387_v26 }
0x1a6d   : > { %v4380_v16 = vpop.xlane.xlu0 %4379 }
0x1a6e   : > { %v4390_v18 = vmul.f32 0.015625, %v4380_v16 }
0x1a6f   : > { %v4383_v12 = vpop.xlane.xlu1 %4382 }
0x1a70   : > { %v4394_v37 = vadd.f32 1e-12, %v4390_v18  ;;  %v4391_v38 = vmul.f32 0.015625, %v4383_v12 }
0x1a71   : > { %v4386_v41 = vpop.xlane.xlu0 %4385 }
0x1a72   : > { %6145 = vrsqrt.f32 %v4394_v37  ;;  %v4395_v43 = vadd.f32 1e-12, %v4391_v38  ;;  %v4392_v45 = vmul.f32 0.015625, %v4386_v41 }
0x1a74   : > { %6147 = vrsqrt.f32 %v4395_v43  ;;  %v4396_v31 = vadd.f32 1e-12, %v4392_v45 }
0x1a75   : > { %v4389_v47 = vpop.xlane.xlu1 %4388 }
0x1a76   : > { %6149 = vrsqrt.f32 %v4396_v31  ;;  %v4393_v44 = vmul.f32 0.015625, %v4389_v47 }
0x1a78   : > { %v4397_v19 = vadd.f32 1e-12, %v4393_v44 }
0x1a7a   : > { %6151 = vrsqrt.f32 %v4397_v19 }
0x1a7c   : > { %v6146_v48 = vpop.eup %6145 }
0x1a7d   : > { %v4402_v49 = vmul.f32 %v6146_v48, %v4370_v8  ;;  %v5980_v8 = vld [vmem:[%s7528_s14 + $0x78] sm:$0xff]  }
0x1a7e   : > { %v6148_v10 = vpop.eup %6147  ;;  %5649 = vmatprep.subr.bf16.mxu0 %v5980_v8 }
0x1a7f   : > { %v4403_v62 = vmul.f32 %v6148_v10, %v4371_v61  ;;  %v4412_v52 = vmul.f32 %v5106_v1, %v4402_v49  ;;  %5650 = vmatpush3.bf16.msra.mxu0 %v5980_v8 }
0x1a80   : > { %v6150_v3 = vpop.eup %6149 }
0x1a81   : > { %v4404_v60 = vmul.f32 %v6150_v3, %v4372_v17  ;;  %v4413_v50 = vmul.f32 %v5106_v1, %v4403_v62  ;;  %v4422_v2 = vadd.f32 %v5107_v46, %v4412_v52 }
0x1a83   : > { %v4423_v40 = vadd.f32 %v5107_v46, %v4413_v50  ;;  %v4414_v42 = vmul.f32 %v5106_v1, %v4404_v60 }
0x1a84   : > { %v6152_v39 = vpop.eup %6151 }
0x1a85   : > { %v4405_v56 = vmul.f32 %v6152_v39, %v4373_v23  ;;  %v4426_v51 = vpack.c.bf16 %v4423_v40, %v4422_v2  ;;  %v4424_v36 = vadd.f32 %v5107_v46, %v4414_v42 }
0x1a87   : > { %v4415_v55 = vmul.f32 %v5106_v1, %v4405_v56  ;;  %5631 = vmatprep.mubr.msk.bf16.mxu1 %vm1851_vm0, %v4426_v51 }
0x1a89   : > { %v4425_v6 = vadd.f32 %v5107_v46, %v4415_v55  ;;  %v5149_v55 = vld [vmem:[%s7529_s15 + $0x1] ss:$0 sm:$0xff] }
0x1a8b   : > { %v4427_v4 = vpack.c.bf16 %v4425_v6, %v4424_v36 }
0x1a8d   : > { %5632 = vmatmul.mubr.msk.bf16.vlgmr.msra.gmra.mrb[76].mxu1 %vm1851_vm0, %v4427_v4 }
0x1b60   : > { %v5633_v0 = vpop.f32.mrb[76].mxu1 }
0x1b61   : > { %v4518_v61 = vadd.f32 %v5633_v0, %v5117_v54  ;;  %v4509_v57 = vpop.f32.mrb[77].mxu1 }
0x1b62   : > { %v4510_v15 = vadd.f32 %v5117_v54, %v4509_v57  ;;  %v5634_v17 = vpop.f32.mrb[78].mxu1 }
0x1b63   : > { %v4526_v20 = vmul.f32 %v4518_v61, %v4518_v61  ;;  %v4521_v33 = vadd.f32 %v5634_v17, %v5117_v54  ;;  %v4512_v21 = vpop.f32.mrb[79].mxu1 }
0x1b64   : > { %v4524_v14 = vmul.f32 %v4510_v15, %v4510_v15  ;;  %v4513_v34 = vadd.f32 %v5117_v54, %v4512_v21 }
0x1b65   : > { %v4530_v22 = vmul.f32 %v4526_v20, %v4518_v61  ;;  %v4527_v23 = vmul.f32 %v4521_v33, %v4521_v33 }
0x1b66   : > { %v4528_v53 = vmul.f32 %v4524_v14, %v4510_v15  ;;  %v4525_v25 = vmul.f32 %v4513_v34, %v4513_v34 }
0x1b67   : > { %v4534_v26 = vmul.f32 0.044715, %v4530_v22  ;;  %v4531_v28 = vmul.f32 %v4527_v23, %v4521_v33 }
0x1b68   : > { %v4532_v29 = vmul.f32 0.044715, %v4528_v53  ;;  %v4529_v32 = vmul.f32 %v4525_v25, %v4513_v34 }
0x1b69   : > { %v4538_v13 = vadd.f32 %v4534_v26, %v4518_v61  ;;  %v4535_v16 = vmul.f32 0.044715, %v4531_v28  ;;  %v5981_v28 = vld [vmem:[%s7532_s18] sm:$0xff]  }
0x1b6a   : > { %v4536_v18 = vadd.f32 %v4532_v29, %v4510_v15  ;;  %v4533_v12 = vmul.f32 0.044715, %v4529_v32  ;;  %v6235_v29 = vmov 0.0   ;;  %v5982_v32 = vld [vmem:[%s7532_s18 + $0x8] sm:$0xff]  }
0x1b6b   : > { %v4542_v37 = vmul.f32 0.7978846, %v4538_v13  ;;  %v4539_v38 = vadd.f32 %v4535_v16, %v4521_v33  ;;  %5655 = vmatprep.subr.bf16.mxu1 %v6235_v29  ;;  %v5983_v13 = vld [vmem:[%s7532_s18 + $0x10] sm:$0xff]   ;;  %v5984_v16 = vld [vmem:[%s7532_s18 + $0x18] sm:$0xff]   ;;  %5663 = vmatprep.mubr.msk.bf16.mxu1 %vm6236_vm4, %v6235_v29 }
0x1b6c   : > { %v4540_v41 = vmul.f32 0.7978846, %v4536_v18  ;;  %v4537_v43 = vadd.f32 %v4533_v12, %v4513_v34  ;;  %5656 = vmatpush3.bf16.msra.mxu1 %v5981_v28 }
0x1b6d   : > { %6153 = vtanh.f32 %v4542_v37  ;;  %v4543_v45 = vmul.f32 0.7978846, %v4539_v38  ;;  %5657 = vmatprep.subr.bf16.mxu1 %v6235_v29 }
0x1b6e   : > { %6155 = vtanh.f32 %v4540_v41  ;;  %v4541_v31 = vmul.f32 0.7978846, %v4537_v43  ;;  %v4707_v41 = vld [vmem:[%s7530_s16] sm:$0x1] }
0x1b6f   : > { %6157 = vtanh.f32 %v4543_v45  ;;  %v4708_v45 = vld [vmem:[%s7531_s17] sm:$0x1] }
0x1b70   : > { %6159 = vtanh.f32 %v4541_v31  ;;  %5658 = vmatpush3.bf16.msra.mxu1 %v5982_v32 }
0x1b71   : > { %5659 = vmatprep.subr.bf16.mxu1 %v6235_v29 }
0x1b74   : > { %5660 = vmatpush3.bf16.msra.mxu1 %v5983_v13 }
0x1b75   : > { %5661 = vmatprep.subr.bf16.mxu1 %v6235_v29 }
0x1b77   : > { %v6154_v47 = vpop.eup %6153 }
0x1b78   : > { %v6156_v44 = vpop.eup %6155  ;;  %v4550_v19 = vadd.f32 1.0, %v6154_v47  ;;  %5662 = vmatpush3.bf16.msra.mxu1 %v5984_v16 }
0x1b79   : > { %v6158_v48 = vpop.eup %6157  ;;  %v4548_v1 = vadd.f32 1.0, %v6156_v44 }
0x1b7a   : > { %v6160_v49 = vpop.eup %6159  ;;  %v4554_v10 = vmul.f32 0.5, %v4550_v19  ;;  %v4551_v62 = vadd.f32 1.0, %v6158_v48  ;;  %v4733_v19 = vld [vmem:[%s7533_s19] sm:$0x1] }
0x1b7b   : > { %v4549_v52 = vadd.f32 1.0, %v6160_v49  ;;  %v4552_v3 = vmul.f32 0.5, %v4548_v1 }
0x1b7c   : > { %v4555_v46 = vmul.f32 0.5, %v4551_v62  ;;  %v4558_v50 = vmul.f32 %v4554_v10, %v4518_v61 }
0x1b7d   : > { %v4553_v60 = vmul.f32 0.5, %v4549_v52  ;;  %v4556_v40 = vmul.f32 %v4552_v3, %v4510_v15 }
0x1b7e   : > { %v4559_v2 = vmul.f32 %v4555_v46, %v4521_v33 }
0x1b7f   : > { %v4557_v39 = vmul.f32 %v4553_v60, %v4513_v34 }
0x1b80   : > { %v4561_v42 = vpack.c.bf16 %v4559_v2, %v4558_v50 }
0x1b81   : > { %v4560_v56 = vpack.c.bf16 %v4557_v39, %v4556_v40 }
0x1b83   : > { %5651 = vmatprep.mubr.bf16.mxu0 %v4560_v56 }
0x1b84   : > { %5652 = vmatmul.mubr.bf16.vlgmr.msra.gmra.mrb[68].mxu0 %v4561_v42 }
0x1c57   : > { %v5653_v51 = vpop.f32.mrb[68].mxu0 }
0x1c58   : > { %v4661_v36 = vpop.f32.mrb[69].mxu0  ;;  %v4678_v6 = vadd.f32 %v5653_v51, %v7362_v7 }
0x1c59   : > { %v4676_v4 = vadd.f32 %v4661_v36, %v7359_v63  ;;  %v5654_v58 = vpop.f32.mrb[70].mxu0 }
0x1c5a   : > { %v4664_v30 = vpop.f32.mrb[71].mxu0  ;;  %v4679_v24 = vadd.f32 %v5654_v58, %v7371_v27  ;;  %v4690_v9 = vadd.f32 %v5149_v55, %v4678_v6 }
0x1c5b   : > { %v4688_v59 = vadd.f32 %v5149_v55, %v4676_v4  ;;  %v4677_v35 = vadd.f32 %v4664_v30, %v7365_v5 }
0x1c5c   : > { %v4691_v54 = vadd.f32 %v5149_v55, %v4679_v24  ;;  %v4695_v57 = vsel %vm1851_vm0, %v4690_v9, 0.0 }
0x1c5d   : > { %v4689_v11 = vadd.f32 %v5149_v55, %v4677_v35  ;;  %v4692_v8 = vsel %vm1851_vm0, %v4688_v59, 0.0 }
0x1c5e   : > { %v4697_v63 = vsel %vm1851_vm0, %v4691_v54, 0.0 }
0x1c5f   : > { %v4693_v0 = vsel %vm1851_vm0, %v4689_v11, 0.0 }
0x1c60   : > { %v4694_v61 = vadd.f32 %v4693_v0, %v4692_v8 }
0x1c62   : > { %v4696_v7 = vadd.f32 %v4695_v57, %v4694_v61 }
0x1c64   : > { %v4698_v15 = vadd.f32 %v4697_v63, %v4696_v7 }
0x1c66   : > { %v4699_v17 = vrot.slane %v4698_v15, 4 }
0x1c68   : > { %v4700_v20 = vadd.f32 %v4699_v17, %v4698_v15 }
0x1c6a   : > { %v4701_v33 = vrot.slane %v4700_v20, 2 }
0x1c6c   : > { %v4702_v27 = vadd.f32 %v4701_v33, %v4700_v20 }
0x1c6e   : > { %v4703_v21 = vrot.slane %v4702_v27, 1 }
0x1c70   : > { %v4704_v5 = vadd.f32 %v4703_v21, %v4702_v27 }
0x1c72   : > { %v4706_v14 = vmul.f32 0.03125, %v4704_v5 }
0x1c74   : > { %v4709_v34 = vsel %vm1851_vm0, %v4706_v14, 0.0 }
0x1c75   : > { %4710 = vadd.xlane.f32.xlu0 %v4709_v34 }
0x1d02   : > { %v4711_v22 = vpop.xlane.xlu0 %4710 }
0x1d03   : > { %v4712_v23 = vmul.f32 0.015625, %v4711_v22 }
0x1d05   : > { %v4713_v53 = vsub.f32 %v4706_v14, %v4712_v23 }
0x1d07   : > { %v4714_v25 = vmul.f32 %v4713_v53, %v4713_v53 }
0x1d09   : > { %v4715_v26 = vsel %vm1851_vm0, %v4714_v25, 0.0 }
0x1d0a   : > { %4716 = vadd.xlane.f32.xlu1 %v4715_v26 }
0x1d97   : > { %v4717_v18 = vpop.xlane.xlu1 %4716 }
0x1d98   : > { %v4718_v12 = vmul.f32 0.015625, %v4717_v18 }
0x1d9a   : > { %v4719_v37 = vadd.f32 1e-12, %v4718_v12 }
0x1d9c   : > { %6161 = vrsqrt.f32 %v4719_v37 }
0x1da6   : > { %v6162_v38 = vpop.eup %6161 }
0x1da7   : > { %v4721_v43 = vmul.f32 %v6162_v38, %v4713_v53 }
0x1da9   : > { %v4722_v31 = vmul.f32 %v4721_v43, %v4707_v41 }
0x1dab   : > { %v4723_v47 = vadd.f32 %v4722_v31, %v4708_v45 }
0x1dad   : > { %v4724_v44 = vpack.c.bf16 %v4723_v47, %v4723_v47 }
0x1daf   : > { %5664 = vmatmul.mubr.msk.bf16.vlgmr.msra.gmra.mrb[80].mxu1 %vm1851_vm0, %v4724_v44 }
0x1e82   : > { %v4795_v48 = vpop.f32.mrb[80].mxu1 }
0x1e83   : > { %v4796_v1 = vadd.f32 %v4795_v48, %v4733_v19  ;;  %v5665_v49 = vpop.f32.mrb[81].mxu1 }
0x1e84   : > { %v4798_v10 = vpop.f32.mrb[82].mxu1 }
0x1e85   : > { %4801 = vst [vmem:[%s621_s27] sm:$0x1] %v4796_v1  ;;  %v5666_v62 = vpop.f32.mrb[83].mxu1 }
0x1e86   : > { %6176 = shalt.err (!%p6173_p3)
}
0x1e87   : > { %s6177_s28 = scalar_lea.hbm %s7472_s0, 16  ;;  %s6181_s25 = scalar_lea.hbm %s7587_s29, 32 }
0x1e88   : > { %p6178_p4 = scmp.ne.s32.totalorder %s7472_s0, %s6177_s28  ;;  %p6182_p9 = scmp.lt.u32.totalorder %s7472_s0, %s7587_s29 }
0x1e89   : > { %p6183_p10 = scmp.lt.u32.totalorder %s6181_s25, %s6177_s28  ;;  %p6185_p12 = scmp.lt.u32.totalorder %s6177_s28, %s7472_s0 }
0x1e8a   : > { %p6179_p7 = pnand %p6178_p4, %p6381_p5 }
0x1e8b   : > { %p6184_p11 = por %p6183_p10, %p6182_p9 }
0x1e8c   : > { %p6180_p8 = pneg %p6179_p7 }
0x1e8d   : > { %p6186_p13 = por %p6185_p12, %p6184_p11 }
0x1e8f   : > { %p6187_p0 = pnand %p6186_p13, %p6180_p8 }
0x1e91   : > { %6190 = shalt.err (!%p6187_p0)
}
0x1e92   : > { %5684 = dma.vmem_to_hbm [thread:$0]  (%p6381_p5), %s7474_s24, 16, %s7472_s0, %s4803_s26  }
0x1e93 PF: > { %s7588_s2 = sld [smem:[#allocation7_spill]]  ;;  %s7589_s1 = sld [smem:[#allocation5_spill]] }
0x1e99   : > { %p5690_p1 = scmp.ge.s32.totalorder %s7588_s2, 2  ;;  %s4827_s27 = sand.u32 1, %s7589_s1  }
0x1e9a   : > { %s4828_s23 = scalar_lea.sflag [#allocation3], %s4827_s27 }
0x1e9b   : > { %p5687_p2 = pnand %p5690_p1, %p6385_p6 }
0x1e9d   : > { %6208 = dma.done.wait (!%p5687_p2), %s4828_s23, 16  }
0x1e9e   : > { %6210 = vsyncadd (!%p5687_p2), %s4828_s23, 4294967280  ;;  %s7591_s24 = sld [smem:[#allocation8_spill]]  ;;  %s7592_s28 = sld [smem:[#allocation6_spill]] }
0x1e9f   : > { %s7593_s23 = sld [smem:[#allocation9_spill]]  ;;  %s7594_s1 = smov %s6217_s22 }
0x1ea4   : > { %p30_p3 = scmp.ge.s32.totalorder %s7591_s24, 4   ;;  %s7595_s22 = smov %s7592_s28 }
0x1ea6   :  { %32 = sbr.rel (!%p30_p3) target bundleno = 11 (0xb), region = 147 }
0x1ead   :  { %4832 = vsyncpa [#allocation3], 1 }
0x1eae   :  { %4834 = vsyncpa [#allocation3 + $0x1], 1 }

</bundles_post_ra>
